<compile_context>
chip_gen: v5e
topology: v5e:2x2
jax: 0.10.0
libtpu: 0.0.40
codegen_flags: <defaults>
</compile_context>

<pallas_src>
import jax
import jax.numpy as jnp
import numpy as np
from jax import lax
from jax.experimental import pallas as pl
from jax.experimental.pallas import tpu as pltpu


def reversible_kernel(x_ref, wf_ref, bf_ref, wg_ref, bg_ref, out_ref,
                      x1_ref, x2_ref):
    """Grid: (row_tiles,).  Weights/biases are fully VMEM-resident; the layer
    loop is an in-kernel unrolled fori_loop that updates the f32 VMEM carry
    refs x1_ref / x2_ref in place."""
    num_layers = wf_ref.shape[0]

    # cat([x, x], dim=-1) then chunk -> x1 = x, x2 = x  (carries kept in f32).
    x = x_ref[...].astype(jnp.float32)
    x1_ref[...] = x
    x2_ref[...] = x

    def layer(l, carry):
        x2 = x2_ref[...]
        # y1 = x1 + f_l(x2); bf16 MXU operands, f32 accumulation.
        f_x2 = jnp.dot(x2.astype(jnp.bfloat16), wf_ref[l],
                       preferred_element_type=jnp.float32) + bf_ref[l]
        y1 = x1_ref[...] + f_x2
        x1_ref[...] = y1
        # y2 = x2 + g_l(y1)
        g_y1 = jnp.dot(y1.astype(jnp.bfloat16), wg_ref[l],
                       preferred_element_type=jnp.float32) + bg_ref[l]
        x2_ref[...] = x2 + g_y1
        return carry

    lax.fori_loop(0, num_layers, layer, 0, unroll=True)

    # stack(chunk(x, 2, dim=-1)).sum(0) -> x1 + x2
    out_ref[...] = (x1_ref[...] + x2_ref[...]).astype(out_ref.dtype)


def _pick_row_tile(M, desired=512, min_grid=2):
    """Largest multiple-of-8 tile <= `desired` that divides M exactly while
    leaving >= min_grid tiles (so v7x megacore can split the parallel row
    axis).  Returns (tm, needs_pad)."""
    desired = max(8, (desired // 8) * 8)
    hi = min(desired, (M // min_grid) // 8 * 8)
    t = hi
    while t >= 8:
        if M % t == 0:
            return t, False
        t -= 8
    # Fallback: no suitable exact divisor -> pad the last tile (rows past M
    # are computed and discarded; safe because f/g are row-independent).
    return min(desired, pl.cdiv(M, 8) * 8), True


def reversible_sequence(x, Wf, bf, Wg, bg, *, tm=None, donate_x=False):
    """x: (B, N, D) float32; Wf/Wg: (L, D, D); bf/bg: (L, 1, D)."""
    B, N, D = x.shape
    L = Wf.shape[0]
    M = B * N

    x_flat = x.reshape(M, D)

    if tm is None:
        tm, needs_pad = _pick_row_tile(M)
    else:
        tm = max(8, (tm // 8) * 8)
        needs_pad = (M % tm) != 0

    M_pad = pl.cdiv(M, tm) * tm
    if needs_pad:
        x_flat = jnp.pad(x_flat, ((0, M_pad - M), (0, 0)))

    # bf16 weights for the MXU; biases stay f32 (added post-accumulation).
    Wf_b = Wf.astype(jnp.bfloat16)
    Wg_b = Wg.astype(jnp.bfloat16)
    bf_f = bf.astype(jnp.float32)
    bg_f = bg.astype(jnp.float32)

    # Advisory cost for XLA's scheduler around the custom call.
    cost = pl.CostEstimate(
        flops=4 * L * M_pad * D * D,                       # 2 matmuls / layer
        transcendentals=0,
        bytes_accessed=(2 * M_pad * D * 4                  # x in + out (f32)
                        + 2 * L * D * D * 2                # Wf + Wg (bf16)
                        + 2 * L * D * 4),                  # bf + bg (f32)
    )

    extra_kwargs = {}
    # Alias x's buffer to the output only when the caller can donate x and no
    # padding reshaped the problem (shapes/dtypes must match exactly).
    if donate_x and not needs_pad and x.dtype == jnp.float32:
        extra_kwargs["input_output_aliases"] = {0: 0}

    out_flat = pl.pallas_call(
        reversible_kernel,
        out_shape=jax.ShapeDtypeStruct((M_pad, D), x.dtype),
        grid_spec=pltpu.PrefetchScalarGridSpec(
            num_scalar_prefetch=0,
            grid=(M_pad // tm,),
            in_specs=[
                # Row tile of activations (streamed, double-buffered).
                pl.BlockSpec((tm, D), lambda i: (i, 0)),
                # Full-extent weight/bias blocks: constant index_map -> DMA'd
                # from HBM once and kept VMEM-resident across all row tiles.
                pl.BlockSpec((L, D, D), lambda i: (0, 0, 0)),   # Wf (bf16)
                pl.BlockSpec((L, 1, D), lambda i: (0, 0, 0)),   # bf (f32)
                pl.BlockSpec((L, D, D), lambda i: (0, 0, 0)),   # Wg (bf16)
                pl.BlockSpec((L, 1, D), lambda i: (0, 0, 0)),   # bg (f32)
            ],
            out_specs=pl.BlockSpec((tm, D), lambda i: (i, 0)),
            # Explicit f32 carries: exceeds the vreg file at tm>=256, so keep
            # them in VMEM scratch instead of an SSA fori_loop carry.
            scratch_shapes=[
                pltpu.VMEM((tm, D), jnp.float32),   # x1
                pltpu.VMEM((tm, D), jnp.float32),   # x2
            ],
        ),
        compiler_params=pltpu.CompilerParams(
            dimension_semantics=("parallel",),
            # Live VMEM at tm=512, D=128, L=3:
            #   x in/out double-buffered  ~1.0 MiB
            #   weights+biases (resident) ~0.4 MiB
            #   x1/x2 scratch             ~0.5 MiB  -> ~2 MiB total.
            # 32 MiB gives ample headroom and is safe on v7x's 64 MiB physical
            # VMEM; re-derive if tm or L*D^2 are scaled up.
            vmem_limit_bytes=32 * 1024 * 1024,
        ),
        cost_estimate=cost,
        **extra_kwargs,
    )(x_flat, Wf_b, bf_f, Wg_b, bg_f)

    if needs_pad:
        out_flat = out_flat[:M]
    return out_flat.reshape(B, N, D)


def reversible_sequence_ref(x, Wf, bf, Wg, bg):
    """Pure-JAX (f32) reference of the PyTorch forward."""
    L = Wf.shape[0]
    x1, x2 = x, x
    for l in range(L):
        y1 = x1 + (x2 @ Wf[l] + bf[l, 0])
        y2 = x2 + (y1 @ Wg[l] + bg[l, 0])
        x1, x2 = y1, y2
    return x1 + x2


if __name__ == "__main__":
    # batch, seq, feature dim, number of reversible blocks.
    # D=128 keeps the lane axis dense; M = B*N = 1024 -> tm=512, 2 row tiles
    # (tile divides M exactly, so no host-side pad; >=2 tiles keeps the v7x
    # megacore split available while halving grid-step overhead vs tm=256).
    B, N, D, L = 4, 256, 128, 3

    key = jax.random.PRNGKey(0)
    kx, kwf, kbf, kwg, kbg = jax.random.split(key, 5)

    x = jax.random.normal(kx, (B, N, D), dtype=jnp.float32)
    # Deterministic synthetic parameters for the L (f, g) block pairs.
    Wf = 0.05 * jax.random.normal(kwf, (L, D, D), dtype=jnp.float32)
    bf = 0.05 * jax.random.normal(kbf, (L, 1, D), dtype=jnp.float32)
    Wg = 0.05 * jax.random.normal(kwg, (L, D, D), dtype=jnp.float32)
    bg = 0.05 * jax.random.normal(kbg, (L, 1, D), dtype=jnp.float32)

    out = jax.block_until_ready(reversible_sequence(x, Wf, bf, Wg, bg))
    ref = reversible_sequence_ref(x, Wf, bf, Wg, bg)

    # bf16 MXU operands / f32 accumulation vs pure-f32 reference: error is
    # bounded by bf16 operand rounding across 6 small matmuls (tightened from
    # the previous atol=2e-1).
    np.testing.assert_allclose(np.asarray(out), np.asarray(ref),
                               rtol=2e-2, atol=1e-1)
    print("KERNEL_OK")
</pallas_src>

<mosaic_0001>
module attributes {stable_mosaic.version = 11 : i64} {
  func.func @reversible_kernel(%arg0: i32, %arg1: memref<512x128xf32, #tpu.memory_space<vmem>>, %arg2: memref<3x128x128xbf16, #tpu.memory_space<vmem>>, %arg3: memref<3x1x128xf32, #tpu.memory_space<vmem>>, %arg4: memref<3x128x128xbf16, #tpu.memory_space<vmem>>, %arg5: memref<3x1x128xf32, #tpu.memory_space<vmem>>, %arg6: memref<512x128xf32, #tpu.memory_space<vmem>>, %arg7: memref<512x128xf32, #tpu.memory_space<vmem>>, %arg8: memref<512x128xf32, #tpu.memory_space<vmem>>) attributes {dimension_semantics = [#tpu.dimension_semantics<parallel>], iteration_bounds = array<i64: 2>, scalar_prefetch = 0 : i64, scratch_operands = 2 : i64, tpu.core_type = #tpu.core_type<tc>, window_params = [{transform_indices = @transform_0, window_bounds = array<i64: 512, 128>}, {pipeline_mode = #tpu.pipeline_mode<synchronous>, transform_indices = @transform_1, window_bounds = array<i64: 3, 128, 128>}, {pipeline_mode = #tpu.pipeline_mode<synchronous>, transform_indices = @transform_2, window_bounds = array<i64: 3, 1, 128>}, {pipeline_mode = #tpu.pipeline_mode<synchronous>, transform_indices = @transform_3, window_bounds = array<i64: 3, 128, 128>}, {pipeline_mode = #tpu.pipeline_mode<synchronous>, transform_indices = @transform_4, window_bounds = array<i64: 3, 1, 128>}, {transform_indices = @transform_5, window_bounds = array<i64: 512, 128>}]} {
    %c0 = arith.constant 0 : index
    %c0_0 = arith.constant 0 : index
    %0 = vector.load %arg1[%c0, %c0_0] : memref<512x128xf32, #tpu.memory_space<vmem>>, vector<512x128xf32>
    %c0_1 = arith.constant 0 : index
    %c0_2 = arith.constant 0 : index
    %1 = vector.load %arg7[%c0_1, %c0_2] : memref<512x128xf32, #tpu.memory_space<vmem>>, vector<512x128xf32>
    tpu.vector_store %arg7[%c0_1, %c0_2], %0 {strides = array<i32>} : memref<512x128xf32, #tpu.memory_space<vmem>>, vector<512x128xf32>,
    %c0_3 = arith.constant 0 : index
    %c0_4 = arith.constant 0 : index
    %2 = vector.load %arg8[%c0_3, %c0_4] : memref<512x128xf32, #tpu.memory_space<vmem>>, vector<512x128xf32>
    tpu.vector_store %arg8[%c0_3, %c0_4], %0 {strides = array<i32>} : memref<512x128xf32, #tpu.memory_space<vmem>>, vector<512x128xf32>,
    %c0_i32 = arith.constant 0 : i32
    %c0_5 = arith.constant 0 : index
    %c0_6 = arith.constant 0 : index
    %3 = vector.load %arg8[%c0_5, %c0_6] : memref<512x128xf32, #tpu.memory_space<vmem>>, vector<512x128xf32>
    %4 = arith.truncf %3 : vector<512x128xf32> to vector<512x128xbf16>
    %5 = arith.index_cast %c0_i32 : i32 to index
    %c0_7 = arith.constant 0 : index
    %c0_8 = arith.constant 0 : index
    %6 = vector.load %arg2[%5, %c0_7, %c0_8] : memref<3x128x128xbf16, #tpu.memory_space<vmem>>, vector<1x128x128xbf16>
    %7 = vector.shape_cast %6 : vector<1x128x128xbf16> to vector<128x128xbf16>
    %cst = arith.constant dense<0.000000e+00> : vector<512x128xf32>
    %8 = tpu.matmul %4, %7, %cst {dimension_numbers = #tpu.dot_dimension_numbers<[1], [0], [0], [1], [0, 0, 1, 1], [], []>} : vector<512x128xbf16>, vector<128x128xbf16>, vector<512x128xf32> -> vector<512x128xf32>
    %9 = arith.index_cast %c0_i32 : i32 to index
    %c0_9 = arith.constant 0 : index
    %c0_10 = arith.constant 0 : index
    %10 = vector.load %arg3[%9, %c0_9, %c0_10] : memref<3x1x128xf32, #tpu.memory_space<vmem>>, vector<1x1x128xf32>
    %11 = vector.shape_cast %10 : vector<1x1x128xf32> to vector<1x128xf32>
    %12 = vector.broadcast %11 : vector<1x128xf32> to vector<512x128xf32>
    %13 = arith.addf %8, %12 : vector<512x128xf32>
    %c0_11 = arith.constant 0 : index
    %c0_12 = arith.constant 0 : index
    %14 = vector.load %arg7[%c0_11, %c0_12] : memref<512x128xf32, #tpu.memory_space<vmem>>, vector<512x128xf32>
    %15 = arith.addf %14, %13 : vector<512x128xf32>
    %c0_13 = arith.constant 0 : index
    %c0_14 = arith.constant 0 : index
    %16 = vector.load %arg7[%c0_13, %c0_14] : memref<512x128xf32, #tpu.memory_space<vmem>>, vector<512x128xf32>
    tpu.vector_store %arg7[%c0_13, %c0_14], %15 {strides = array<i32>} : memref<512x128xf32, #tpu.memory_space<vmem>>, vector<512x128xf32>,
    %17 = arith.truncf %15 : vector<512x128xf32> to vector<512x128xbf16>
    %18 = arith.index_cast %c0_i32 : i32 to index
    %c0_15 = arith.constant 0 : index
    %c0_16 = arith.constant 0 : index
    %19 = vector.load %arg4[%18, %c0_15, %c0_16] : memref<3x128x128xbf16, #tpu.memory_space<vmem>>, vector<1x128x128xbf16>
    %20 = vector.shape_cast %19 : vector<1x128x128xbf16> to vector<128x128xbf16>
    %cst_17 = arith.constant dense<0.000000e+00> : vector<512x128xf32>
    %21 = tpu.matmul %17, %20, %cst_17 {dimension_numbers = #tpu.dot_dimension_numbers<[1], [0], [0], [1], [0, 0, 1, 1], [], []>} : vector<512x128xbf16>, vector<128x128xbf16>, vector<512x128xf32> -> vector<512x128xf32>
    %22 = arith.index_cast %c0_i32 : i32 to index
    %c0_18 = arith.constant 0 : index
    %c0_19 = arith.constant 0 : index
    %23 = vector.load %arg5[%22, %c0_18, %c0_19] : memref<3x1x128xf32, #tpu.memory_space<vmem>>, vector<1x1x128xf32>
    %24 = vector.shape_cast %23 : vector<1x1x128xf32> to vector<1x128xf32>
    %25 = vector.broadcast %24 : vector<1x128xf32> to vector<512x128xf32>
    %26 = arith.addf %21, %25 : vector<512x128xf32>
    %27 = arith.addf %3, %26 : vector<512x128xf32>
    %c0_20 = arith.constant 0 : index
    %c0_21 = arith.constant 0 : index
    %28 = vector.load %arg8[%c0_20, %c0_21] : memref<512x128xf32, #tpu.memory_space<vmem>>, vector<512x128xf32>
    tpu.vector_store %arg8[%c0_20, %c0_21], %27 {strides = array<i32>} : memref<512x128xf32, #tpu.memory_space<vmem>>, vector<512x128xf32>,
    %c1_i32 = arith.constant 1 : i32
    %c0_22 = arith.constant 0 : index
    %c0_23 = arith.constant 0 : index
    %29 = vector.load %arg8[%c0_22, %c0_23] : memref<512x128xf32, #tpu.memory_space<vmem>>, vector<512x128xf32>
    %30 = arith.truncf %29 : vector<512x128xf32> to vector<512x128xbf16>
    %31 = arith.index_cast %c1_i32 : i32 to index
    %c0_24 = arith.constant 0 : index
    %c0_25 = arith.constant 0 : index
    %32 = vector.load %arg2[%31, %c0_24, %c0_25] : memref<3x128x128xbf16, #tpu.memory_space<vmem>>, vector<1x128x128xbf16>
    %33 = vector.shape_cast %32 : vector<1x128x128xbf16> to vector<128x128xbf16>
    %cst_26 = arith.constant dense<0.000000e+00> : vector<512x128xf32>
    %34 = tpu.matmul %30, %33, %cst_26 {dimension_numbers = #tpu.dot_dimension_numbers<[1], [0], [0], [1], [0, 0, 1, 1], [], []>} : vector<512x128xbf16>, vector<128x128xbf16>, vector<512x128xf32> -> vector<512x128xf32>
    %35 = arith.index_cast %c1_i32 : i32 to index
    %c0_27 = arith.constant 0 : index
    %c0_28 = arith.constant 0 : index
    %36 = vector.load %arg3[%35, %c0_27, %c0_28] : memref<3x1x128xf32, #tpu.memory_space<vmem>>, vector<1x1x128xf32>
    %37 = vector.shape_cast %36 : vector<1x1x128xf32> to vector<1x128xf32>
    %38 = vector.broadcast %37 : vector<1x128xf32> to vector<512x128xf32>
    %39 = arith.addf %34, %38 : vector<512x128xf32>
    %c0_29 = arith.constant 0 : index
    %c0_30 = arith.constant 0 : index
    %40 = vector.load %arg7[%c0_29, %c0_30] : memref<512x128xf32, #tpu.memory_space<vmem>>, vector<512x128xf32>
    %41 = arith.addf %40, %39 : vector<512x128xf32>
    %c0_31 = arith.constant 0 : index
    %c0_32 = arith.constant 0 : index
    %42 = vector.load %arg7[%c0_31, %c0_32] : memref<512x128xf32, #tpu.memory_space<vmem>>, vector<512x128xf32>
    tpu.vector_store %arg7[%c0_31, %c0_32], %41 {strides = array<i32>} : memref<512x128xf32, #tpu.memory_space<vmem>>, vector<512x128xf32>,
    %43 = arith.truncf %41 : vector<512x128xf32> to vector<512x128xbf16>
    %44 = arith.index_cast %c1_i32 : i32 to index
    %c0_33 = arith.constant 0 : index
    %c0_34 = arith.constant 0 : index
    %45 = vector.load %arg4[%44, %c0_33, %c0_34] : memref<3x128x128xbf16, #tpu.memory_space<vmem>>, vector<1x128x128xbf16>
    %46 = vector.shape_cast %45 : vector<1x128x128xbf16> to vector<128x128xbf16>
    %cst_35 = arith.constant dense<0.000000e+00> : vector<512x128xf32>
    %47 = tpu.matmul %43, %46, %cst_35 {dimension_numbers = #tpu.dot_dimension_numbers<[1], [0], [0], [1], [0, 0, 1, 1], [], []>} : vector<512x128xbf16>, vector<128x128xbf16>, vector<512x128xf32> -> vector<512x128xf32>
    %48 = arith.index_cast %c1_i32 : i32 to index
    %c0_36 = arith.constant 0 : index
    %c0_37 = arith.constant 0 : index
    %49 = vector.load %arg5[%48, %c0_36, %c0_37] : memref<3x1x128xf32, #tpu.memory_space<vmem>>, vector<1x1x128xf32>
    %50 = vector.shape_cast %49 : vector<1x1x128xf32> to vector<1x128xf32>
    %51 = vector.broadcast %50 : vector<1x128xf32> to vector<512x128xf32>
    %52 = arith.addf %47, %51 : vector<512x128xf32>
    %53 = arith.addf %29, %52 : vector<512x128xf32>
    %c0_38 = arith.constant 0 : index
    %c0_39 = arith.constant 0 : index
    %54 = vector.load %arg8[%c0_38, %c0_39] : memref<512x128xf32, #tpu.memory_space<vmem>>, vector<512x128xf32>
    tpu.vector_store %arg8[%c0_38, %c0_39], %53 {strides = array<i32>} : memref<512x128xf32, #tpu.memory_space<vmem>>, vector<512x128xf32>,
    %c2_i32 = arith.constant 2 : i32
    %c0_40 = arith.constant 0 : index
    %c0_41 = arith.constant 0 : index
    %55 = vector.load %arg8[%c0_40, %c0_41] : memref<512x128xf32, #tpu.memory_space<vmem>>, vector<512x128xf32>
    %56 = arith.truncf %55 : vector<512x128xf32> to vector<512x128xbf16>
    %57 = arith.index_cast %c2_i32 : i32 to index
    %c0_42 = arith.constant 0 : index
    %c0_43 = arith.constant 0 : index
    %58 = vector.load %arg2[%57, %c0_42, %c0_43] : memref<3x128x128xbf16, #tpu.memory_space<vmem>>, vector<1x128x128xbf16>
    %59 = vector.shape_cast %58 : vector<1x128x128xbf16> to vector<128x128xbf16>
    %cst_44 = arith.constant dense<0.000000e+00> : vector<512x128xf32>
    %60 = tpu.matmul %56, %59, %cst_44 {dimension_numbers = #tpu.dot_dimension_numbers<[1], [0], [0], [1], [0, 0, 1, 1], [], []>} : vector<512x128xbf16>, vector<128x128xbf16>, vector<512x128xf32> -> vector<512x128xf32>
    %61 = arith.index_cast %c2_i32 : i32 to index
    %c0_45 = arith.constant 0 : index
    %c0_46 = arith.constant 0 : index
    %62 = vector.load %arg3[%61, %c0_45, %c0_46] : memref<3x1x128xf32, #tpu.memory_space<vmem>>, vector<1x1x128xf32>
    %63 = vector.shape_cast %62 : vector<1x1x128xf32> to vector<1x128xf32>
    %64 = vector.broadcast %63 : vector<1x128xf32> to vector<512x128xf32>
    %65 = arith.addf %60, %64 : vector<512x128xf32>
    %c0_47 = arith.constant 0 : index
    %c0_48 = arith.constant 0 : index
    %66 = vector.load %arg7[%c0_47, %c0_48] : memref<512x128xf32, #tpu.memory_space<vmem>>, vector<512x128xf32>
    %67 = arith.addf %66, %65 : vector<512x128xf32>
    %c0_49 = arith.constant 0 : index
    %c0_50 = arith.constant 0 : index
    %68 = vector.load %arg7[%c0_49, %c0_50] : memref<512x128xf32, #tpu.memory_space<vmem>>, vector<512x128xf32>
    tpu.vector_store %arg7[%c0_49, %c0_50], %67 {strides = array<i32>} : memref<512x128xf32, #tpu.memory_space<vmem>>, vector<512x128xf32>,
    %69 = arith.truncf %67 : vector<512x128xf32> to vector<512x128xbf16>
    %70 = arith.index_cast %c2_i32 : i32 to index
    %c0_51 = arith.constant 0 : index
    %c0_52 = arith.constant 0 : index
    %71 = vector.load %arg4[%70, %c0_51, %c0_52] : memref<3x128x128xbf16, #tpu.memory_space<vmem>>, vector<1x128x128xbf16>
    %72 = vector.shape_cast %71 : vector<1x128x128xbf16> to vector<128x128xbf16>
    %cst_53 = arith.constant dense<0.000000e+00> : vector<512x128xf32>
    %73 = tpu.matmul %69, %72, %cst_53 {dimension_numbers = #tpu.dot_dimension_numbers<[1], [0], [0], [1], [0, 0, 1, 1], [], []>} : vector<512x128xbf16>, vector<128x128xbf16>, vector<512x128xf32> -> vector<512x128xf32>
    %74 = arith.index_cast %c2_i32 : i32 to index
    %c0_54 = arith.constant 0 : index
    %c0_55 = arith.constant 0 : index
    %75 = vector.load %arg5[%74, %c0_54, %c0_55] : memref<3x1x128xf32, #tpu.memory_space<vmem>>, vector<1x1x128xf32>
    %76 = vector.shape_cast %75 : vector<1x1x128xf32> to vector<1x128xf32>
    %77 = vector.broadcast %76 : vector<1x128xf32> to vector<512x128xf32>
    %78 = arith.addf %73, %77 : vector<512x128xf32>
    %79 = arith.addf %55, %78 : vector<512x128xf32>
    %c0_56 = arith.constant 0 : index
    %c0_57 = arith.constant 0 : index
    %80 = vector.load %arg8[%c0_56, %c0_57] : memref<512x128xf32, #tpu.memory_space<vmem>>, vector<512x128xf32>
    tpu.vector_store %arg8[%c0_56, %c0_57], %79 {strides = array<i32>} : memref<512x128xf32, #tpu.memory_space<vmem>>, vector<512x128xf32>,
    %c3_i32 = arith.constant 3 : i32
    %c0_58 = arith.constant 0 : index
    %c0_59 = arith.constant 0 : index
    %81 = vector.load %arg7[%c0_58, %c0_59] : memref<512x128xf32, #tpu.memory_space<vmem>>, vector<512x128xf32>
    %c0_60 = arith.constant 0 : index
    %c0_61 = arith.constant 0 : index
    %82 = vector.load %arg8[%c0_60, %c0_61] : memref<512x128xf32, #tpu.memory_space<vmem>>, vector<512x128xf32>
    %83 = arith.addf %81, %82 : vector<512x128xf32>
    %c0_62 = arith.constant 0 : index
    %c0_63 = arith.constant 0 : index
    %84 = vector.load %arg6[%c0_62, %c0_63] : memref<512x128xf32, #tpu.memory_space<vmem>>, vector<512x128xf32>
    tpu.vector_store %arg6[%c0_62, %c0_63], %83 {strides = array<i32>} : memref<512x128xf32, #tpu.memory_space<vmem>>, vector<512x128xf32>,
    return
  }
  func.func @transform_0(%arg0: i32) -> (i32, i32) {
    %c0_i32 = arith.constant 0 : i32
    %c0_i32_0 = arith.constant 0 : i32
    return %arg0, %c0_i32 : i32, i32
  }
  func.func @transform_1(%arg0: i32) -> (i32, i32, i32) {
    %c0_i32 = arith.constant 0 : i32
    %c0_i32_0 = arith.constant 0 : i32
    %c0_i32_1 = arith.constant 0 : i32
    %c0_i32_2 = arith.constant 0 : i32
    return %c0_i32, %c0_i32_0, %c0_i32_1 : i32, i32, i32
  }
  func.func @transform_2(%arg0: i32) -> (i32, i32, i32) {
    %c0_i32 = arith.constant 0 : i32
    %c0_i32_0 = arith.constant 0 : i32
    %c0_i32_1 = arith.constant 0 : i32
    %c0_i32_2 = arith.constant 0 : i32
    return %c0_i32, %c0_i32_0, %c0_i32_1 : i32, i32, i32
  }
  func.func @transform_3(%arg0: i32) -> (i32, i32, i32) {
    %c0_i32 = arith.constant 0 : i32
    %c0_i32_0 = arith.constant 0 : i32
    %c0_i32_1 = arith.constant 0 : i32
    %c0_i32_2 = arith.constant 0 : i32
    return %c0_i32, %c0_i32_0, %c0_i32_1 : i32, i32, i32
  }
  func.func @transform_4(%arg0: i32) -> (i32, i32, i32) {
    %c0_i32 = arith.constant 0 : i32
    %c0_i32_0 = arith.constant 0 : i32
    %c0_i32_1 = arith.constant 0 : i32
    %c0_i32_2 = arith.constant 0 : i32
    return %c0_i32, %c0_i32_0, %c0_i32_1 : i32, i32, i32
  }
  func.func @transform_5(%arg0: i32) -> (i32, i32) {
    %c0_i32 = arith.constant 0 : i32
    %c0_i32_0 = arith.constant 0 : i32
    return %arg0, %c0_i32 : i32, i32
  }
}

</mosaic_0001>

<bundles_post_ra>
// kernel: tpu_custom_call.1
= control target key start
LH: loop header
LB: loop body
LE: loop exit
PB: predicated region body
PF: predicated region fallthrough
CT: control target
= control target key end

     0   :  { %10 = vsyncpa [#allocation5], 0  ;;  %s6699_s0 = inlined_call_operand.hbm [shape: f32[1024,128], index: 0, kind: input, shape index: {}]   ;;  %s6700_s1 = inlined_call_operand.hbm [shape: bf16[3,128,128], index: 1, kind: input, shape index: {}]   ;;  %s6701_s2 = inlined_call_operand.hbm [shape: f32[3,1,128], index: 2, kind: input, shape index: {}]   ;;  %s6702_s3 = inlined_call_operand.hbm [shape: bf16[3,128,128], index: 3, kind: input, shape index: {}]   ;;  %s6703_s4 = inlined_call_operand.vmem [shape: f32[3,1,128], index: 4, kind: input, shape index: {}]   ;;  %s6704_s5 = inlined_call_operand.hbm [shape: f32[1024,128], index: 5, kind: output, shape index: {}]  }
   0x1   :  { %12 = vsyncpa [#allocation5 + $0x1], 0 }
   0x2   :  { %13 = vsyncpa [#allocation8], 0 }
   0x3   :  { %14 = vsyncpa [#allocation11], 0 }
   0x4   :  { %15 = vsyncpa [#allocation6], 0 }
   0x5   :  { %17 = vsyncpa [#allocation6 + $0x1], 0  ;;  %s4282_s18 = smov 0   ;;  %s4284_s19 = smov 0  }
   0x6   :  { %s4286_s20 = smov 0   ;;  %s4288_s21 = smov 0  }
   0x7 LB: > { %s4303_s22 = sadd.s32 4294967295, %s4239_s21   ;;  %s3637_s23 = sadd.s32 4294967294, %s4239_s21   ;;  %s4239_s21 = sphi %s4288_s21, %s7255_s21   ;;  %s4235_s20 = sphi %s4286_s20, %s7254_s20   ;;  %s4231_s19 = sphi %s4284_s19, %s7253_s19   ;;  %s4227_s18 = sphi %s4282_s18, %s7252_s18  }
   0x8   : > { %p43_p0 = scmp.ne.s32.totalorder %s4231_s19, %s4227_s18  ;;  %p44_p1 = scmp.eq.s32.totalorder %s4303_s22, 0 }
   0x9   : > { %p151_p2 = scmp.eq.s32.totalorder %s4303_s22, 1  ;;  %p157_p3 = scmp.eq.s32.totalorder %s3637_s23, 1 }
   0xa   : > { %p4312_p4 = por %p44_p1, %p43_p0  ;;  %p3638_p5 = scmp.ge.s32.totalorder %s4239_s21, 1 }
   0xb   : > { %p4317_p6 = por %p157_p3, %p43_p0  ;;  %p164_p7 = scmp.lt.s32.totalorder %s4239_s21, 3 }
   0xc   : > { %s175_s28 = sshll.u32 %s6700_s1, 4  ;;  %s4241_s30 = smov [#allocation7]   ;;  %s176_s28 = int_to_ptr.hbm [resolvable:$true] %s175_s28 }
   0xd   : > { %p4325_p8 = pnand %p3638_p5, %p164_p7  ;;  %s177_s6 = sshll.u32 %s4241_s30, 4  ;;  %s178_s6 = int_to_ptr.vmem [resolvable:$true] %s177_s6 }
   0xe   : > { %s189_s10 = sshll.u32 %s6701_s2, 4  ;;  %s4242_s11 = smov 64   ;;  %s190_s10 = int_to_ptr.hbm [resolvable:$true] %s189_s10 }
   0xf   : > { %p3933_p9 = pneg %p4325_p8  ;;  %s4243_s12 = smov 4  }
  0x10   : > { %s4244_s13 = smov [#allocation9]   ;;  %s4245_s15 = smov 16  }
  0x11   : > { %p4333_p10 = pnand %p3933_p9, %p44_p1  ;;  %s191_s14 = sshll.u32 %s4244_s13, 4  ;;  %s192_s14 = int_to_ptr.vmem [resolvable:$true] %s191_s14 }
  0x12   : > { %s4246_s16 = smov 1   ;;  %s203_s26 = sshll.u32 %s6702_s3, 4  ;;  %s204_s26 = int_to_ptr.hbm [resolvable:$true] %s203_s26 }
  0x13   : > { %3936 = dma.hbm_to_vmem [thread:$0]  (!%p4333_p10), %s176_s28, 3072, %s178_s6, [#allocation8], %s4242_s11, %s4242_s11, %s4243_s12  }
  0x14   : > { %3939 = dma.hbm_to_vmem [thread:$0]  (!%p4333_p10), %s190_s10, 48, %s192_s14, [#allocation8], %s4245_s15, %s4245_s15, %s4246_s16  }
  0x15   : > { %s4247_s27 = smov [#allocation10]   ;;  %s4351_s30 = sadd.s32 1, %s4239_s21  }
  0x16   : > { %s205_s28 = sshll.u32 %s4247_s27, 4  ;;  %s27_s6 = ssub.s32 %s4239_s21, %s4351_s30  ;;  %s206_s28 = int_to_ptr.vmem [resolvable:$true] %s205_s28 }
  0x17   : > { %3942 = dma.hbm_to_vmem [thread:$0]  (!%p4333_p10), %s204_s26, 3072, %s206_s28, [#allocation11], %s4242_s11, %s4242_s11, %s4243_s12  }
  0x18   : > { %s30_s8 = sadd.s32 1, %s4235_s20  ;;  %p28_p12 = scmp.eq.s32.totalorder %s27_s6, 0 }
  0x19   : > { %p37_p13 = scmp.ne.s32.totalorder %s4235_s20, %s4231_s19  ;;  %p38_p0 = scmp.eq.s32.totalorder %s4239_s21, 0 }
  0x1a   : > { %p3954_p3 = scmp.lt.s32.totalorder %s4239_s21, 2  ;;  %s222_s7 = sand.u32 1, %s4235_s20  }
  0x1b   : > { %s4361_s9 = scalar_select %p28_p12, %s4235_s20, %s30_s8  }
  0x1c   : > { %p39_p5 = por %p38_p0, %p37_p13  ;;  %p4365_p7 = por %p151_p2, %p37_p13 }
  0x1d   : > { %s3851_s11 = sshll.u32 %s4239_s21, 9  ;;  %s3643_s12 = sshll.u32 %s222_s7, 9 }
  0x1e   : > { %s231_s15 = scalar_lea.hbm %s6699_s0, %s3851_s11  ;;  %s226_s17 = scalar_lea.vmem [#allocation4], %s3643_s12 }
  0x1f   : > { %s232_s16 = sshll.u32 %s231_s15, 4  ;;  %s234_s23 = sshll.u32 %s226_s17, 4  ;;  %s233_s16 = int_to_ptr.hbm [resolvable:$true] %s232_s16  ;;  %s235_s23 = int_to_ptr.vmem [resolvable:$true] %s234_s23 }
  0x20   : > { %p4376_p9 = pnand %p3954_p3, %p39_p5  ;;  %s223_s27 = scalar_lea.sflag [#allocation5], %s222_s7 }
  0x21   : > { %s4135_s28 = sshra.s32 %s233_s16, 4  ;;  %s4142_s12 = scalar_lea.hbm %s6699_s0, 1024  ;;  %s4136_s28 = int_to_ptr.hbm [resolvable:$true] %s4135_s28 }
  0x22   : > { %s4137_s6 = scalar_lea.hbm %s4136_s28, 512  ;;  %p4139_p10 = pneg %p4376_p9 }
  0x23   : > { %p4138_p2 = scmp.ne.s32.totalorder %s4136_s28, %s4137_s6  ;;  %p4143_p0 = scmp.lt.s32.totalorder %s4136_s28, %s6699_s0 }
  0x24   : > { %p4144_p3 = scmp.lt.s32.totalorder %s4142_s12, %s4137_s6 }
  0x25   : > { %p4140_p12 = pnand %p4139_p10, %p4138_p2 }
  0x26   : > { %p4145_p5 = por %p4144_p3, %p4143_p0 }
  0x27   : > { %p4141_p13 = pneg %p4140_p12 }
  0x29   : > { %p4146_p11 = pnand %p4145_p5, %p4141_p13 }
  0x2b   : > { %4149 = shalt.err (!%p4146_p11)
}
  0x2c   : > { %s4248_s7 = smov 128   ;;  %s4249_s15 = smov 8  }
  0x2d   : > { %3946 = dma.hbm_to_vmem [thread:$0]  (!%p4376_p9), %s233_s16, 8192, %s235_s23, %s223_s27, %s4248_s7, %s4248_s7, %s4249_s15  }
  0x2e   : > { %246 = sbr.rel (%p4325_p8) target bundleno = 1443 (0x5a3), region = 40 }
  0x33   : > { %s4393_s17 = sand.u32 1, %s4231_s19  }
  0x34   : > { %s3647_s28 = sshll.u32 %s4393_s17, 9  ;;  %s249_s6 = scalar_lea.sflag [#allocation5], %s4393_s17 }
  0x35   : > { %s4399_s8 = scalar_lea.vmem [#allocation4], %s3647_s28 }
  0x36   : > { %4210 = dma.done.wait (%p4312_p4), %s249_s6, 8192  }
  0x37   : > { %4212 = vsyncadd (%p4312_p4), %s249_s6, 4294959104 }
  0x38   : > { %4214 = dma.done.wait (%p44_p1), [#allocation8], 3120  }
  0x39   : > { %4216 = vsyncadd (%p44_p1), [#allocation8], 4294964176 }
  0x3a   : > { %4218 = dma.done.wait (%p44_p1), [#allocation11], 3072  }
  0x3b   : > { %4220 = vsyncadd (%p44_p1), [#allocation11], 4294964224  ;;  %v3859_v0 = vld [vmem:[#allocation7 + $0x38] sm:$0xff]  ;;  %v3858_v1 = vld [vmem:[#allocation7 + $0x30] sm:$0xff]  ;;  %s5978_s13 = scalar_lea.vmem [#allocation12], %s3647_s28  ;;  %s3900_s6 = sshll.u32 %s4303_s22, 9 }
  0x3c   : > { %653 = vmatpush.bf16.msra.mxu0 %v3859_v0  ;;  %3901 = vmatpush.bf16.msra.mxu2 %v3859_v0  ;;  %v3857_v2 = vld [vmem:[#allocation7 + $0x28] sm:$0xff]  ;;  %v3856_v3 = vld [vmem:[#allocation7 + $0x20] sm:$0xff]  ;;  %v3855_v4 = vld [vmem:[#allocation7 + $0x18] sm:$0xff]  ;;  %s3531_s29 = scalar_lea.hbm %s6704_s5, %s3900_s6  ;;  %s3532_s16 = sshll.u32 %s5978_s13, 4  ;;  %s3533_s16 = int_to_ptr.vmem [resolvable:$true] %s3532_s16 }
  0x3d   : > { %v3854_v5 = vld [vmem:[#allocation7 + $0x10] sm:$0xff]  ;;  %v3853_v6 = vld [vmem:[#allocation7 + $0x8] sm:$0xff]  ;;  %v3852_v7 = vld [vmem:[#allocation7] sm:$0xff]  ;;  %s3534_s23 = sshll.u32 %s3531_s29, 4  ;;  %s3520_s22 = scalar_lea.sflag [#allocation6], %s4393_s17  ;;  %s3535_s23 = int_to_ptr.hbm [resolvable:$true] %s3534_s23 }
  0x3e   : > { %v4414_v8 = vld [vmem:[%s4399_s8] sm:$0xff]  ;;  %v4417_v9 = vld [vmem:[%s4399_s8 + $0x8] sm:$0xff]  ;;  %v3875_v12 = vld [vmem:[#allocation7 + $0x78] sm:$0xff]  ;;  %s4179_s26 = sshra.s32 %s3535_s23, 4  ;;  %s4185_s14 = scalar_lea.hbm %s6704_s5, 1024  ;;  %s4180_s26 = int_to_ptr.hbm [resolvable:$true] %s4179_s26 }
  0x3f   : > { %v4420_v10 = vld [vmem:[%s4399_s8 + $0x100] sm:$0xff]  ;;  %v4423_v11 = vld [vmem:[%s4399_s8 + $0x108] sm:$0xff]  ;;  %v553_v13 = vpack.c.bf16 %v4417_v9, %v4414_v8  ;;  %v4430_v15 = vld [vmem:[%s4399_s8 + $0x10] sm:$0xff]  ;;  %s4181_s27 = scalar_lea.hbm %s4180_s26, 512  ;;  %p4186_p11 = scmp.lt.s32.totalorder %s4180_s26, %s6704_s5 }
  0x40   : > { %654 = vmatpush.bf16.msra.mxu0 %v3858_v1  ;;  %3902 = vmatpush.bf16.msra.mxu2 %v3858_v1  ;;  %v569_v14 = vpack.c.bf16 %v4423_v11, %v4420_v10  ;;  %v4433_v16 = vld [vmem:[%s4399_s8 + $0x18] sm:$0xff]  ;;  %v4436_v17 = vld [vmem:[%s4399_s8 + $0x110] sm:$0xff]  ;;  %v4446_v22 = vld [vmem:[%s4399_s8 + $0x20] sm:$0xff]  ;;  %p4182_p1 = scmp.ne.s32.totalorder %s4180_s26, %s4181_s27  ;;  %p4187_p9 = scmp.lt.s32.totalorder %s4185_s14, %s4181_s27 }
  0x41   : > { %v4439_v18 = vld [vmem:[%s4399_s8 + $0x118] sm:$0xff]  ;;  %v554_v19 = vpack.c.bf16 %v4433_v16, %v4430_v15  ;;  %v3874_v21 = vld [vmem:[#allocation7 + $0x70] sm:$0xff]  ;;  %v4449_v23 = vld [vmem:[%s4399_s8 + $0x28] sm:$0xff] }
  0x42   : > { %v570_v20 = vpack.c.bf16 %v4439_v18, %v4436_v17  ;;  %v4452_v24 = vld [vmem:[%s4399_s8 + $0x120] sm:$0xff]  ;;  %v4455_v25 = vld [vmem:[%s4399_s8 + $0x128] sm:$0xff]  ;;  %v555_v26 = vpack.c.bf16 %v4449_v23, %v4446_v22  ;;  %v4462_v28 = vld [vmem:[%s4399_s8 + $0x30] sm:$0xff]  ;;  %p4183_p4 = pnand %p4182_p1, %p4365_p7  ;;  %p4188_p2 = por %p4187_p9, %p4186_p11 }
  0x43   : > { %v571_v27 = vpack.c.bf16 %v4455_v25, %v4452_v24  ;;  %v4465_v29 = vld [vmem:[%s4399_s8 + $0x38] sm:$0xff]  ;;  %v4468_v30 = vld [vmem:[%s4399_s8 + $0x130] sm:$0xff]  ;;  %v3873_v34 = vld [vmem:[#allocation7 + $0x68] sm:$0xff] }
  0x44   : > { %655 = vmatpush.bf16.msra.mxu0 %v3857_v2  ;;  %3903 = vmatpush.bf16.msra.mxu2 %v3857_v2  ;;  %v4471_v31 = vld [vmem:[%s4399_s8 + $0x138] sm:$0xff]  ;;  %v556_v32 = vpack.c.bf16 %v4465_v29, %v4462_v28  ;;  %v4478_v35 = vld [vmem:[%s4399_s8 + $0x40] sm:$0xff]  ;;  %v4481_v36 = vld [vmem:[%s4399_s8 + $0x48] sm:$0xff]  ;;  %p4184_p8 = pneg %p4183_p4 }
  0x45   : > { %v572_v33 = vpack.c.bf16 %v4471_v31, %v4468_v30  ;;  %v4484_v37 = vld [vmem:[%s4399_s8 + $0x140] sm:$0xff]  ;;  %v4487_v38 = vld [vmem:[%s4399_s8 + $0x148] sm:$0xff]  ;;  %v557_v39 = vpack.c.bf16 %v4481_v36, %v4478_v35  ;;  %v4494_v42 = vld [vmem:[%s4399_s8 + $0x50] sm:$0xff] }
  0x46   : > { %v573_v40 = vpack.c.bf16 %v4487_v38, %v4484_v37  ;;  %v3867_v41 = vld [vmem:[#allocation10 + $0x38] sm:$0xff]  ;;  %v4500_v44 = vld [vmem:[%s4399_s8 + $0x150] sm:$0xff]  ;;  %v3864_v51 = vld [vmem:[#allocation10 + $0x20] sm:$0xff]  ;;  %p4189_p10 = pnand %p4188_p2, %p4184_p8 }
  0x47   : > { %1114 = vmatpush.bf16.msra.mxu1 %v3867_v41  ;;  %3909 = vmatpush.bf16.msra.mxu3 %v3867_v41  ;;  %v4497_v43 = vld [vmem:[%s4399_s8 + $0x58] sm:$0xff]  ;;  %v3865_v49 = vld [vmem:[#allocation10 + $0x28] sm:$0xff]  ;;  %v3872_v50 = vld [vmem:[#allocation7 + $0x60] sm:$0xff] }
  0x48   : > { %656 = vmatpush.bf16.msra.mxu0 %v3856_v3  ;;  %3904 = vmatpush.bf16.msra.mxu2 %v3856_v3  ;;  %v4503_v45 = vld [vmem:[%s4399_s8 + $0x158] sm:$0xff]  ;;  %v558_v46 = vpack.c.bf16 %v4497_v43, %v4494_v42  ;;  %v4510_v52 = vld [vmem:[%s4399_s8 + $0x60] sm:$0xff]  ;;  %v4513_v53 = vld [vmem:[%s4399_s8 + $0x68] sm:$0xff] }
  0x49   : > { %v574_v47 = vpack.c.bf16 %v4503_v45, %v4500_v44  ;;  %v3866_v48 = vld [vmem:[#allocation10 + $0x30] sm:$0xff]  ;;  %6891 = vst [vmem:[#allocation17_spill] sm:$0xff] %v4513_v53  ;;  %v4516_v54 = vld [vmem:[%s4399_s8 + $0x160] sm:$0xff]  ;;  %v4519_v55 = vld [vmem:[%s4399_s8 + $0x168] sm:$0xff]  ;;  %v559_v57 = vpack.c.bf16 %v4513_v53, %v4510_v52 }
  0x4a   : > { %v3863_v56 = vld [vmem:[#allocation10 + $0x18] sm:$0xff]  ;;  %v575_v58 = vpack.c.bf16 %v4519_v55, %v4516_v54  ;;  %v3862_v59 = vld [vmem:[#allocation10 + $0x10] sm:$0xff]  ;;  %v3861_v60 = vld [vmem:[#allocation10 + $0x8] sm:$0xff] }
  0x4b   : > { %1115 = vmatpush.bf16.msra.mxu1 %v3866_v48  ;;  %3910 = vmatpush.bf16.msra.mxu3 %v3866_v48  ;;  %v3860_v61 = vld [vmem:[#allocation10] sm:$0xff]  ;;  %v4526_v62 = vld [vmem:[%s4399_s8 + $0x70] sm:$0xff]  ;;  %v4529_v63 = vld [vmem:[%s4399_s8 + $0x78] sm:$0xff] }
  0x4c   : > { %657 = vmatpush.bf16.msra.mxu0 %v3855_v4  ;;  %3905 = vmatpush.bf16.msra.mxu2 %v3855_v4  ;;  %v4532_v0 = vld [vmem:[%s4399_s8 + $0x170] sm:$0xff]  ;;  %v4535_v1 = vld [vmem:[%s4399_s8 + $0x178] sm:$0xff]  ;;  %v560_v2 = vpack.c.bf16 %v4529_v63, %v4526_v62 }
  0x4d   : > { %v576_v3 = vpack.c.bf16 %v4535_v1, %v4532_v0  ;;  %v3871_v4 = vld [vmem:[#allocation7 + $0x58] sm:$0xff]  ;;  %v4569_v41 = vld [vmem:[%s4399_s8 + $0x90] sm:$0xff] }
  0x4e   : > { %v4578_v48 = vld [vmem:[%s4399_s8 + $0x198] sm:$0xff] }
  0x4f   : > { %1116 = vmatpush.bf16.msra.mxu1 %v3865_v49  ;;  %3911 = vmatpush.bf16.msra.mxu3 %v3865_v49 }
  0x50   : > { %658 = vmatpush.bf16.msra.mxu0 %v3854_v5  ;;  %3906 = vmatpush.bf16.msra.mxu2 %v3854_v5  ;;  %v4542_v5 = vld [vmem:[%s4399_s8 + $0x80] sm:$0xff] }
  0x53   : > { %1117 = vmatpush.bf16.msra.mxu1 %v3864_v51  ;;  %3912 = vmatpush.bf16.msra.mxu3 %v3864_v51 }
  0x54   : > { %659 = vmatpush.bf16.msra.mxu0 %v3853_v6  ;;  %3907 = vmatpush.bf16.msra.mxu2 %v3853_v6  ;;  %v4545_v6 = vld [vmem:[%s4399_s8 + $0x88] sm:$0xff] }
  0x57   : > { %1118 = vmatpush.bf16.msra.mxu1 %v3863_v56  ;;  %3913 = vmatpush.bf16.msra.mxu3 %v3863_v56 }
  0x58   : > { %660 = vmatpush.bf16.msra.mxu0 %v3852_v7  ;;  %3908 = vmatpush.bf16.msra.mxu2 %v3852_v7  ;;  %v4548_v7 = vld [vmem:[%s4399_s8 + $0x180] sm:$0xff] }
  0x5b   : > { %661 = vmatmul.bf16.vlgmr.msra.gmra.mxu0 %v553_v13  ;;  %741 = vmatmul.bf16.vlgmr.msra.gmra.mxu2 %v569_v14  ;;  %v561_v13 = vpack.c.bf16 %v4545_v6, %v4542_v5 }
  0x5c   : > { %1577 = vmatpush.bf16.msrb.mxu2 %v3875_v12  ;;  %1119 = vmatpush.bf16.msra.mxu1 %v3862_v59  ;;  %v4551_v12 = vld [vmem:[%s4399_s8 + $0x188] sm:$0xff] }
  0x5d   : > { %3914 = vmatpush.bf16.msra.mxu3 %v3862_v59  ;;  %v577_v14 = vpack.c.bf16 %v4551_v12, %v4548_v7 }
  0x60   : > { %1578 = vmatpush.bf16.msrb.mxu2 %v3874_v21  ;;  %1120 = vmatpush.bf16.msra.mxu1 %v3861_v60 }
  0x61   : > { %3915 = vmatpush.bf16.msra.mxu3 %v3861_v60 }
  0x64   : > { %1579 = vmatpush.bf16.msrb.mxu2 %v3873_v34  ;;  %1121 = vmatpush.bf16.msra.mxu1 %v3860_v61 }
  0x65   : > { %3916 = vmatpush.bf16.msra.mxu3 %v3860_v61 }
  0x68   : > { %1580 = vmatpush.bf16.msrb.mxu2 %v3872_v50 }
  0x6b   : > { %666 = vmatmul.bf16.gmra.mxu0 %v554_v19  ;;  %746 = vmatmul.bf16.gmra.mxu2 %v570_v20  ;;  %v4557_v20 = vld [vmem:[#allocation9] ss:$0 sm:$0xff] }
  0x6c   : > { %1581 = vmatpush.bf16.msrb.mxu2 %v3871_v4 }
  0x7b   : > { %671 = vmatmul.bf16.gmra.mxu0 %v555_v26  ;;  %751 = vmatmul.bf16.gmra.mxu2 %v571_v27 }
  0x8b   : > { %676 = vmatmul.bf16.gmra.mxu0 %v556_v32  ;;  %756 = vmatmul.bf16.gmra.mxu2 %v572_v33  ;;  %v3883_v33 = vld [vmem:[#allocation10 + $0x78] sm:$0xff] }
  0x8c   : > { %2040 = vmatpush.bf16.msrb.mxu3 %v3883_v33 }
  0x9b   : > { %681 = vmatmul.bf16.gmra.mxu0 %v557_v39  ;;  %761 = vmatmul.bf16.gmra.mxu2 %v573_v40 }
  0xab   : > { %686 = vmatmul.bf16.gmra.mxu0 %v558_v46  ;;  %766 = vmatmul.bf16.gmra.mxu2 %v574_v47  ;;  %v4572_v46 = vld [vmem:[%s4399_s8 + $0x98] sm:$0xff]  ;;  %v4575_v47 = vld [vmem:[%s4399_s8 + $0x190] sm:$0xff] }
  0xac   : > { %v562_v56 = vpack.c.bf16 %v4572_v46, %v4569_v41 }
  0xbb   : > { %691 = vmatmul.bf16.gmra.mxu0 %v559_v57  ;;  %771 = vmatmul.bf16.gmra.mxu2 %v575_v58  ;;  %v578_v58 = vpack.c.bf16 %v4578_v48, %v4575_v47 }
  0xcb   : > { %696 = vmatmul.bf16.gmra.mxu0 %v560_v2  ;;  %776 = vmatmul.bf16.gmra.mxu2 %v576_v3 }
  0xd8   : > { %v662_v19 = vpop.f32.mrf.mxu0 }
  0xd9   : > { %v663_v26 = vadd.f32 %v4557_v20, %v662_v19 }
  0xdb   : > { %701 = vmatmul.bf16.gmra.mxu0 %v561_v13  ;;  %781 = vmatmul.bf16.gmra.mxu2 %v577_v14  ;;  %v4562_v34 = vadd.f32 %v663_v26, %v4414_v8  ;;  %v3870_v13 = vld [vmem:[#allocation7 + $0x50] sm:$0xff]  ;;  %v4608_v26 = vld [vmem:[%s4399_s8 + $0xa8] sm:$0xff] }
  0xdc   : > { %1582 = vmatpush.bf16.msrb.mxu2 %v3870_v13 }
  0xdd   : > { %6892 = vst [vmem:[#allocation18_spill] sm:$0xff] %v4562_v34 }
  0xde   : > { %v742_v21 = vpop.f32.mrf.mxu2 }
  0xdf   : > { %v743_v39 = vadd.f32 %v4557_v20, %v742_v21  ;;  %v4605_v21 = vld [vmem:[%s4399_s8 + $0xa0] sm:$0xff] }
  0xe0   : > { %v664_v27 = vpop.f32.mrf.mxu0 }
  0xe1   : > { %v665_v32 = vadd.f32 %v4557_v20, %v664_v27  ;;  %v4583_v51 = vadd.f32 %v743_v39, %v4420_v10  ;;  %v4611_v27 = vld [vmem:[%s4399_s8 + $0x1a0] sm:$0xff] }
  0xe3   : > { %v4566_v40 = vadd.f32 %v665_v32, %v4417_v9  ;;  %6894 = vst [vmem:[#allocation20_spill] sm:$0xff] %v4583_v51  ;;  %v4614_v32 = vld [vmem:[%s4399_s8 + $0x1a8] sm:$0xff] }
  0xe5   : > { %6893 = vst [vmem:[#allocation19_spill] sm:$0xff] %v4566_v40  ;;  %v1014_v49 = vpack.c.bf16 %v4566_v40, %v4562_v34 }
  0xe6   : > { %v744_v50 = vpop.f32.mrf.mxu2 }
  0xe7   : > { %1122 = vmatmul.bf16.vlgmr.msra.gmra.mxu1 %v1014_v49  ;;  %v745_v57 = vadd.f32 %v4557_v20, %v744_v50  ;;  %v563_v50 = vpack.c.bf16 %v4608_v26, %v4605_v21 }
  0xe8   : > { %v667_v59 = vpop.f32.mrf.mxu0 }
  0xe9   : > { %v4591_v60 = vadd.f32 %v745_v57, %v4423_v11  ;;  %v668_v2 = vadd.f32 %v4557_v20, %v667_v59  ;;  %v579_v57 = vpack.c.bf16 %v4614_v32, %v4611_v27 }
  0xeb   : > { %6895 = vst [vmem:[#allocation21_spill] sm:$0xff] %v4591_v60  ;;  %706 = vmatmul.bf16.gmra.mxu0 %v562_v56  ;;  %786 = vmatmul.bf16.gmra.mxu2 %v578_v58  ;;  %v1030_v10 = vpack.c.bf16 %v4591_v60, %v4583_v51  ;;  %v4598_v14 = vadd.f32 %v668_v2, %v4430_v15 }
  0xed   : > { %1202 = vmatmul.bf16.vlgmr.msra.gmra.mxu3 %v1030_v10  ;;  %6896 = vst [vmem:[#allocation22_spill] sm:$0xff] %v4598_v14 }
  0xee   : > { %v747_v61 = vpop.f32.mrf.mxu2 }
  0xef   : > { %v748_v11 = vadd.f32 %v4557_v20, %v747_v61 }
  0xf0   : > { %v669_v3 = vpop.f32.mrf.mxu0 }
  0xf1   : > { %v670_v4 = vadd.f32 %v4557_v20, %v669_v3  ;;  %v4619_v49 = vadd.f32 %v748_v11, %v4436_v17 }
  0xf3   : > { %v4602_v19 = vadd.f32 %v670_v4, %v4433_v16  ;;  %6898 = vst [vmem:[#allocation24_spill] sm:$0xff] %v4619_v49  ;;  %v3882_v4 = vld [vmem:[#allocation10 + $0x70] sm:$0xff] }
  0xf4   : > { %2041 = vmatpush.bf16.msrb.mxu3 %v3882_v4 }
  0xf5   : > { %6897 = vst [vmem:[#allocation23_spill] sm:$0xff] %v4602_v19  ;;  %v1015_v33 = vpack.c.bf16 %v4602_v19, %v4598_v14 }
  0xf6   : > { %v749_v39 = vpop.f32.mrf.mxu2 }
  0xf7   : > { %1127 = vmatmul.bf16.gmra.mxu1 %v1015_v33  ;;  %v750_v56 = vadd.f32 %v4557_v20, %v749_v39  ;;  %v4641_v33 = vld [vmem:[%s4399_s8 + $0xb0] sm:$0xff]  ;;  %v4644_v39 = vld [vmem:[%s4399_s8 + $0xb8] sm:$0xff] }
  0xf8   : > { %v672_v58 = vpop.f32.mrf.mxu0 }
  0xf9   : > { %v4627_v59 = vadd.f32 %v750_v56, %v4439_v18  ;;  %v673_v61 = vadd.f32 %v4557_v20, %v672_v58  ;;  %v4650_v56 = vld [vmem:[%s4399_s8 + $0x1b8] sm:$0xff] }
  0xfb   : > { %6899 = vst [vmem:[#allocation25_spill] sm:$0xff] %v4627_v59  ;;  %711 = vmatmul.bf16.gmra.mxu0 %v563_v50  ;;  %791 = vmatmul.bf16.gmra.mxu2 %v579_v57  ;;  %v1031_v17 = vpack.c.bf16 %v4627_v59, %v4619_v49  ;;  %v4634_v13 = vadd.f32 %v673_v61, %v4446_v22  ;;  %v4647_v50 = vld [vmem:[%s4399_s8 + $0x1b0] sm:$0xff]  ;;  %v3869_v49 = vld [vmem:[#allocation7 + $0x48] sm:$0xff] }
  0xfc   : > { %1583 = vmatpush.bf16.msrb.mxu2 %v3869_v49 }
  0xfd   : > { %1207 = vmatmul.bf16.gmra.mxu3 %v1031_v17  ;;  %6900 = vst [vmem:[#allocation26_spill] sm:$0xff] %v4634_v13 }
  0xfe   : > { %v752_v10 = vpop.f32.mrf.mxu2 }
  0xff   : > { %v753_v18 = vadd.f32 %v4557_v20, %v752_v10  ;;  %v564_v10 = vpack.c.bf16 %v4644_v39, %v4641_v33 }
 0x100   : > { %v674_v2 = vpop.f32.mrf.mxu0 }
 0x101   : > { %v675_v3 = vadd.f32 %v4557_v20, %v674_v2  ;;  %v4655_v17 = vadd.f32 %v753_v18, %v4452_v24  ;;  %v580_v2 = vpack.c.bf16 %v4650_v56, %v4647_v50 }
 0x103   : > { %v4638_v11 = vadd.f32 %v675_v3, %v4449_v23  ;;  %6902 = vst [vmem:[#allocation28_spill] sm:$0xff] %v4655_v17 }
 0x105   : > { %6901 = vst [vmem:[#allocation27_spill] sm:$0xff] %v4638_v11  ;;  %v1016_v57 = vpack.c.bf16 %v4638_v11, %v4634_v13 }
 0x106   : > { %v754_v58 = vpop.f32.mrf.mxu2 }
 0x107   : > { %1132 = vmatmul.bf16.gmra.mxu1 %v1016_v57  ;;  %v755_v61 = vadd.f32 %v4557_v20, %v754_v58 }
 0x108   : > { %v677_v3 = vpop.f32.mrf.mxu0 }
 0x109   : > { %v4663_v4 = vadd.f32 %v755_v61, %v4455_v25  ;;  %v678_v57 = vadd.f32 %v4557_v20, %v677_v3  ;;  %v4677_v61 = vld [vmem:[%s4399_s8 + $0xc0] sm:$0xff]  ;;  %v4686_v3 = vld [vmem:[%s4399_s8 + $0x1c8] sm:$0xff] }
 0x10b   : > { %6903 = vst [vmem:[#allocation29_spill] sm:$0xff] %v4663_v4  ;;  %716 = vmatmul.bf16.gmra.mxu0 %v564_v10  ;;  %796 = vmatmul.bf16.gmra.mxu2 %v580_v2  ;;  %v1032_v24 = vpack.c.bf16 %v4663_v4, %v4655_v17  ;;  %v4670_v60 = vadd.f32 %v678_v57, %v4462_v28  ;;  %v4680_v2 = vld [vmem:[%s4399_s8 + $0xc8] sm:$0xff] }
 0x10d   : > { %1212 = vmatmul.bf16.gmra.mxu3 %v1032_v24  ;;  %6904 = vst [vmem:[#allocation30_spill] sm:$0xff] %v4670_v60  ;;  %v4683_v24 = vld [vmem:[%s4399_s8 + $0x1c0] sm:$0xff] }
 0x10e   : > { %v757_v18 = vpop.f32.mrf.mxu2  ;;  %v581_v49 = vpack.c.bf16 %v4686_v3, %v4683_v24 }
 0x10f   : > { %v758_v25 = vadd.f32 %v4557_v20, %v757_v18 }
 0x110   : > { %v679_v58 = vpop.f32.mrf.mxu0 }
 0x111   : > { %v680_v59 = vadd.f32 %v4557_v20, %v679_v58  ;;  %v4691_v57 = vadd.f32 %v758_v25, %v4468_v30 }
 0x113   : > { %v4674_v10 = vadd.f32 %v680_v59, %v4465_v29  ;;  %6906 = vst [vmem:[#allocation32_spill] sm:$0xff] %v4691_v57  ;;  %v565_v59 = vpack.c.bf16 %v4680_v2, %v4677_v61 }
 0x115   : > { %6905 = vst [vmem:[#allocation31_spill] sm:$0xff] %v4674_v10  ;;  %v1017_v58 = vpack.c.bf16 %v4674_v10, %v4670_v60  ;;  %v3881_v60 = vld [vmem:[#allocation10 + $0x68] sm:$0xff] }
 0x116   : > { %v759_v4 = vpop.f32.mrf.mxu2  ;;  %2042 = vmatpush.bf16.msrb.mxu3 %v3881_v60 }
 0x117   : > { %1137 = vmatmul.bf16.gmra.mxu1 %v1017_v58  ;;  %v760_v18 = vadd.f32 %v4557_v20, %v759_v4 }
 0x118   : > { %v682_v17 = vpop.f32.mrf.mxu0 }
 0x119   : > { %v4699_v51 = vadd.f32 %v760_v18, %v4471_v31  ;;  %v683_v4 = vadd.f32 %v4557_v20, %v682_v17  ;;  %v4713_v18 = vld [vmem:[%s4399_s8 + $0xd0] sm:$0xff]  ;;  %v4722_v17 = vld [vmem:[%s4399_s8 + $0x1d8] sm:$0xff] }
 0x11b   : > { %6907 = vst [vmem:[#allocation33_spill] sm:$0xff] %v4699_v51  ;;  %721 = vmatmul.bf16.gmra.mxu0 %v565_v59  ;;  %801 = vmatmul.bf16.gmra.mxu2 %v581_v49  ;;  %v1033_v30 = vpack.c.bf16 %v4699_v51, %v4691_v57  ;;  %v4706_v11 = vadd.f32 %v683_v4, %v4478_v35  ;;  %v4716_v49 = vld [vmem:[%s4399_s8 + $0xd8] sm:$0xff] }
 0x11d   : > { %1217 = vmatmul.bf16.gmra.mxu3 %v1033_v30  ;;  %6908 = vst [vmem:[#allocation34_spill] sm:$0xff] %v4706_v11  ;;  %v4719_v30 = vld [vmem:[%s4399_s8 + $0x1d0] sm:$0xff] }
 0x11e   : > { %v762_v25 = vpop.f32.mrf.mxu2  ;;  %v582_v60 = vpack.c.bf16 %v4722_v17, %v4719_v30 }
 0x11f   : > { %v763_v31 = vadd.f32 %v4557_v20, %v762_v25 }
 0x120   : > { %v684_v58 = vpop.f32.mrf.mxu0 }
 0x121   : > { %v685_v10 = vadd.f32 %v4557_v20, %v684_v58  ;;  %v4727_v4 = vadd.f32 %v763_v31, %v4484_v37 }
 0x123   : > { %v4710_v59 = vadd.f32 %v685_v10, %v4481_v36  ;;  %6910 = vst [vmem:[#allocation36_spill] sm:$0xff] %v4727_v4  ;;  %v566_v10 = vpack.c.bf16 %v4716_v49, %v4713_v18 }
 0x125   : > { %6909 = vst [vmem:[#allocation35_spill] sm:$0xff] %v4710_v59  ;;  %v1018_v58 = vpack.c.bf16 %v4710_v59, %v4706_v11  ;;  %v3868_v11 = vld [vmem:[#allocation7 + $0x40] sm:$0xff] }
 0x126   : > { %v764_v51 = vpop.f32.mrf.mxu2  ;;  %1584 = vmatpush.bf16.msrb.mxu2 %v3868_v11 }
 0x127   : > { %1142 = vmatmul.bf16.gmra.mxu1 %v1018_v58  ;;  %v765_v25 = vadd.f32 %v4557_v20, %v764_v51 }
 0x128   : > { %v687_v57 = vpop.f32.mrf.mxu0 }
 0x129   : > { %v4735_v13 = vadd.f32 %v765_v25, %v4487_v38  ;;  %v688_v51 = vadd.f32 %v4557_v20, %v687_v57  ;;  %v4749_v25 = vld [vmem:[%s4399_s8 + $0xe0] sm:$0xff]  ;;  %v4758_v57 = vld [vmem:[%s4399_s8 + $0x1e8] sm:$0xff] }
 0x12b   : > { %6911 = vst [vmem:[#allocation37_spill] sm:$0xff] %v4735_v13  ;;  %726 = vmatmul.bf16.gmra.mxu0 %v566_v10  ;;  %806 = vmatmul.bf16.gmra.mxu2 %v582_v60  ;;  %v1034_v37 = vpack.c.bf16 %v4735_v13, %v4727_v4  ;;  %v4742_v19 = vadd.f32 %v688_v51, %v4494_v42  ;;  %v4752_v60 = vld [vmem:[%s4399_s8 + $0xe8] sm:$0xff] }
 0x12d   : > { %1222 = vmatmul.bf16.gmra.mxu3 %v1034_v37  ;;  %6912 = vst [vmem:[#allocation38_spill] sm:$0xff] %v4742_v19  ;;  %v4755_v37 = vld [vmem:[%s4399_s8 + $0x1e0] sm:$0xff] }
 0x12e   : > { %v767_v31 = vpop.f32.mrf.mxu2 }
 0x12f   : > { %v768_v38 = vadd.f32 %v4557_v20, %v767_v31  ;;  %v583_v31 = vpack.c.bf16 %v4758_v57, %v4755_v37 }
 0x130   : > { %v689_v58 = vpop.f32.mrf.mxu0 }
 0x131   : > { %v690_v59 = vadd.f32 %v4557_v20, %v689_v58  ;;  %v4763_v51 = vadd.f32 %v768_v38, %v4500_v44 }
 0x133   : > { %v4746_v10 = vadd.f32 %v690_v59, %v4497_v43  ;;  %6914 = vst [vmem:[#allocation40_spill] sm:$0xff] %v4763_v51  ;;  %v567_v59 = vpack.c.bf16 %v4752_v60, %v4749_v25 }
 0x135   : > { %6913 = vst [vmem:[#allocation39_spill] sm:$0xff] %v4746_v10  ;;  %v1019_v58 = vpack.c.bf16 %v4746_v10, %v4742_v19 }
 0x136   : > { %v769_v13 = vpop.f32.mrf.mxu2 }
 0x137   : > { %1147 = vmatmul.bf16.gmra.mxu1 %v1019_v58  ;;  %v770_v11 = vadd.f32 %v4557_v20, %v769_v13 }
 0x138   : > { %v692_v4 = vpop.f32.mrf.mxu0 }
 0x139   : > { %v4771_v10 = vadd.f32 %v770_v11, %v4503_v45  ;;  %v693_v58 = vadd.f32 %v4557_v20, %v692_v4  ;;  %v4788_v11 = vld [vmem:[%s4399_s8 + $0xf8] sm:$0xff] }
 0x13b   : > { %6915 = vst [vmem:[#allocation41_spill] sm:$0xff] %v4771_v10  ;;  %731 = vmatmul.bf16.gmra.mxu0 %v567_v59  ;;  %811 = vmatmul.bf16.gmra.mxu2 %v583_v31  ;;  %v1035_v44 = vpack.c.bf16 %v4771_v10, %v4763_v51  ;;  %v4778_v14 = vadd.f32 %v693_v58, %v4510_v52  ;;  %v4785_v59 = vld [vmem:[%s4399_s8 + $0xf0] sm:$0xff]  ;;  %v3880_v51 = vld [vmem:[#allocation10 + $0x60] sm:$0xff] }
 0x13c   : > { %v4791_v31 = vld [vmem:[%s4399_s8 + $0x1f0] sm:$0xff]  ;;  %2043 = vmatpush.bf16.msrb.mxu3 %v3880_v51 }
 0x13d   : > { %1227 = vmatmul.bf16.gmra.mxu3 %v1035_v44  ;;  %6916 = vst [vmem:[#allocation42_spill] sm:$0xff] %v4778_v14  ;;  %v4794_v44 = vld [vmem:[%s4399_s8 + $0x1f8] sm:$0xff] }
 0x13e   : > { %v772_v38 = vpop.f32.mrf.mxu2  ;;  %6918 = vst [vmem:[#allocation44_spill] sm:$0xff] %v4794_v44  ;;  %v584_v10 = vpack.c.bf16 %v4794_v44, %v4791_v31 }
 0x13f   : > { %v773_v40 = vadd.f32 %v4557_v20, %v772_v38 }
 0x140   : > { %v694_v13 = vpop.f32.mrf.mxu0 }
 0x141   : > { %v695_v19 = vadd.f32 %v4557_v20, %v694_v13  ;;  %v4799_v58 = vadd.f32 %v773_v40, %v4516_v54 }
 0x143   : > { %v4782_v45 = vadd.f32 %v695_v19, %v4513_v53  ;;  %6919 = vst [vmem:[#allocation45_spill] sm:$0xff] %v4799_v58  ;;  %v568_v19 = vpack.c.bf16 %v4788_v11, %v4785_v59 }
 0x145   : > { %6917 = vst [vmem:[#allocation43_spill] sm:$0xff] %v4782_v45  ;;  %v1020_v4 = vpack.c.bf16 %v4782_v45, %v4778_v14 }
 0x146   : > { %v774_v13 = vpop.f32.mrf.mxu2 }
 0x147   : > { %1152 = vmatmul.bf16.gmra.mxu1 %v1020_v4  ;;  %v775_v38 = vadd.f32 %v4557_v20, %v774_v13 }
 0x148   : > { %v697_v34 = vpop.f32.mrf.mxu0 }
 0x149   : > { %v4807_v53 = vadd.f32 %v775_v38, %v4519_v55  ;;  %v698_v4 = vadd.f32 %v4557_v20, %v697_v34 }
 0x14b   : > { %6920 = vst [vmem:[#allocation46_spill] sm:$0xff] %v4807_v53  ;;  %736 = vmatmul.bf16.gmra.mxu0 %v568_v19  ;;  %816 = vmatmul.bf16.gmra.mxu2 %v584_v10  ;;  %v1036_v54 = vpack.c.bf16 %v4807_v53, %v4799_v58  ;;  %v4814_v14 = vadd.f32 %v698_v4, %v4526_v62 }
 0x14d   : > { %1232 = vmatmul.bf16.gmra.mxu3 %v1036_v54 }
 0x14e   : > { %v777_v40 = vpop.f32.mrf.mxu2 }
 0x14f   : > { %v778_v44 = vadd.f32 %v4557_v20, %v777_v40 }
 0x150   : > { %v699_v45 = vpop.f32.mrf.mxu0 }
 0x151   : > { %v700_v13 = vadd.f32 %v4557_v20, %v699_v45  ;;  %v4823_v19 = vadd.f32 %v778_v44, %v4532_v0 }
 0x153   : > { %v4818_v55 = vadd.f32 %v700_v13, %v4529_v63  ;;  %6921 = vst [vmem:[#allocation47_spill] sm:$0xff] %v4823_v19 }
 0x155   : > { %v1021_v10 = vpack.c.bf16 %v4818_v55, %v4814_v14 }
 0x156   : > { %v779_v51 = vpop.f32.mrf.mxu2 }
 0x157   : > { %1157 = vmatmul.bf16.gmra.mxu1 %v1021_v10  ;;  %v780_v34 = vadd.f32 %v4557_v20, %v779_v51 }
 0x158   : > { %v702_v38 = vpop.f32.mrf.mxu0 }
 0x159   : > { %v4827_v45 = vadd.f32 %v780_v34, %v4535_v1  ;;  %v703_v4 = vadd.f32 %v4557_v20, %v702_v38  ;;  %v4845_v38 = vld [vmem:[%s6703_s4] ss:$0 sm:$0xff] }
 0x15b   : > { %6922 = vst [vmem:[#allocation48_spill] sm:$0xff] %v4827_v45  ;;  %v1037_v54 = vpack.c.bf16 %v4827_v45, %v4823_v19  ;;  %v4834_v0 = vadd.f32 %v703_v4, %v4542_v5 }
 0x15d   : > { %1237 = vmatmul.bf16.gmra.mxu3 %v1037_v54 }
 0x15e   : > { %v782_v40 = vpop.f32.mrf.mxu2 }
 0x15f   : > { %v783_v44 = vadd.f32 %v4557_v20, %v782_v40  ;;  %v3879_v40 = vld [vmem:[#allocation10 + $0x58] sm:$0xff] }
 0x160   : > { %v704_v13 = vpop.f32.mrf.mxu0  ;;  %2044 = vmatpush.bf16.msrb.mxu3 %v3879_v40 }
 0x161   : > { %v705_v53 = vadd.f32 %v4557_v20, %v704_v13  ;;  %v4848_v54 = vadd.f32 %v783_v44, %v4548_v7 }
 0x163   : > { %v4838_v10 = vadd.f32 %v705_v53, %v4545_v6  ;;  %6924 = vst [vmem:[#allocation50_spill] sm:$0xff] %v4848_v54 }
 0x164   : > { %v1123_v1 = vpop.f32.mrf.mxu1 }
 0x165   : > { %6923 = vst [vmem:[#allocation49_spill] sm:$0xff] %v4838_v10  ;;  %v1022_v51 = vpack.c.bf16 %v4838_v10, %v4834_v0  ;;  %v1124_v45 = vadd.f32 %v4845_v38, %v1123_v1 }
 0x166   : > { %v784_v34 = vpop.f32.mrf.mxu2 }
 0x167   : > { %1162 = vmatmul.bf16.gmra.mxu1 %v1022_v51  ;;  %v785_v4 = vadd.f32 %v4557_v20, %v784_v34  ;;  %v4859_v44 = vadd.f32 %v1124_v45, %v4414_v8 }
 0x168   : > { %v707_v13 = vpop.f32.mrf.mxu0 }
 0x169   : > { %v4852_v53 = vadd.f32 %v785_v4, %v4551_v12  ;;  %6926 = vst [vmem:[#allocation52_spill] sm:$0xff] %v4859_v44  ;;  %v708_v51 = vadd.f32 %v4557_v20, %v707_v13 }
 0x16b   : > { %6925 = vst [vmem:[#allocation51_spill] sm:$0xff] %v4852_v53  ;;  %v1038_v19 = vpack.c.bf16 %v4852_v53, %v4848_v54  ;;  %v3891_v53 = vld [vmem:[#allocation7 + $0xb8] sm:$0xff] }
 0x16c   : > { %v1125_v58 = vpop.f32.mrf.mxu1  ;;  %2503 = vmatpush.bf16.msrb.mxu0 %v3891_v53 }
 0x16d   : > { %v1126_v10 = vadd.f32 %v4845_v38, %v1125_v58  ;;  %1242 = vmatmul.bf16.gmra.mxu3 %v1038_v19  ;;  %v4871_v58 = vadd.f32 %v708_v51, %v4569_v41 }
 0x16e   : > { %v787_v7 = vpop.f32.mrf.mxu2 }
 0x16f   : > { %v4863_v34 = vadd.f32 %v1126_v10, %v4417_v9  ;;  %v788_v8 = vadd.f32 %v4557_v20, %v787_v7 }
 0x170   : > { %v709_v12 = vpop.f32.mrf.mxu0  ;;  %v4865_v4 = vpop.f32.mrf.mxu3 }
 0x171   : > { %6927 = vst [vmem:[#allocation53_spill] sm:$0xff] %v4863_v34  ;;  %v1475_v1 = vpack.c.bf16 %v4863_v34, %v4859_v44  ;;  %v710_v40 = vadd.f32 %v4557_v20, %v709_v12  ;;  %v4880_v13 = vadd.f32 %v788_v8, %v4575_v47 }
 0x173   : > { %1585 = vmatmul.bf16.vlgmr.msrb.gmra.mxu2 %v1475_v1  ;;  %v4875_v19 = vadd.f32 %v710_v40, %v4572_v46  ;;  %6928 = vst [vmem:[#allocation54_spill] sm:$0xff] %v4880_v13 }
 0x174   : > { %v1128_v45 = vpop.f32.mrf.mxu1 }
 0x175   : > { %v1023_v9 = vpack.c.bf16 %v4875_v19, %v4871_v58  ;;  %v1129_v1 = vadd.f32 %v4845_v38, %v1128_v45 }
 0x176   : > { %v789_v10 = vpop.f32.mrf.mxu2 }
 0x177   : > { %1167 = vmatmul.bf16.gmra.mxu1 %v1023_v9  ;;  %v790_v12 = vadd.f32 %v4557_v20, %v789_v10  ;;  %v4893_v9 = vadd.f32 %v1129_v1, %v4430_v15 }
 0x178   : > { %v712_v51 = vpop.f32.mrf.mxu0  ;;  %v4883_v54 = vpop.f32.mrf.mxu3 }
 0x179   : > { %v4886_v7 = vadd.f32 %v790_v12, %v4578_v48  ;;  %6930 = vst [vmem:[#allocation56_spill] sm:$0xff] %v4893_v9  ;;  %v713_v10 = vadd.f32 %v4557_v20, %v712_v51 }
 0x17b   : > { %6929 = vst [vmem:[#allocation55_spill] sm:$0xff] %v4886_v7  ;;  %v1039_v40 = vpack.c.bf16 %v4886_v7, %v4880_v13  ;;  %v3878_v7 = vld [vmem:[#allocation10 + $0x50] sm:$0xff] }
 0x17c   : > { %v1130_v34 = vpop.f32.mrf.mxu1  ;;  %2045 = vmatpush.bf16.msrb.mxu3 %v3878_v7 }
 0x17d   : > { %v1131_v47 = vadd.f32 %v4845_v38, %v1130_v34  ;;  %1247 = vmatmul.bf16.gmra.mxu3 %v1039_v40  ;;  %v4905_v34 = vadd.f32 %v713_v10, %v4605_v21 }
 0x17e   : > { %v792_v8 = vpop.f32.mrf.mxu2 }
 0x17f   : > { %v4897_v44 = vadd.f32 %v1131_v47, %v4433_v16  ;;  %v793_v15 = vadd.f32 %v4557_v20, %v792_v8 }
 0x180   : > { %v714_v48 = vpop.f32.mrf.mxu0  ;;  %v4899_v53 = vpop.f32.mrf.mxu3 }
 0x181   : > { %6931 = vst [vmem:[#allocation57_spill] sm:$0xff] %v4897_v44  ;;  %v715_v45 = vadd.f32 %v4557_v20, %v714_v48  ;;  %v1476_v12 = vpack.c.bf16 %v4897_v44, %v4893_v9  ;;  %v4914_v47 = vadd.f32 %v793_v15, %v4611_v27 }
 0x183   : > { %1590 = vmatmul.bf16.gmra.mxu2 %v1476_v12  ;;  %v4909_v1 = vadd.f32 %v715_v45, %v4608_v26  ;;  %6932 = vst [vmem:[#allocation58_spill] sm:$0xff] %v4914_v47 }
 0x184   : > { %v1133_v51 = vpop.f32.mrf.mxu1 }
 0x185   : > { %v1024_v16 = vpack.c.bf16 %v4909_v1, %v4905_v34  ;;  %v1134_v45 = vadd.f32 %v4845_v38, %v1133_v51 }
 0x186   : > { %v794_v40 = vpop.f32.mrf.mxu2 }
 0x187   : > { %1172 = vmatmul.bf16.gmra.mxu1 %v1024_v16  ;;  %v795_v48 = vadd.f32 %v4557_v20, %v794_v40  ;;  %v4927_v16 = vadd.f32 %v1134_v45, %v4446_v22 }
 0x188   : > { %v717_v10 = vpop.f32.mrf.mxu0  ;;  %v4917_v13 = vpop.f32.mrf.mxu3 }
 0x189   : > { %v4920_v8 = vadd.f32 %v795_v48, %v4614_v32  ;;  %6934 = vst [vmem:[#allocation60_spill] sm:$0xff] %v4927_v16  ;;  %v718_v40 = vadd.f32 %v4557_v20, %v717_v10 }
 0x18b   : > { %6933 = vst [vmem:[#allocation59_spill] sm:$0xff] %v4920_v8  ;;  %v1040_v12 = vpack.c.bf16 %v4920_v8, %v4914_v47  ;;  %v3890_v8 = vld [vmem:[#allocation7 + $0xb0] sm:$0xff] }
 0x18c   : > { %v1135_v44 = vpop.f32.mrf.mxu1  ;;  %2504 = vmatpush.bf16.msrb.mxu0 %v3890_v8 }
 0x18d   : > { %v1136_v27 = vadd.f32 %v4845_v38, %v1135_v44  ;;  %1252 = vmatmul.bf16.gmra.mxu3 %v1040_v12  ;;  %v4939_v44 = vadd.f32 %v718_v40, %v4641_v33 }
 0x18e   : > { %v797_v15 = vpop.f32.mrf.mxu2 }
 0x18f   : > { %v4931_v9 = vadd.f32 %v1136_v27, %v4449_v23  ;;  %v798_v22 = vadd.f32 %v4557_v20, %v797_v15 }
 0x190   : > { %v719_v32 = vpop.f32.mrf.mxu0  ;;  %v4933_v7 = vpop.f32.mrf.mxu3 }
 0x191   : > { %6935 = vst [vmem:[#allocation61_spill] sm:$0xff] %v4931_v9  ;;  %v720_v51 = vadd.f32 %v4557_v20, %v719_v32  ;;  %v1477_v48 = vpack.c.bf16 %v4931_v9, %v4927_v16  ;;  %v4948_v27 = vadd.f32 %v798_v22, %v4647_v50 }
 0x193   : > { %1595 = vmatmul.bf16.gmra.mxu2 %v1477_v48  ;;  %v4943_v45 = vadd.f32 %v720_v51, %v4644_v39  ;;  %6936 = vst [vmem:[#allocation62_spill] sm:$0xff] %v4948_v27 }
 0x194   : > { %v1138_v10 = vpop.f32.mrf.mxu1 }
 0x195   : > { %v1025_v23 = vpack.c.bf16 %v4943_v45, %v4939_v44  ;;  %v1139_v51 = vadd.f32 %v4845_v38, %v1138_v10 }
 0x196   : > { %v799_v12 = vpop.f32.mrf.mxu2 }
 0x197   : > { %1177 = vmatmul.bf16.gmra.mxu1 %v1025_v23  ;;  %v800_v32 = vadd.f32 %v4557_v20, %v799_v12  ;;  %v4961_v23 = vadd.f32 %v1139_v51, %v4462_v28 }
 0x198   : > { %v722_v40 = vpop.f32.mrf.mxu0  ;;  %v4951_v47 = vpop.f32.mrf.mxu3 }
 0x199   : > { %v4954_v15 = vadd.f32 %v800_v32, %v4650_v56  ;;  %6938 = vst [vmem:[#allocation64_spill] sm:$0xff] %v4961_v23  ;;  %v723_v12 = vadd.f32 %v4557_v20, %v722_v40 }
 0x19b   : > { %6937 = vst [vmem:[#allocation63_spill] sm:$0xff] %v4954_v15  ;;  %v1041_v48 = vpack.c.bf16 %v4954_v15, %v4948_v27  ;;  %v3877_v15 = vld [vmem:[#allocation10 + $0x48] sm:$0xff] }
 0x19c   : > { %v1140_v9 = vpop.f32.mrf.mxu1  ;;  %2046 = vmatpush.bf16.msrb.mxu3 %v3877_v15 }
 0x19d   : > { %v1141_v50 = vadd.f32 %v4845_v38, %v1140_v9  ;;  %1257 = vmatmul.bf16.gmra.mxu3 %v1041_v48  ;;  %v4973_v9 = vadd.f32 %v723_v12, %v4677_v61 }
 0x19e   : > { %v802_v22 = vpop.f32.mrf.mxu2 }
 0x19f   : > { %v4965_v16 = vadd.f32 %v1141_v50, %v4465_v29  ;;  %v803_v28 = vadd.f32 %v4557_v20, %v802_v22 }
 0x1a0   : > { %v724_v56 = vpop.f32.mrf.mxu0  ;;  %v4967_v8 = vpop.f32.mrf.mxu3 }
 0x1a1   : > { %6939 = vst [vmem:[#allocation65_spill] sm:$0xff] %v4965_v16  ;;  %v725_v10 = vadd.f32 %v4557_v20, %v724_v56  ;;  %v1478_v32 = vpack.c.bf16 %v4965_v16, %v4961_v23  ;;  %v4982_v50 = vadd.f32 %v803_v28, %v4683_v24 }
 0x1a3   : > { %v4976_v48 = vadd.f32 %v725_v10, %v4680_v2  ;;  %1600 = vmatmul.bf16.gmra.mxu2 %v1478_v32  ;;  %6940 = vst [vmem:[#allocation66_spill] sm:$0xff] %v4982_v50 }
 0x1a4   : > { %v1143_v40 = vpop.f32.mrf.mxu1 }
 0x1a5   : > { %v1026_v29 = vpack.c.bf16 %v4976_v48, %v4973_v9  ;;  %v1144_v22 = vadd.f32 %v4845_v38, %v1143_v40 }
 0x1a6   : > { %v804_v51 = vpop.f32.mrf.mxu2 }
 0x1a7   : > { %1182 = vmatmul.bf16.gmra.mxu1 %v1026_v29  ;;  %v805_v56 = vadd.f32 %v4557_v20, %v804_v51  ;;  %v4995_v29 = vadd.f32 %v1144_v22, %v4478_v35 }
 0x1a8   : > { %v727_v12 = vpop.f32.mrf.mxu0  ;;  %v4985_v27 = vpop.f32.mrf.mxu3 }
 0x1a9   : > { %v4988_v10 = vadd.f32 %v805_v56, %v4686_v3  ;;  %6942 = vst [vmem:[#allocation68_spill] sm:$0xff] %v4995_v29  ;;  %v728_v51 = vadd.f32 %v4557_v20, %v727_v12 }
 0x1ab   : > { %6941 = vst [vmem:[#allocation67_spill] sm:$0xff] %v4988_v10  ;;  %v1042_v32 = vpack.c.bf16 %v4988_v10, %v4982_v50  ;;  %v3889_v10 = vld [vmem:[#allocation7 + $0xa8] sm:$0xff] }
 0x1ac   : > { %v1145_v16 = vpop.f32.mrf.mxu1  ;;  %2505 = vmatpush.bf16.msrb.mxu0 %v3889_v10 }
 0x1ad   : > { %v1146_v24 = vadd.f32 %v4845_v38, %v1145_v16  ;;  %1262 = vmatmul.bf16.gmra.mxu3 %v1042_v32  ;;  %v5007_v16 = vadd.f32 %v728_v51, %v4713_v18 }
 0x1ae   : > { %v807_v28 = vpop.f32.mrf.mxu2 }
 0x1af   : > { %v4999_v23 = vadd.f32 %v1146_v24, %v4481_v36  ;;  %v808_v35 = vadd.f32 %v4557_v20, %v807_v28 }
 0x1b0   : > { %v729_v3 = vpop.f32.mrf.mxu0  ;;  %v5001_v15 = vpop.f32.mrf.mxu3 }
 0x1b1   : > { %6943 = vst [vmem:[#allocation69_spill] sm:$0xff] %v4999_v23  ;;  %v730_v40 = vadd.f32 %v4557_v20, %v729_v3  ;;  %v1479_v56 = vpack.c.bf16 %v4999_v23, %v4995_v29  ;;  %v5016_v24 = vadd.f32 %v808_v35, %v4719_v30 }
 0x1b3   : > { %v5010_v32 = vadd.f32 %v730_v40, %v4716_v49  ;;  %1605 = vmatmul.bf16.gmra.mxu2 %v1479_v56  ;;  %6944 = vst [vmem:[#allocation70_spill] sm:$0xff] %v5016_v24 }
 0x1b4   : > { %v1148_v12 = vpop.f32.mrf.mxu1 }
 0x1b5   : > { %v1027_v36 = vpack.c.bf16 %v5010_v32, %v5007_v16  ;;  %v1149_v28 = vadd.f32 %v4845_v38, %v1148_v12 }
 0x1b6   : > { %v809_v22 = vpop.f32.mrf.mxu2 }
 0x1b7   : > { %1187 = vmatmul.bf16.gmra.mxu1 %v1027_v36  ;;  %v810_v3 = vadd.f32 %v4557_v20, %v809_v22  ;;  %v5029_v36 = vadd.f32 %v1149_v28, %v4494_v42 }
 0x1b8   : > { %v732_v51 = vpop.f32.mrf.mxu0  ;;  %v5019_v50 = vpop.f32.mrf.mxu3 }
 0x1b9   : > { %v5022_v40 = vadd.f32 %v810_v3, %v4722_v17  ;;  %6946 = vst [vmem:[#allocation72_spill] sm:$0xff] %v5029_v36  ;;  %v733_v22 = vadd.f32 %v4557_v20, %v732_v51 }
 0x1bb   : > { %6945 = vst [vmem:[#allocation71_spill] sm:$0xff] %v5022_v40  ;;  %v1043_v56 = vpack.c.bf16 %v5022_v40, %v5016_v24  ;;  %v3876_v40 = vld [vmem:[#allocation10 + $0x40] sm:$0xff] }
 0x1bc   : > { %v1150_v23 = vpop.f32.mrf.mxu1  ;;  %2047 = vmatpush.bf16.msrb.mxu3 %v3876_v40 }
 0x1bd   : > { %v1151_v30 = vadd.f32 %v4845_v38, %v1150_v23  ;;  %1267 = vmatmul.bf16.gmra.mxu3 %v1043_v56  ;;  %v5041_v23 = vadd.f32 %v733_v22, %v4749_v25 }
 0x1be   : > { %v812_v35 = vpop.f32.mrf.mxu2 }
 0x1bf   : > { %v5033_v29 = vadd.f32 %v1151_v30, %v4497_v43  ;;  %v813_v42 = vadd.f32 %v4557_v20, %v812_v35 }
 0x1c0   : > { %v734_v17 = vpop.f32.mrf.mxu0  ;;  %v5035_v10 = vpop.f32.mrf.mxu3 }
 0x1c1   : > { %6947 = vst [vmem:[#allocation73_spill] sm:$0xff] %v5033_v29  ;;  %v735_v12 = vadd.f32 %v4557_v20, %v734_v17  ;;  %v1480_v3 = vpack.c.bf16 %v5033_v29, %v5029_v36  ;;  %v5050_v30 = vadd.f32 %v813_v42, %v4755_v37  ;;  %v6952_v36 = vld [vmem:[#allocation17_spill] sm:$0xff] }
 0x1c3   : > { %v5044_v56 = vadd.f32 %v735_v12, %v4752_v60  ;;  %1610 = vmatmul.bf16.gmra.mxu2 %v1480_v3  ;;  %6949 = vst [vmem:[#allocation75_spill] sm:$0xff] %v5050_v30 }
 0x1c4   : > { %v1153_v51 = vpop.f32.mrf.mxu1 }
 0x1c5   : > { %6948 = vst [vmem:[#allocation74_spill] sm:$0xff] %v5044_v56  ;;  %v1028_v43 = vpack.c.bf16 %v5044_v56, %v5041_v23  ;;  %v1154_v35 = vadd.f32 %v4845_v38, %v1153_v51 }
 0x1c6   : > { %v814_v28 = vpop.f32.mrf.mxu2 }
 0x1c7   : > { %1192 = vmatmul.bf16.gmra.mxu1 %v1028_v43  ;;  %v815_v17 = vadd.f32 %v4557_v20, %v814_v28  ;;  %v5063_v43 = vadd.f32 %v1154_v35, %v4510_v52 }
 0x1c8   : > { %v737_v22 = vpop.f32.mrf.mxu0  ;;  %v5053_v24 = vpop.f32.mrf.mxu3 }
 0x1c9   : > { %v5056_v12 = vadd.f32 %v815_v17, %v4758_v57  ;;  %6951 = vst [vmem:[#allocation77_spill] sm:$0xff] %v5063_v43  ;;  %v738_v28 = vadd.f32 %v4557_v20, %v737_v22 }
 0x1cb   : > { %6950 = vst [vmem:[#allocation76_spill] sm:$0xff] %v5056_v12  ;;  %v1044_v3 = vpack.c.bf16 %v5056_v12, %v5050_v30 }
 0x1cc   : > { %v1155_v29 = vpop.f32.mrf.mxu1 }
 0x1cd   : > { %v1156_v37 = vadd.f32 %v4845_v38, %v1155_v29  ;;  %1272 = vmatmul.bf16.gmra.mxu3 %v1044_v3  ;;  %v5075_v29 = vadd.f32 %v738_v28, %v4785_v59  ;;  %v6955_v28 = vld [vmem:[#allocation44_spill] sm:$0xff] }
 0x1ce   : > { %v817_v42 = vpop.f32.mrf.mxu2 }
 0x1cf   : > { %v5067_v56 = vadd.f32 %v1156_v37, %v6952_v36  ;;  %v818_v52 = vadd.f32 %v4557_v20, %v817_v42 }
 0x1d0   : > { %v739_v57 = vpop.f32.mrf.mxu0  ;;  %v5069_v40 = vpop.f32.mrf.mxu3 }
 0x1d1   : > { %6953 = vst [vmem:[#allocation17_spill] sm:$0xff] %v5067_v56  ;;  %v740_v51 = vadd.f32 %v4557_v20, %v739_v57  ;;  %v1481_v17 = vpack.c.bf16 %v5067_v56, %v5063_v43  ;;  %v5084_v37 = vadd.f32 %v818_v52, %v4791_v31 }
 0x1d3   : > { %v5078_v3 = vadd.f32 %v740_v51, %v4788_v11  ;;  %1615 = vmatmul.bf16.gmra.mxu2 %v1481_v17  ;;  %6954 = vst [vmem:[#allocation78_spill] sm:$0xff] %v5084_v37  ;;  %v3888_v51 = vld [vmem:[#allocation7 + $0xa0] sm:$0xff] }
 0x1d4   : > { %v1158_v22 = vpop.f32.mrf.mxu1  ;;  %2506 = vmatpush.bf16.msrb.mxu0 %v3888_v51 }
 0x1d5   : > { %v1029_v36 = vpack.c.bf16 %v5078_v3, %v5075_v29  ;;  %v1159_v17 = vadd.f32 %v4845_v38, %v1158_v22 }
 0x1d6   : > { %v819_v35 = vpop.f32.mrf.mxu2 }
 0x1d7   : > { %1197 = vmatmul.bf16.gmra.mxu1 %v1029_v36  ;;  %v820_v57 = vadd.f32 %v4557_v20, %v819_v35  ;;  %v5097_v31 = vadd.f32 %v1159_v17, %v4526_v62 }
 0x1d8   : > { %v5087_v12 = vpop.f32.mrf.mxu3 }
 0x1d9   : > { %v5090_v30 = vadd.f32 %v820_v57, %v6955_v28  ;;  %6957 = vst [vmem:[#allocation79_spill] sm:$0xff] %v5097_v31 }
 0x1db   : > { %6956 = vst [vmem:[#allocation44_spill] sm:$0xff] %v5090_v30  ;;  %v1045_v42 = vpack.c.bf16 %v5090_v30, %v5084_v37  ;;  %v3887_v30 = vld [vmem:[#allocation7 + $0x98] sm:$0xff] }
 0x1dc   : > { %v1160_v56 = vpop.f32.mrf.mxu1  ;;  %2507 = vmatpush.bf16.msrb.mxu0 %v3887_v30  ;;  %v6965_v30 = vld [vmem:[#allocation19_spill] sm:$0xff] }
 0x1dd   : > { %v1161_v43 = vadd.f32 %v4845_v38, %v1160_v56  ;;  %1277 = vmatmul.bf16.gmra.mxu3 %v1045_v42 }
 0x1df   : > { %v5100_v20 = vadd.f32 %v1161_v43, %v4529_v63 }
 0x1e0   : > { %v5102_v52 = vpop.f32.mrf.mxu3 }
 0x1e1   : > { %6958 = vst [vmem:[#allocation80_spill] sm:$0xff] %v5100_v20  ;;  %v1482_v36 = vpack.c.bf16 %v5100_v20, %v5097_v31  ;;  %v6963_v20 = vld [vmem:[#allocation18_spill] sm:$0xff] }
 0x1e3   : > { %1620 = vmatmul.bf16.gmra.mxu2 %v1482_v36 }
 0x1e4   : > { %v1163_v22 = vpop.f32.mrf.mxu1 }
 0x1e5   : > { %v1164_v57 = vadd.f32 %v4845_v38, %v1163_v22  ;;  %v5122_v22 = vld [vmem:[#allocation9 + $0x1] ss:$0 sm:$0xff] }
 0x1e7   : > { %v5111_v62 = vadd.f32 %v1164_v57, %v4542_v5 }
 0x1e8   : > { %v5106_v35 = vpop.f32.mrf.mxu3 }
 0x1e9   : > { %6959 = vst [vmem:[#allocation81_spill] sm:$0xff] %v5111_v62 }
 0x1ec   : > { %v1165_v28 = vpop.f32.mrf.mxu1 }
 0x1ed   : > { %v1166_v56 = vadd.f32 %v4845_v38, %v1165_v28 }
 0x1ef   : > { %v5114_v63 = vadd.f32 %v1166_v56, %v4545_v6 }
 0x1f0   : > { %v5116_v43 = vpop.f32.mrf.mxu3 }
 0x1f1   : > { %6960 = vst [vmem:[#allocation82_spill] sm:$0xff] %v5114_v63  ;;  %v1483_v51 = vpack.c.bf16 %v5114_v63, %v5111_v62 }
 0x1f3   : > { %1625 = vmatmul.bf16.gmra.mxu2 %v1483_v51 }
 0x1f4   : > { %v1168_v17 = vpop.f32.mrf.mxu1 }
 0x1f5   : > { %v1169_v28 = vadd.f32 %v4845_v38, %v1168_v17 }
 0x1f6   : > { %v1586_v42 = vpop.f32.mrf.mxu2 }
 0x1f7   : > { %v1587_v6 = vadd.f32 %v5122_v22, %v1586_v42  ;;  %v5128_v37 = vadd.f32 %v1169_v28, %v4569_v41  ;;  %v3899_v28 = vld [vmem:[#allocation10 + $0xb8] sm:$0xff] }
 0x1f8   : > { %v5120_v36 = vpop.f32.mrf.mxu3  ;;  %2966 = vmatpush.bf16.msrb.mxu1 %v3899_v28  ;;  %v6969_v28 = vld [vmem:[#allocation22_spill] sm:$0xff] }
 0x1f9   : > { %6961 = vst [vmem:[#allocation83_spill] sm:$0xff] %v5128_v37  ;;  %v5137_v31 = vadd.f32 %v1587_v6, %v6963_v20 }
 0x1fb   : > { %6964 = vst [vmem:[#allocation18_spill] sm:$0xff] %v5137_v31 }
 0x1fc   : > { %v1170_v5 = vpop.f32.mrf.mxu1 }
 0x1fd   : > { %v1171_v57 = vadd.f32 %v4845_v38, %v1170_v5 }
 0x1fe   : > { %v1588_v56 = vpop.f32.mrf.mxu2 }
 0x1ff   : > { %v5131_v51 = vadd.f32 %v1171_v57, %v4572_v46  ;;  %v1589_v63 = vadd.f32 %v5122_v22, %v1588_v56 }
 0x200   : > { %v5134_v62 = vpop.f32.mrf.mxu3 }
 0x201   : > { %6962 = vst [vmem:[#allocation84_spill] sm:$0xff] %v5131_v51  ;;  %v5140_v17 = vadd.f32 %v1589_v63, %v6965_v30  ;;  %v1484_v42 = vpack.c.bf16 %v5131_v51, %v5128_v37 }
 0x203   : > { %6966 = vst [vmem:[#allocation19_spill] sm:$0xff] %v5140_v17  ;;  %v1938_v41 = vpack.c.bf16 %v5140_v17, %v5137_v31  ;;  %1630 = vmatmul.bf16.gmra.mxu2 %v1484_v42  ;;  %v6970_v17 = vld [vmem:[#allocation23_spill] sm:$0xff] }
 0x204   : > { %v1173_v46 = vpop.f32.mrf.mxu1 }
 0x205   : > { %2048 = vmatmul.bf16.vlgmr.msrb.gmra.mxu3 %v1938_v41  ;;  %v1174_v20 = vadd.f32 %v4845_v38, %v1173_v46 }
 0x206   : > { %v1591_v5 = vpop.f32.mrf.mxu2 }
 0x207   : > { %v1592_v63 = vadd.f32 %v5122_v22, %v1591_v5  ;;  %v5152_v51 = vadd.f32 %v1174_v20, %v4605_v21 }
 0x208   : > { %v5146_v57 = vpop.f32.mrf.mxu3 }
 0x209   : > { %6967 = vst [vmem:[#allocation85_spill] sm:$0xff] %v5152_v51  ;;  %v5159_v37 = vadd.f32 %v1592_v63, %v6969_v28 }
 0x20c   : > { %v1175_v6 = vpop.f32.mrf.mxu1 }
 0x20d   : > { %v1176_v56 = vadd.f32 %v4845_v38, %v1175_v6  ;;  %v3886_v6 = vld [vmem:[#allocation7 + $0x90] sm:$0xff] }
 0x20e   : > { %v1593_v30 = vpop.f32.mrf.mxu2  ;;  %2508 = vmatpush.bf16.msrb.mxu0 %v3886_v6 }
 0x20f   : > { %v5155_v42 = vadd.f32 %v1176_v56, %v4608_v26  ;;  %v1594_v41 = vadd.f32 %v5122_v22, %v1593_v30 }
 0x210   : > { %v5166_v5 = vpop.f32.mrf.mxu3 }
 0x211   : > { %6968 = vst [vmem:[#allocation86_spill] sm:$0xff] %v5155_v42  ;;  %v5162_v31 = vadd.f32 %v1594_v41, %v6970_v17  ;;  %v1485_v46 = vpack.c.bf16 %v5155_v42, %v5152_v51  ;;  %v6974_v51 = vld [vmem:[#allocation26_spill] sm:$0xff] }
 0x213   : > { %6971 = vst [vmem:[#allocation22_spill] sm:$0xff] %v5162_v31  ;;  %1635 = vmatmul.bf16.gmra.mxu2 %v1485_v46  ;;  %v1939_v21 = vpack.c.bf16 %v5162_v31, %v5159_v37 }
 0x214   : > { %v1178_v20 = vpop.f32.mrf.mxu1 }
 0x215   : > { %2053 = vmatmul.bf16.gmra.mxu3 %v1939_v21  ;;  %v1179_v56 = vadd.f32 %v4845_v38, %v1178_v20  ;;  %v6976_v20 = vld [vmem:[#allocation27_spill] sm:$0xff] }
 0x216   : > { %v1596_v26 = vpop.f32.mrf.mxu2 }
 0x217   : > { %v1597_v17 = vadd.f32 %v5122_v22, %v1596_v26  ;;  %v5176_v46 = vadd.f32 %v1179_v56, %v4641_v33  ;;  %v3898_v33 = vld [vmem:[#allocation10 + $0xb0] sm:$0xff] }
 0x218   : > { %v5171_v30 = vpop.f32.mrf.mxu3  ;;  %2967 = vmatpush.bf16.msrb.mxu1 %v3898_v33 }
 0x219   : > { %6972 = vst [vmem:[#allocation23_spill] sm:$0xff] %v5176_v46  ;;  %v5183_v31 = vadd.f32 %v1597_v17, %v6974_v51 }
 0x21b   : > { %6975 = vst [vmem:[#allocation26_spill] sm:$0xff] %v5183_v31 }
 0x21c   : > { %v1180_v63 = vpop.f32.mrf.mxu1 }
 0x21d   : > { %v1181_v41 = vadd.f32 %v4845_v38, %v1180_v63 }
 0x21e   : > { %v1598_v28 = vpop.f32.mrf.mxu2 }
 0x21f   : > { %v5179_v42 = vadd.f32 %v1181_v41, %v4644_v39  ;;  %v1599_v21 = vadd.f32 %v5122_v22, %v1598_v28 }
 0x220   : > { %v5192_v41 = vpop.f32.mrf.mxu3 }
 0x221   : > { %6973 = vst [vmem:[#allocation87_spill] sm:$0xff] %v5179_v42  ;;  %v5186_v6 = vadd.f32 %v1599_v21, %v6976_v20  ;;  %v1486_v26 = vpack.c.bf16 %v5179_v42, %v5176_v46  ;;  %v6980_v46 = vld [vmem:[#allocation30_spill] sm:$0xff] }
 0x223   : > { %6977 = vst [vmem:[#allocation27_spill] sm:$0xff] %v5186_v6  ;;  %1640 = vmatmul.bf16.gmra.mxu2 %v1486_v26  ;;  %v1940_v63 = vpack.c.bf16 %v5186_v6, %v5183_v31 }
 0x224   : > { %v1183_v56 = vpop.f32.mrf.mxu1 }
 0x225   : > { %2058 = vmatmul.bf16.gmra.mxu3 %v1940_v63  ;;  %v1184_v51 = vadd.f32 %v4845_v38, %v1183_v56  ;;  %v6982_v56 = vld [vmem:[#allocation31_spill] sm:$0xff] }
 0x226   : > { %v1601_v39 = vpop.f32.mrf.mxu2 }
 0x227   : > { %v1602_v28 = vadd.f32 %v5122_v22, %v1601_v39  ;;  %v5198_v26 = vadd.f32 %v1184_v51, %v4677_v61 }
 0x228   : > { %v5204_v33 = vpop.f32.mrf.mxu3 }
 0x229   : > { %6978 = vst [vmem:[#allocation88_spill] sm:$0xff] %v5198_v26  ;;  %v5207_v6 = vadd.f32 %v1602_v28, %v6980_v46 }
 0x22b   : > { %6981 = vst [vmem:[#allocation30_spill] sm:$0xff] %v5207_v6 }
 0x22c   : > { %v1185_v17 = vpop.f32.mrf.mxu1 }
 0x22d   : > { %v1186_v21 = vadd.f32 %v4845_v38, %v1185_v17  ;;  %v3885_v17 = vld [vmem:[#allocation7 + $0x88] sm:$0xff] }
 0x22e   : > { %v1603_v20 = vpop.f32.mrf.mxu2  ;;  %2509 = vmatpush.bf16.msrb.mxu0 %v3885_v17 }
 0x22f   : > { %v5201_v42 = vadd.f32 %v1186_v21, %v4680_v2  ;;  %v1604_v63 = vadd.f32 %v5122_v22, %v1603_v20 }
 0x230   : > { %v5216_v21 = vpop.f32.mrf.mxu3 }
 0x231   : > { %6979 = vst [vmem:[#allocation89_spill] sm:$0xff] %v5201_v42  ;;  %v5210_v31 = vadd.f32 %v1604_v63, %v6982_v56  ;;  %v1487_v39 = vpack.c.bf16 %v5201_v42, %v5198_v26  ;;  %v6986_v26 = vld [vmem:[#allocation34_spill] sm:$0xff] }
 0x233   : > { %6983 = vst [vmem:[#allocation31_spill] sm:$0xff] %v5210_v31  ;;  %1645 = vmatmul.bf16.gmra.mxu2 %v1487_v39  ;;  %v1941_v61 = vpack.c.bf16 %v5210_v31, %v5207_v6  ;;  %v6987_v6 = vld [vmem:[#allocation35_spill] sm:$0xff] }
 0x234   : > { %v1188_v51 = vpop.f32.mrf.mxu1 }
 0x235   : > { %2063 = vmatmul.bf16.gmra.mxu3 %v1941_v61  ;;  %v1189_v20 = vadd.f32 %v4845_v38, %v1188_v51 }
 0x236   : > { %v1606_v2 = vpop.f32.mrf.mxu2 }
 0x237   : > { %v1607_v28 = vadd.f32 %v5122_v22, %v1606_v2  ;;  %v5222_v39 = vadd.f32 %v1189_v20, %v4713_v18  ;;  %v3897_v18 = vld [vmem:[#allocation10 + $0xa8] sm:$0xff] }
 0x238   : > { %v5238_v20 = vpop.f32.mrf.mxu3  ;;  %2968 = vmatpush.bf16.msrb.mxu1 %v3897_v18  ;;  %v6991_v18 = vld [vmem:[#allocation38_spill] sm:$0xff] }
 0x239   : > { %6984 = vst [vmem:[#allocation90_spill] sm:$0xff] %v5222_v39  ;;  %v5229_v31 = vadd.f32 %v1607_v28, %v6986_v26 }
 0x23c   : > { %v1190_v46 = vpop.f32.mrf.mxu1 }
 0x23d   : > { %v1191_v63 = vadd.f32 %v4845_v38, %v1190_v46 }
 0x23e   : > { %v1608_v56 = vpop.f32.mrf.mxu2 }
 0x23f   : > { %v5225_v42 = vadd.f32 %v1191_v63, %v4716_v49  ;;  %v1609_v61 = vadd.f32 %v5122_v22, %v1608_v56 }
 0x240   : > { %v5243_v56 = vpop.f32.mrf.mxu3 }
 0x241   : > { %6985 = vst [vmem:[#allocation91_spill] sm:$0xff] %v5225_v42  ;;  %v5232_v51 = vadd.f32 %v1609_v61, %v6987_v6  ;;  %v1488_v2 = vpack.c.bf16 %v5225_v42, %v5222_v39 }
 0x243   : > { %6988 = vst [vmem:[#allocation34_spill] sm:$0xff] %v5232_v51  ;;  %1650 = vmatmul.bf16.gmra.mxu2 %v1488_v2  ;;  %v1942_v17 = vpack.c.bf16 %v5232_v51, %v5229_v31 }
 0x244   : > { %v1193_v49 = vpop.f32.mrf.mxu1 }
 0x245   : > { %2068 = vmatmul.bf16.gmra.mxu3 %v1942_v17  ;;  %v1194_v26 = vadd.f32 %v4845_v38, %v1193_v49  ;;  %v6992_v49 = vld [vmem:[#allocation39_spill] sm:$0xff] }
 0x246   : > { %v1611_v46 = vpop.f32.mrf.mxu2 }
 0x247   : > { %v1612_v6 = vadd.f32 %v5122_v22, %v1611_v46  ;;  %v5246_v2 = vadd.f32 %v1194_v26, %v4749_v25 }
 0x249   : > { %6989 = vst [vmem:[#allocation35_spill] sm:$0xff] %v5246_v2  ;;  %v5253_v39 = vadd.f32 %v1612_v6, %v6991_v18 }
 0x24c   : > { %v1195_v28 = vpop.f32.mrf.mxu1 }
 0x24d   : > { %v1196_v63 = vadd.f32 %v4845_v38, %v1195_v28 }
 0x24e   : > { %v1613_v61 = vpop.f32.mrf.mxu2 }
 0x24f   : > { %v5249_v42 = vadd.f32 %v1196_v63, %v4752_v60  ;;  %v1614_v17 = vadd.f32 %v5122_v22, %v1613_v61  ;;  %v5262_v60 = vpop.f32.mrf.mxu3  ;;  %v3884_v63 = vld [vmem:[#allocation7 + $0x80] sm:$0xff] }
 0x250   : > { %2510 = vmatpush.bf16.msrb.mxu0 %v3884_v63 }
 0x251   : > { %6990 = vst [vmem:[#allocation92_spill] sm:$0xff] %v5249_v42  ;;  %v5256_v51 = vadd.f32 %v1614_v17, %v6992_v49  ;;  %v1489_v46 = vpack.c.bf16 %v5249_v42, %v5246_v2  ;;  %v6995_v2 = vld [vmem:[#allocation42_spill] sm:$0xff] }
 0x253   : > { %6993 = vst [vmem:[#allocation38_spill] sm:$0xff] %v5256_v51  ;;  %1655 = vmatmul.bf16.gmra.mxu2 %v1489_v46  ;;  %v1943_v28 = vpack.c.bf16 %v5256_v51, %v5253_v39 }
 0x254   : > { %v1198_v25 = vpop.f32.mrf.mxu1 }
 0x255   : > { %2073 = vmatmul.bf16.gmra.mxu3 %v1943_v28  ;;  %v1199_v61 = vadd.f32 %v4845_v38, %v1198_v25  ;;  %v6996_v25 = vld [vmem:[#allocation43_spill] sm:$0xff] }
 0x256   : > { %v1616_v26 = vpop.f32.mrf.mxu2 }
 0x257   : > { %v1617_v17 = vadd.f32 %v5122_v22, %v1616_v26  ;;  %v5268_v46 = vadd.f32 %v1199_v61, %v4785_v59 }
 0x259   : > { %v5275_v51 = vadd.f32 %v1617_v17, %v6995_v2  ;;  %v1204_v2 = vadd.f32 %v4845_v38, %v4865_v4  ;;  %v1206_v17 = vadd.f32 %v4845_v38, %v4883_v54 }
 0x25c   : > { %v1200_v6 = vpop.f32.mrf.mxu1 }
 0x25d   : > { %v1201_v18 = vadd.f32 %v4845_v38, %v1200_v6  ;;  %v5282_v6 = vpop.f32.mrf.mxu3 }
 0x25e   : > { %v1618_v49 = vpop.f32.mrf.mxu2 }
 0x25f   : > { %v5271_v42 = vadd.f32 %v1201_v18, %v4788_v11  ;;  %v1619_v28 = vadd.f32 %v5122_v22, %v1618_v49  ;;  %v3896_v11 = vld [vmem:[#allocation10 + $0xa0] sm:$0xff] }
 0x260   : > { %2969 = vmatpush.bf16.msrb.mxu1 %v3896_v11  ;;  %v4008_v49 = vld [vmem:[%s4399_s8 + $0x100] sm:$0xff] }
 0x261   : > { %6994 = vst [vmem:[#allocation39_spill] sm:$0xff] %v5271_v42  ;;  %v5278_v63 = vadd.f32 %v1619_v28, %v6996_v25  ;;  %v1490_v26 = vpack.c.bf16 %v5271_v42, %v5268_v46  ;;  %v5293_v28 = vadd.f32 %v4008_v49, %v1204_v2  ;;  %v4009_v25 = vld [vmem:[%s4399_s8 + $0x108] sm:$0xff] }
 0x263   : > { %1660 = vmatmul.bf16.gmra.mxu2 %v1490_v26  ;;  %v1944_v59 = vpack.c.bf16 %v5278_v63, %v5275_v51  ;;  %6997 = vst [vmem:[#allocation42_spill] sm:$0xff] %v5293_v28  ;;  %v5296_v26 = vadd.f32 %v4009_v25, %v1206_v17  ;;  %v1209_v25 = vadd.f32 %v4845_v38, %v4899_v53 }
 0x265   : > { %2078 = vmatmul.bf16.gmra.mxu3 %v1944_v59  ;;  %v5290_v18 = vpop.f32.mrf.mxu3  ;;  %6998 = vst [vmem:[#allocation43_spill] sm:$0xff] %v5296_v26  ;;  %v1491_v2 = vpack.c.bf16 %v5296_v26, %v5293_v28 }
 0x266   : > { %v1621_v61 = vpop.f32.mrf.mxu2 }
 0x267   : > { %v1622_v59 = vadd.f32 %v5122_v22, %v1621_v61 }
 0x269   : > { %v5301_v4 = vadd.f32 %v1622_v59, %v4814_v14  ;;  %v1211_v14 = vadd.f32 %v4845_v38, %v4917_v13  ;;  %v4010_v59 = vld [vmem:[%s4399_s8 + $0x110] sm:$0xff] }
 0x26d   : > { %v5310_v49 = vpop.f32.mrf.mxu3 }
 0x26e   : > { %v1623_v11 = vpop.f32.mrf.mxu2 }
 0x26f   : > { %v1624_v42 = vadd.f32 %v5122_v22, %v1623_v11 }
 0x271   : > { %v5304_v54 = vadd.f32 %v1624_v42, %v4818_v55  ;;  %v5317_v55 = vadd.f32 %v4010_v59, %v1209_v25  ;;  %v4011_v42 = vld [vmem:[%s4399_s8 + $0x118] sm:$0xff] }
 0x272   : > { %v5320_v11 = vadd.f32 %v4011_v42, %v1211_v14  ;;  %v3895_v14 = vld [vmem:[#allocation10 + $0x98] sm:$0xff]  ;;  %v1214_v42 = vadd.f32 %v4845_v38, %v4933_v7 }
 0x273   : > { %6999 = vst [vmem:[#allocation93_spill] sm:$0xff] %v5304_v54  ;;  %1665 = vmatmul.bf16.gmra.mxu2 %v1491_v2  ;;  %v1945_v17 = vpack.c.bf16 %v5304_v54, %v5301_v4  ;;  %v7003_v54 = vld [vmem:[#allocation49_spill] sm:$0xff]  ;;  %2970 = vmatpush.bf16.msrb.mxu1 %v3895_v14 }
 0x274   : > { %7000 = vst [vmem:[#allocation94_spill] sm:$0xff] %v5317_v55  ;;  %v1492_v25 = vpack.c.bf16 %v5320_v11, %v5317_v55 }
 0x275   : > { %2083 = vmatmul.bf16.gmra.mxu3 %v1945_v17  ;;  %7001 = vst [vmem:[#allocation95_spill] sm:$0xff] %v5320_v11  ;;  %v5324_v28 = vpop.f32.mrf.mxu3 }
 0x276   : > { %v1626_v61 = vpop.f32.mrf.mxu2 }
 0x277   : > { %v1627_v2 = vadd.f32 %v5122_v22, %v1626_v61 }
 0x279   : > { %v5327_v53 = vadd.f32 %v1627_v2, %v4834_v0  ;;  %v1216_v0 = vadd.f32 %v4845_v38, %v4951_v47  ;;  %v4012_v2 = vld [vmem:[%s4399_s8 + $0x120] sm:$0xff] }
 0x27b   : > { %7002 = vst [vmem:[#allocation96_spill] sm:$0xff] %v5327_v53 }
 0x27e   : > { %v1628_v26 = vpop.f32.mrf.mxu2 }
 0x27f   : > { %v1629_v17 = vadd.f32 %v5122_v22, %v1628_v26 }
 0x281   : > { %v5330_v13 = vadd.f32 %v1629_v17, %v7003_v54  ;;  %v5343_v54 = vld [vmem:[%s6703_s4 + $0x1] ss:$0 sm:$0xff]  ;;  %v5346_v17 = vadd.f32 %v4012_v2, %v1214_v42 }
 0x283   : > { %7004 = vst [vmem:[#allocation49_spill] sm:$0xff] %v5330_v13  ;;  %1670 = vmatmul.bf16.gmra.mxu2 %v1492_v25  ;;  %v1946_v61 = vpack.c.bf16 %v5330_v13, %v5327_v53  ;;  %v4013_v25 = vld [vmem:[%s4399_s8 + $0x128] sm:$0xff] }
 0x284   : > { %7005 = vst [vmem:[#allocation97_spill] sm:$0xff] %v5346_v17  ;;  %v5349_v11 = vadd.f32 %v4013_v25, %v1216_v0 }
 0x285   : > { %2088 = vmatmul.bf16.gmra.mxu3 %v1946_v61 }
 0x286   : > { %v1631_v26 = vpop.f32.mrf.mxu2  ;;  %7006 = vst [vmem:[#allocation98_spill] sm:$0xff] %v5349_v11  ;;  %v1493_v0 = vpack.c.bf16 %v5349_v11, %v5346_v17 }
 0x287   : > { %v1632_v61 = vadd.f32 %v5122_v22, %v1631_v26  ;;  %v7008_v26 = vld [vmem:[#allocation52_spill] sm:$0xff] }
 0x288   : > { %v2049_v59 = vpop.f32.mrf.mxu3 }
 0x289   : > { %v2050_v55 = vadd.f32 %v5343_v54, %v2049_v59  ;;  %v5355_v47 = vadd.f32 %v1632_v61, %v4871_v58  ;;  %v7009_v59 = vld [vmem:[#allocation53_spill] sm:$0xff] }
 0x28b   : > { %v5364_v2 = vadd.f32 %v2050_v55, %v7008_v26  ;;  %v1221_v55 = vadd.f32 %v4845_v38, %v4985_v27 }
 0x28e   : > { %v1633_v14 = vpop.f32.mrf.mxu2 }
 0x28f   : > { %v1634_v7 = vadd.f32 %v5122_v22, %v1633_v14  ;;  %v1219_v14 = vadd.f32 %v4845_v38, %v4967_v8 }
 0x290   : > { %v2051_v13 = vpop.f32.mrf.mxu3 }
 0x291   : > { %v5358_v53 = vadd.f32 %v1634_v7, %v4875_v19  ;;  %v2052_v42 = vadd.f32 %v5343_v54, %v2051_v13  ;;  %v4014_v7 = vld [vmem:[%s4399_s8 + $0x130] sm:$0xff] }
 0x293   : > { %7007 = vst [vmem:[#allocation99_spill] sm:$0xff] %v5358_v53  ;;  %v5367_v25 = vadd.f32 %v2052_v42, %v7009_v59  ;;  %1675 = vmatmul.bf16.gmra.mxu2 %v1493_v0  ;;  %v1947_v58 = vpack.c.bf16 %v5358_v53, %v5355_v47  ;;  %v5378_v42 = vadd.f32 %v4014_v7, %v1219_v14  ;;  %v4015_v0 = vld [vmem:[%s4399_s8 + $0x138] sm:$0xff] }
 0x294   : > { %v5381_v26 = vadd.f32 %v4015_v0, %v1221_v55  ;;  %v7011_v55 = vld [vmem:[#allocation56_spill] sm:$0xff] }
 0x295   : > { %v2401_v19 = vpack.c.bf16 %v5367_v25, %v5364_v2  ;;  %2093 = vmatmul.bf16.gmra.mxu3 %v1947_v58 }
 0x296   : > { %v1636_v61 = vpop.f32.mrf.mxu2  ;;  %7010 = vst [vmem:[#allocation52_spill] sm:$0xff] %v5381_v26  ;;  %v1494_v14 = vpack.c.bf16 %v5381_v26, %v5378_v42 }
 0x297   : > { %2511 = vmatmul.bf16.vlgmr.msrb.gmra.mxu0 %v2401_v19  ;;  %v1637_v59 = vadd.f32 %v5122_v22, %v1636_v61 }
 0x298   : > { %v2054_v13 = vpop.f32.mrf.mxu3 }
 0x299   : > { %v2055_v58 = vadd.f32 %v5343_v54, %v2054_v13  ;;  %v5387_v53 = vadd.f32 %v1637_v59, %v4905_v34  ;;  %v7012_v13 = vld [vmem:[#allocation57_spill] sm:$0xff]  ;;  %v1224_v59 = vadd.f32 %v4845_v38, %v5001_v15 }
 0x29b   : > { %v5396_v61 = vadd.f32 %v2055_v58, %v7011_v55  ;;  %v1226_v58 = vadd.f32 %v4845_v38, %v5019_v50 }
 0x29e   : > { %v1638_v11 = vpop.f32.mrf.mxu2 }
 0x29f   : > { %v1639_v19 = vadd.f32 %v5122_v22, %v1638_v11  ;;  %v3894_v11 = vld [vmem:[#allocation10 + $0x90] sm:$0xff] }
 0x2a0   : > { %v2056_v17 = vpop.f32.mrf.mxu3  ;;  %2971 = vmatpush.bf16.msrb.mxu1 %v3894_v11 }
 0x2a1   : > { %v5390_v8 = vadd.f32 %v1639_v19, %v4909_v1  ;;  %v2057_v27 = vadd.f32 %v5343_v54, %v2056_v17  ;;  %v4016_v19 = vld [vmem:[%s4399_s8 + $0x140] sm:$0xff] }
 0x2a3   : > { %v5399_v7 = vadd.f32 %v2057_v27, %v7012_v13  ;;  %1680 = vmatmul.bf16.gmra.mxu2 %v1494_v14  ;;  %v1948_v34 = vpack.c.bf16 %v5390_v8, %v5387_v53  ;;  %v5410_v27 = vadd.f32 %v4016_v19, %v1224_v59  ;;  %v4017_v14 = vld [vmem:[%s4399_s8 + $0x148] sm:$0xff] }
 0x2a4   : > { %v5413_v55 = vadd.f32 %v4017_v14, %v1226_v58 }
 0x2a5   : > { %2098 = vmatmul.bf16.gmra.mxu3 %v1948_v34  ;;  %v2402_v1 = vpack.c.bf16 %v5399_v7, %v5396_v61  ;;  %7013 = vst [vmem:[#allocation53_spill] sm:$0xff] %v5410_v27 }
 0x2a6   : > { %v1641_v17 = vpop.f32.mrf.mxu2  ;;  %7014 = vst [vmem:[#allocation56_spill] sm:$0xff] %v5413_v55  ;;  %v1495_v58 = vpack.c.bf16 %v5413_v55, %v5410_v27 }
 0x2a7   : > { %2516 = vmatmul.bf16.gmra.mxu0 %v2402_v1  ;;  %v1642_v13 = vadd.f32 %v5122_v22, %v1641_v17  ;;  %v7016_v17 = vld [vmem:[#allocation60_spill] sm:$0xff] }
 0x2a8   : > { %v2059_v0 = vpop.f32.mrf.mxu3 }
 0x2a9   : > { %v2060_v11 = vadd.f32 %v5343_v54, %v2059_v0  ;;  %v5419_v15 = vadd.f32 %v1642_v13, %v4939_v44  ;;  %v7017_v0 = vld [vmem:[#allocation61_spill] sm:$0xff] }
 0x2ab   : > { %v5428_v19 = vadd.f32 %v2060_v11, %v7016_v17  ;;  %v1231_v11 = vadd.f32 %v4845_v38, %v5053_v24 }
 0x2ae   : > { %v1643_v34 = vpop.f32.mrf.mxu2 }
 0x2af   : > { %v1644_v1 = vadd.f32 %v5122_v22, %v1643_v34  ;;  %v1229_v34 = vadd.f32 %v4845_v38, %v5035_v10 }
 0x2b0   : > { %v2061_v26 = vpop.f32.mrf.mxu3 }
 0x2b1   : > { %v5422_v50 = vadd.f32 %v1644_v1, %v4943_v45  ;;  %v2062_v59 = vadd.f32 %v5343_v54, %v2061_v26  ;;  %v4018_v1 = vld [vmem:[%s4399_s8 + $0x150] sm:$0xff] }
 0x2b3   : > { %7015 = vst [vmem:[#allocation57_spill] sm:$0xff] %v5422_v50  ;;  %v5431_v14 = vadd.f32 %v2062_v59, %v7017_v0  ;;  %1685 = vmatmul.bf16.gmra.mxu2 %v1495_v58  ;;  %v1949_v44 = vpack.c.bf16 %v5422_v50, %v5419_v15  ;;  %v5442_v59 = vadd.f32 %v4018_v1, %v1229_v34  ;;  %v4019_v58 = vld [vmem:[%s4399_s8 + $0x158] sm:$0xff] }
 0x2b4   : > { %v5445_v17 = vadd.f32 %v4019_v58, %v1231_v11  ;;  %v7020_v11 = vld [vmem:[#allocation64_spill] sm:$0xff]  ;;  %v3893_v58 = vld [vmem:[#allocation10 + $0x88] sm:$0xff] }
 0x2b5   : > { %2103 = vmatmul.bf16.gmra.mxu3 %v1949_v44  ;;  %v2403_v45 = vpack.c.bf16 %v5431_v14, %v5428_v19  ;;  %7018 = vst [vmem:[#allocation60_spill] sm:$0xff] %v5442_v59  ;;  %2972 = vmatpush.bf16.msrb.mxu1 %v3893_v58 }
 0x2b6   : > { %v1646_v13 = vpop.f32.mrf.mxu2  ;;  %7019 = vst [vmem:[#allocation61_spill] sm:$0xff] %v5445_v17  ;;  %v1496_v34 = vpack.c.bf16 %v5445_v17, %v5442_v59 }
 0x2b7   : > { %2521 = vmatmul.bf16.gmra.mxu0 %v2403_v45  ;;  %v1647_v0 = vadd.f32 %v5122_v22, %v1646_v13 }
 0x2b8   : > { %v2064_v26 = vpop.f32.mrf.mxu3 }
 0x2b9   : > { %v2065_v55 = vadd.f32 %v5343_v54, %v2064_v26  ;;  %v5451_v50 = vadd.f32 %v1647_v0, %v4973_v9  ;;  %v7021_v26 = vld [vmem:[#allocation65_spill] sm:$0xff] }
 0x2bb   : > { %v5460_v13 = vadd.f32 %v2065_v55, %v7020_v11  ;;  %v1234_v55 = vadd.f32 %v4845_v38, %v5069_v40 }
 0x2be   : > { %v1648_v44 = vpop.f32.mrf.mxu2 }
 0x2bf   : > { %v1649_v45 = vadd.f32 %v5122_v22, %v1648_v44  ;;  %v1236_v44 = vadd.f32 %v4845_v38, %v5087_v12 }
 0x2c0   : > { %v2066_v27 = vpop.f32.mrf.mxu3 }
 0x2c1   : > { %v5454_v10 = vadd.f32 %v1649_v45, %v4976_v48  ;;  %v2067_v24 = vadd.f32 %v5343_v54, %v2066_v27  ;;  %v4020_v45 = vld [vmem:[%s4399_s8 + $0x160] sm:$0xff] }
 0x2c3   : > { %v5463_v1 = vadd.f32 %v2067_v24, %v7021_v26  ;;  %1690 = vmatmul.bf16.gmra.mxu2 %v1496_v34  ;;  %v1950_v9 = vpack.c.bf16 %v5454_v10, %v5451_v50  ;;  %v5474_v24 = vadd.f32 %v4020_v45, %v1234_v55  ;;  %v4021_v34 = vld [vmem:[%s4399_s8 + $0x168] sm:$0xff] }
 0x2c4   : > { %v5477_v11 = vadd.f32 %v4021_v34, %v1236_v44  ;;  %v5504_v34 = vld [vmem:[%s6703_s4] ss:$0 sm:$0xff] }
 0x2c5   : > { %2108 = vmatmul.bf16.gmra.mxu3 %v1950_v9  ;;  %v2404_v48 = vpack.c.bf16 %v5463_v1, %v5460_v13  ;;  %7022 = vst [vmem:[#allocation64_spill] sm:$0xff] %v5474_v24 }
 0x2c6   : > { %v1651_v27 = vpop.f32.mrf.mxu2  ;;  %7023 = vst [vmem:[#allocation65_spill] sm:$0xff] %v5477_v11  ;;  %v1497_v40 = vpack.c.bf16 %v5477_v11, %v5474_v24 }
 0x2c7   : > { %2526 = vmatmul.bf16.gmra.mxu0 %v2404_v48  ;;  %v1652_v26 = vadd.f32 %v5122_v22, %v1651_v27  ;;  %v7025_v27 = vld [vmem:[#allocation68_spill] sm:$0xff] }
 0x2c8   : > { %v2069_v0 = vpop.f32.mrf.mxu3 }
 0x2c9   : > { %v2070_v58 = vadd.f32 %v5343_v54, %v2069_v0  ;;  %v5483_v59 = vadd.f32 %v1652_v26, %v5007_v16  ;;  %v7026_v0 = vld [vmem:[#allocation69_spill] sm:$0xff]  ;;  %v1239_v26 = vadd.f32 %v5504_v34, %v5102_v52  ;;  %v7028_v52 = vld [vmem:[#allocation74_spill] sm:$0xff] }
 0x2cb   : > { %v5492_v55 = vadd.f32 %v2070_v58, %v7025_v27  ;;  %v4023_v58 = vld [vmem:[%s4399_s8 + $0x170] sm:$0xff] }
 0x2ce   : > { %v1653_v9 = vpop.f32.mrf.mxu2 }
 0x2cf   : > { %v1654_v48 = vadd.f32 %v5122_v22, %v1653_v9  ;;  %v1241_v9 = vadd.f32 %v5504_v34, %v5106_v35 }
 0x2d0   : > { %v2071_v17 = vpop.f32.mrf.mxu3 }
 0x2d1   : > { %v5486_v38 = vadd.f32 %v1654_v48, %v5010_v32  ;;  %v2072_v12 = vadd.f32 %v5343_v54, %v2071_v17  ;;  %v5511_v48 = vadd.f32 %v4023_v58, %v1239_v26 }
 0x2d3   : > { %7024 = vst [vmem:[#allocation100_spill] sm:$0xff] %v5486_v38  ;;  %v5495_v44 = vadd.f32 %v2072_v12, %v7026_v0  ;;  %1695 = vmatmul.bf16.gmra.mxu2 %v1497_v40  ;;  %v1951_v16 = vpack.c.bf16 %v5486_v38, %v5483_v59  ;;  %v4024_v12 = vld [vmem:[%s4399_s8 + $0x178] sm:$0xff] }
 0x2d4   : > { %v5514_v40 = vadd.f32 %v4024_v12, %v1241_v9  ;;  %v7029_v9 = vld [vmem:[#allocation72_spill] sm:$0xff]  ;;  %v3892_v12 = vld [vmem:[#allocation10 + $0x80] sm:$0xff] }
 0x2d5   : > { %2113 = vmatmul.bf16.gmra.mxu3 %v1951_v16  ;;  %v2405_v32 = vpack.c.bf16 %v5495_v44, %v5492_v55  ;;  %2973 = vmatpush.bf16.msrb.mxu1 %v3892_v12 }
 0x2d6   : > { %v1656_v45 = vpop.f32.mrf.mxu2  ;;  %7027 = vst [vmem:[#allocation68_spill] sm:$0xff] %v5514_v40  ;;  %v1498_v26 = vpack.c.bf16 %v5514_v40, %v5511_v48 }
 0x2d7   : > { %2531 = vmatmul.bf16.gmra.mxu0 %v2405_v32  ;;  %v1657_v27 = vadd.f32 %v5122_v22, %v1656_v45 }
 0x2d8   : > { %v2074_v17 = vpop.f32.mrf.mxu3 }
 0x2d9   : > { %v2075_v16 = vadd.f32 %v5343_v54, %v2074_v17  ;;  %v5520_v24 = vadd.f32 %v1657_v27, %v5041_v23  ;;  %v7030_v17 = vld [vmem:[#allocation73_spill] sm:$0xff] }
 0x2db   : > { %v5529_v45 = vadd.f32 %v2075_v16, %v7029_v9  ;;  %v1244_v16 = vadd.f32 %v5504_v34, %v5116_v43 }
 0x2de   : > { %v1658_v0 = vpop.f32.mrf.mxu2 }
 0x2df   : > { %v1659_v32 = vadd.f32 %v5122_v22, %v1658_v0 }
 0x2e0   : > { %v2076_v11 = vpop.f32.mrf.mxu3 }
 0x2e1   : > { %v5523_v38 = vadd.f32 %v1659_v32, %v7028_v52  ;;  %v2077_v35 = vadd.f32 %v5343_v54, %v2076_v11  ;;  %v1246_v32 = vadd.f32 %v5504_v34, %v5120_v36  ;;  %v4025_v52 = vld [vmem:[%s4399_s8 + $0x180] sm:$0xff] }
 0x2e3   : > { %v5532_v58 = vadd.f32 %v2077_v35, %v7030_v17  ;;  %1700 = vmatmul.bf16.gmra.mxu2 %v1498_v26  ;;  %v1952_v23 = vpack.c.bf16 %v5523_v38, %v5520_v24  ;;  %v5543_v35 = vadd.f32 %v4025_v52, %v1244_v16  ;;  %v4026_v26 = vld [vmem:[%s4399_s8 + $0x188] sm:$0xff] }
 0x2e4   : > { %v5546_v9 = vadd.f32 %v4026_v26, %v1246_v32 }
 0x2e5   : > { %2118 = vmatmul.bf16.gmra.mxu3 %v1952_v23  ;;  %v2406_v27 = vpack.c.bf16 %v5532_v58, %v5529_v45  ;;  %7031 = vst [vmem:[#allocation69_spill] sm:$0xff] %v5543_v35 }
 0x2e6   : > { %v1661_v11 = vpop.f32.mrf.mxu2  ;;  %7032 = vst [vmem:[#allocation74_spill] sm:$0xff] %v5546_v9  ;;  %v1499_v32 = vpack.c.bf16 %v5546_v9, %v5543_v35 }
 0x2e7   : > { %2536 = vmatmul.bf16.gmra.mxu0 %v2406_v27  ;;  %v1662_v17 = vadd.f32 %v5122_v22, %v1661_v11  ;;  %v7035_v11 = vld [vmem:[#allocation77_spill] sm:$0xff] }
 0x2e8   : > { %v2079_v0 = vpop.f32.mrf.mxu3 }
 0x2e9   : > { %v2080_v12 = vadd.f32 %v5343_v54, %v2079_v0  ;;  %v5552_v43 = vadd.f32 %v1662_v17, %v5075_v29  ;;  %v7036_v0 = vld [vmem:[#allocation17_spill] sm:$0xff] }
 0x2eb   : > { %7033 = vst [vmem:[#allocation72_spill] sm:$0xff] %v5552_v43  ;;  %v5561_v52 = vadd.f32 %v2080_v12, %v7035_v11  ;;  %v1251_v12 = vadd.f32 %v5504_v34, %v5146_v57 }
 0x2ee   : > { %v1663_v23 = vpop.f32.mrf.mxu2 }
 0x2ef   : > { %v1664_v27 = vadd.f32 %v5122_v22, %v1663_v23  ;;  %v1249_v23 = vadd.f32 %v5504_v34, %v5134_v62 }
 0x2f0   : > { %v2081_v40 = vpop.f32.mrf.mxu3 }
 0x2f1   : > { %v5555_v36 = vadd.f32 %v1664_v27, %v5078_v3  ;;  %v2082_v16 = vadd.f32 %v5343_v54, %v2081_v40  ;;  %v4027_v27 = vld [vmem:[%s4399_s8 + $0x190] sm:$0xff] }
 0x2f3   : > { %7034 = vst [vmem:[#allocation73_spill] sm:$0xff] %v5555_v36  ;;  %v5564_v26 = vadd.f32 %v2082_v16, %v7036_v0  ;;  %1705 = vmatmul.bf16.gmra.mxu2 %v1499_v32  ;;  %v1953_v29 = vpack.c.bf16 %v5555_v36, %v5552_v43  ;;  %v5575_v16 = vadd.f32 %v4027_v27, %v1249_v23  ;;  %v4028_v32 = vld [vmem:[%s4399_s8 + $0x198] sm:$0xff]  ;;  %v7041_v43 = vld [vmem:[#allocation21_spill] sm:$0xff] }
 0x2f4   : > { %v5578_v11 = vadd.f32 %v4028_v32, %v1251_v12  ;;  %v7039_v36 = vld [vmem:[#allocation20_spill] sm:$0xff] }
 0x2f5   : > { %2123 = vmatmul.bf16.gmra.mxu3 %v1953_v29  ;;  %v2407_v3 = vpack.c.bf16 %v5564_v26, %v5561_v52  ;;  %7037 = vst [vmem:[#allocation77_spill] sm:$0xff] %v5575_v16 }
 0x2f6   : > { %v1666_v17 = vpop.f32.mrf.mxu2  ;;  %7038 = vst [vmem:[#allocation17_spill] sm:$0xff] %v5578_v11  ;;  %v1500_v12 = vpack.c.bf16 %v5578_v11, %v5575_v16 }
 0x2f7   : > { %2541 = vmatmul.bf16.gmra.mxu0 %v2407_v3  ;;  %v1667_v0 = vadd.f32 %v5122_v22, %v1666_v17  ;;  %v7043_v17 = vld [vmem:[#allocation79_spill] sm:$0xff] }
 0x2f8   : > { %v2084_v40 = vpop.f32.mrf.mxu3 }
 0x2f9   : > { %v2085_v9 = vadd.f32 %v5343_v54, %v2084_v40  ;;  %v5584_v62 = vadd.f32 %v1667_v0, %v7039_v36  ;;  %v7044_v40 = vld [vmem:[#allocation80_spill] sm:$0xff] }
 0x2fb   : > { %7040 = vst [vmem:[#allocation20_spill] sm:$0xff] %v5584_v62  ;;  %v5593_v27 = vadd.f32 %v2085_v9, %v7043_v17  ;;  %v1256_v9 = vadd.f32 %v5504_v34, %v5171_v30 }
 0x2fe   : > { %v1668_v29 = vpop.f32.mrf.mxu2 }
 0x2ff   : > { %v1669_v3 = vadd.f32 %v5122_v22, %v1668_v29  ;;  %v1254_v29 = vadd.f32 %v5504_v34, %v5166_v5  ;;  %v7050_v5 = vld [vmem:[#allocation25_spill] sm:$0xff] }
 0x300   : > { %v2086_v35 = vpop.f32.mrf.mxu3 }
 0x301   : > { %v5587_v57 = vadd.f32 %v1669_v3, %v7041_v43  ;;  %v2087_v23 = vadd.f32 %v5343_v54, %v2086_v35  ;;  %v4029_v3 = vld [vmem:[%s4399_s8 + $0x1a0] sm:$0xff] }
 0x303   : > { %7042 = vst [vmem:[#allocation21_spill] sm:$0xff] %v5587_v57  ;;  %v5596_v32 = vadd.f32 %v2087_v23, %v7044_v40  ;;  %1710 = vmatmul.bf16.gmra.mxu2 %v1500_v12  ;;  %v1954_v36 = vpack.c.bf16 %v5587_v57, %v5584_v62  ;;  %v5607_v23 = vadd.f32 %v4029_v3, %v1254_v29  ;;  %v4030_v12 = vld [vmem:[%s4399_s8 + $0x1a8] sm:$0xff]  ;;  %v7048_v57 = vld [vmem:[#allocation24_spill] sm:$0xff] }
 0x304   : > { %v5610_v17 = vadd.f32 %v4030_v12, %v1256_v9  ;;  %v7052_v9 = vld [vmem:[#allocation81_spill] sm:$0xff]  ;;  %v7054_v3 = vld [vmem:[#allocation82_spill] sm:$0xff] }
 0x305   : > { %7045 = vst [vmem:[#allocation79_spill] sm:$0xff] %v5596_v32  ;;  %2128 = vmatmul.bf16.gmra.mxu3 %v1954_v36  ;;  %v2408_v43 = vpack.c.bf16 %v5596_v32, %v5593_v27 }
 0x306   : > { %v1671_v0 = vpop.f32.mrf.mxu2  ;;  %7046 = vst [vmem:[#allocation80_spill] sm:$0xff] %v5607_v23  ;;  %v1501_v29 = vpack.c.bf16 %v5610_v17, %v5607_v23 }
 0x307   : > { %2546 = vmatmul.bf16.gmra.mxu0 %v2408_v43  ;;  %7047 = vst [vmem:[#allocation101_spill] sm:$0xff] %v5610_v17  ;;  %v1672_v40 = vadd.f32 %v5122_v22, %v1671_v0 }
 0x308   : > { %v2089_v35 = vpop.f32.mrf.mxu3 }
 0x309   : > { %v2090_v11 = vadd.f32 %v5343_v54, %v2089_v35  ;;  %v5616_v62 = vadd.f32 %v1672_v40, %v7048_v57 }
 0x30b   : > { %7049 = vst [vmem:[#allocation24_spill] sm:$0xff] %v5616_v62  ;;  %v5625_v0 = vadd.f32 %v2090_v11, %v7052_v9  ;;  %v1259_v11 = vadd.f32 %v5504_v34, %v5192_v41 }
 0x30d   : > { %7053 = vst [vmem:[#allocation81_spill] sm:$0xff] %v5625_v0 }
 0x30e   : > { %v1673_v36 = vpop.f32.mrf.mxu2 }
 0x30f   : > { %v1674_v43 = vadd.f32 %v5122_v22, %v1673_v36  ;;  %v5634_v36 = vld [vmem:[#allocation9 + $0x2] ss:$0 sm:$0xff] }
 0x310   : > { %v2091_v16 = vpop.f32.mrf.mxu3 }
 0x311   : > { %v5619_v32 = vadd.f32 %v1674_v43, %v7050_v5  ;;  %v2092_v30 = vadd.f32 %v5343_v54, %v2091_v16  ;;  %v1261_v43 = vadd.f32 %v5504_v34, %v5204_v33 }
 0x313   : > { %7051 = vst [vmem:[#allocation25_spill] sm:$0xff] %v5619_v32  ;;  %v5628_v35 = vadd.f32 %v2092_v30, %v7054_v3  ;;  %1715 = vmatmul.bf16.gmra.mxu2 %v1501_v29  ;;  %v1955_v57 = vpack.c.bf16 %v5619_v32, %v5616_v62  ;;  %v4031_v29 = vld [vmem:[%s4399_s8 + $0x1b0] sm:$0xff]  ;;  %v4032_v3 = vld [vmem:[%s4399_s8 + $0x1b8] sm:$0xff] }
 0x314   : > { %v2512_v12 = vpop.f32.mrf.mxu0  ;;  %v5642_v9 = vadd.f32 %v4031_v29, %v1259_v11  ;;  %v7058_v62 = vld [vmem:[#allocation18_spill] sm:$0xff]  ;;  %v7060_v29 = vld [vmem:[#allocation28_spill] sm:$0xff] }
 0x315   : > { %7055 = vst [vmem:[#allocation82_spill] sm:$0xff] %v5628_v35  ;;  %2133 = vmatmul.bf16.gmra.mxu3 %v1955_v57  ;;  %v2409_v16 = vpack.c.bf16 %v5628_v35, %v5625_v0  ;;  %v2513_v30 = vadd.f32 %v5634_v36, %v2512_v12  ;;  %v5645_v57 = vadd.f32 %v4032_v3, %v1261_v43  ;;  %v7059_v35 = vld [vmem:[#allocation19_spill] sm:$0xff] }
 0x316   : > { %v1676_v40 = vpop.f32.mrf.mxu2  ;;  %7056 = vst [vmem:[#allocation102_spill] sm:$0xff] %v5642_v9 }
 0x317   : > { %2551 = vmatmul.bf16.gmra.mxu0 %v2409_v16  ;;  %7057 = vst [vmem:[#allocation103_spill] sm:$0xff] %v5645_v57  ;;  %v1677_v23 = vadd.f32 %v5122_v22, %v1676_v40  ;;  %v5650_v41 = vadd.f32 %v2513_v30, %v7058_v62  ;;  %v1502_v43 = vpack.c.bf16 %v5645_v57, %v5642_v9  ;;  %v7062_v40 = vld [vmem:[#allocation29_spill] sm:$0xff] }
 0x318   : > { %v2094_v5 = vpop.f32.mrf.mxu3 }
 0x319   : > { %v2095_v33 = vadd.f32 %v5343_v54, %v2094_v5  ;;  %v5660_v3 = vadd.f32 %v1677_v23, %v7060_v29 }
 0x31b   : > { %7061 = vst [vmem:[#allocation18_spill] sm:$0xff] %v5660_v3 }
 0x31c   : > { %v2514_v17 = vpop.f32.mrf.mxu0 }
 0x31d   : > { %v2515_v16 = vadd.f32 %v5634_v36, %v2514_v17 }
 0x31e   : > { %v1678_v32 = vpop.f32.mrf.mxu2 }
 0x31f   : > { %v5654_v0 = vadd.f32 %v2515_v16, %v7059_v35  ;;  %v1679_v12 = vadd.f32 %v5122_v22, %v1678_v32  ;;  %v7064_v35 = vld [vmem:[#allocation83_spill] sm:$0xff]  ;;  %v7066_v32 = vld [vmem:[#allocation84_spill] sm:$0xff] }
 0x320   : > { %v2096_v11 = vpop.f32.mrf.mxu3  ;;  %v5669_v30 = vadd.f32 %v2095_v33, %v7064_v35  ;;  %v1264_v33 = vadd.f32 %v5504_v34, %v5216_v21 }
 0x321   : > { %v2864_v17 = vpack.c.bf16 %v5654_v0, %v5650_v41  ;;  %v5665_v62 = vadd.f32 %v1679_v12, %v7062_v40  ;;  %v2097_v5 = vadd.f32 %v5343_v54, %v2096_v11  ;;  %v1266_v11 = vadd.f32 %v5504_v34, %v5238_v20 }
 0x322   : > { %7065 = vst [vmem:[#allocation28_spill] sm:$0xff] %v5669_v30 }
 0x323   : > { %7063 = vst [vmem:[#allocation19_spill] sm:$0xff] %v5665_v62  ;;  %v5672_v16 = vadd.f32 %v2097_v5, %v7066_v32  ;;  %1720 = vmatmul.bf16.gmra.mxu2 %v1502_v43  ;;  %2974 = vmatmul.bf16.vlgmr.msrb.gmra.mxu1 %v2864_v17  ;;  %v1956_v23 = vpack.c.bf16 %v5665_v62, %v5660_v3  ;;  %v4033_v17 = vld [vmem:[%s4399_s8 + $0x1c0] sm:$0xff]  ;;  %v4034_v32 = vld [vmem:[%s4399_s8 + $0x1c8] sm:$0xff] }
 0x324   : > { %v2517_v29 = vpop.f32.mrf.mxu0  ;;  %v5684_v35 = vadd.f32 %v4033_v17, %v1264_v33  ;;  %v5687_v57 = vadd.f32 %v4034_v32, %v1266_v11  ;;  %v7070_v3 = vld [vmem:[#allocation22_spill] sm:$0xff]  ;;  %v7071_v17 = vld [vmem:[#allocation32_spill] sm:$0xff] }
 0x325   : > { %7067 = vst [vmem:[#allocation29_spill] sm:$0xff] %v5672_v16  ;;  %2138 = vmatmul.bf16.gmra.mxu3 %v1956_v23  ;;  %v2410_v12 = vpack.c.bf16 %v5672_v16, %v5669_v30  ;;  %v2518_v43 = vadd.f32 %v5634_v36, %v2517_v29 }
 0x326   : > { %v1681_v40 = vpop.f32.mrf.mxu2  ;;  %7068 = vst [vmem:[#allocation83_spill] sm:$0xff] %v5684_v35  ;;  %v1503_v11 = vpack.c.bf16 %v5687_v57, %v5684_v35 }
 0x327   : > { %2556 = vmatmul.bf16.gmra.mxu0 %v2410_v12  ;;  %7069 = vst [vmem:[#allocation84_spill] sm:$0xff] %v5687_v57  ;;  %v1682_v9 = vadd.f32 %v5122_v22, %v1681_v40  ;;  %v5692_v21 = vadd.f32 %v2518_v43, %v5159_v37  ;;  %v7073_v40 = vld [vmem:[#allocation33_spill] sm:$0xff] }
 0x328   : > { %v2099_v5 = vpop.f32.mrf.mxu3 }
 0x329   : > { %v2100_v20 = vadd.f32 %v5343_v54, %v2099_v5  ;;  %v5702_v32 = vadd.f32 %v1682_v9, %v7071_v17 }
 0x32b   : > { %7072 = vst [vmem:[#allocation22_spill] sm:$0xff] %v5702_v32 }
 0x32c   : > { %v2519_v23 = vpop.f32.mrf.mxu0 }
 0x32d   : > { %v2520_v12 = vadd.f32 %v5634_v36, %v2519_v23 }
 0x32e   : > { %v1683_v62 = vpop.f32.mrf.mxu2 }
 0x32f   : > { %v5696_v16 = vadd.f32 %v2520_v12, %v7070_v3  ;;  %v1684_v29 = vadd.f32 %v5122_v22, %v1683_v62  ;;  %v7075_v3 = vld [vmem:[#allocation85_spill] sm:$0xff]  ;;  %v7077_v62 = vld [vmem:[#allocation86_spill] sm:$0xff] }
 0x330   : > { %v2101_v33 = vpop.f32.mrf.mxu3  ;;  %v5711_v43 = vadd.f32 %v2100_v20, %v7075_v3  ;;  %v1269_v20 = vadd.f32 %v5504_v34, %v5243_v56 }
 0x331   : > { %v5705_v23 = vadd.f32 %v1684_v29, %v7073_v40  ;;  %v2102_v37 = vadd.f32 %v5343_v54, %v2101_v33  ;;  %v2865_v5 = vpack.c.bf16 %v5696_v16, %v5692_v21  ;;  %v1271_v40 = vadd.f32 %v5504_v34, %v5262_v60 }
 0x332   : > { %7076 = vst [vmem:[#allocation33_spill] sm:$0xff] %v5711_v43 }
 0x333   : > { %7074 = vst [vmem:[#allocation32_spill] sm:$0xff] %v5705_v23  ;;  %v5714_v12 = vadd.f32 %v2102_v37, %v7077_v62  ;;  %1725 = vmatmul.bf16.gmra.mxu2 %v1503_v11  ;;  %2979 = vmatmul.bf16.gmra.mxu1 %v2865_v5  ;;  %v1957_v9 = vpack.c.bf16 %v5705_v23, %v5702_v32  ;;  %v4035_v5 = vld [vmem:[%s4399_s8 + $0x1d0] sm:$0xff]  ;;  %v4036_v62 = vld [vmem:[%s4399_s8 + $0x1d8] sm:$0xff] }
 0x334   : > { %v2522_v29 = vpop.f32.mrf.mxu0  ;;  %v5726_v3 = vadd.f32 %v4035_v5, %v1269_v20  ;;  %v5729_v57 = vadd.f32 %v4036_v62, %v1271_v40  ;;  %v7081_v32 = vld [vmem:[#allocation26_spill] sm:$0xff]  ;;  %v7083_v5 = vld [vmem:[#allocation36_spill] sm:$0xff] }
 0x335   : > { %7078 = vst [vmem:[#allocation85_spill] sm:$0xff] %v5714_v12  ;;  %2143 = vmatmul.bf16.gmra.mxu3 %v1957_v9  ;;  %v2411_v33 = vpack.c.bf16 %v5714_v12, %v5711_v43  ;;  %v2523_v11 = vadd.f32 %v5634_v36, %v2522_v29  ;;  %v7082_v12 = vld [vmem:[#allocation27_spill] sm:$0xff] }
 0x336   : > { %v1686_v17 = vpop.f32.mrf.mxu2  ;;  %7079 = vst [vmem:[#allocation86_spill] sm:$0xff] %v5726_v3  ;;  %v1504_v40 = vpack.c.bf16 %v5729_v57, %v5726_v3 }
 0x337   : > { %2561 = vmatmul.bf16.gmra.mxu0 %v2411_v33  ;;  %7080 = vst [vmem:[#allocation104_spill] sm:$0xff] %v5729_v57  ;;  %v1687_v35 = vadd.f32 %v5122_v22, %v1686_v17  ;;  %v5734_v56 = vadd.f32 %v2523_v11, %v7081_v32  ;;  %v7085_v17 = vld [vmem:[#allocation37_spill] sm:$0xff] }
 0x338   : > { %v2104_v37 = vpop.f32.mrf.mxu3 }
 0x339   : > { %v2105_v60 = vadd.f32 %v5343_v54, %v2104_v37  ;;  %v5744_v62 = vadd.f32 %v1687_v35, %v7083_v5 }
 0x33b   : > { %7084 = vst [vmem:[#allocation26_spill] sm:$0xff] %v5744_v62 }
 0x33c   : > { %v2524_v9 = vpop.f32.mrf.mxu0 }
 0x33d   : > { %v2525_v33 = vadd.f32 %v5634_v36, %v2524_v9 }
 0x33e   : > { %v1688_v23 = vpop.f32.mrf.mxu2 }
 0x33f   : > { %v5738_v43 = vadd.f32 %v2525_v33, %v7082_v12  ;;  %v1689_v29 = vadd.f32 %v5122_v22, %v1688_v23  ;;  %v7087_v12 = vld [vmem:[#allocation23_spill] sm:$0xff] }
 0x340   : > { %v2106_v20 = vpop.f32.mrf.mxu3  ;;  %v5753_v11 = vadd.f32 %v2105_v60, %v7087_v12  ;;  %v7089_v23 = vld [vmem:[#allocation87_spill] sm:$0xff]  ;;  %v1274_v60 = vadd.f32 %v5504_v34, %v5282_v6 }
 0x341   : > { %v5747_v9 = vadd.f32 %v1689_v29, %v7085_v17  ;;  %v2107_v32 = vadd.f32 %v5343_v54, %v2106_v20  ;;  %v2866_v37 = vpack.c.bf16 %v5738_v43, %v5734_v56  ;;  %v1276_v17 = vadd.f32 %v5504_v34, %v5290_v18 }
 0x342   : > { %7088 = vst [vmem:[#allocation36_spill] sm:$0xff] %v5753_v11 }
 0x343   : > { %7086 = vst [vmem:[#allocation27_spill] sm:$0xff] %v5747_v9  ;;  %v5756_v33 = vadd.f32 %v2107_v32, %v7089_v23  ;;  %1730 = vmatmul.bf16.gmra.mxu2 %v1504_v40  ;;  %2984 = vmatmul.bf16.gmra.mxu1 %v2866_v37  ;;  %v1958_v35 = vpack.c.bf16 %v5747_v9, %v5744_v62  ;;  %v4037_v37 = vld [vmem:[%s4399_s8 + $0x1e0] sm:$0xff]  ;;  %v4038_v23 = vld [vmem:[%s4399_s8 + $0x1e8] sm:$0xff] }
 0x344   : > { %v2527_v29 = vpop.f32.mrf.mxu0  ;;  %v5768_v12 = vadd.f32 %v4037_v37, %v1274_v60  ;;  %v5771_v57 = vadd.f32 %v4038_v23, %v1276_v17  ;;  %v7093_v62 = vld [vmem:[#allocation30_spill] sm:$0xff]  ;;  %v7095_v37 = vld [vmem:[#allocation40_spill] sm:$0xff] }
 0x345   : > { %7090 = vst [vmem:[#allocation37_spill] sm:$0xff] %v5756_v33  ;;  %2148 = vmatmul.bf16.gmra.mxu3 %v1958_v35  ;;  %v2412_v20 = vpack.c.bf16 %v5756_v33, %v5753_v11  ;;  %v2528_v40 = vadd.f32 %v5634_v36, %v2527_v29  ;;  %v7094_v33 = vld [vmem:[#allocation31_spill] sm:$0xff] }
 0x346   : > { %v1691_v5 = vpop.f32.mrf.mxu2  ;;  %7091 = vst [vmem:[#allocation23_spill] sm:$0xff] %v5768_v12  ;;  %v1505_v17 = vpack.c.bf16 %v5771_v57, %v5768_v12 }
 0x347   : > { %2566 = vmatmul.bf16.gmra.mxu0 %v2412_v20  ;;  %7092 = vst [vmem:[#allocation87_spill] sm:$0xff] %v5771_v57  ;;  %v1692_v3 = vadd.f32 %v5122_v22, %v1691_v5  ;;  %v5776_v6 = vadd.f32 %v2528_v40, %v7093_v62  ;;  %v7097_v5 = vld [vmem:[#allocation41_spill] sm:$0xff] }
 0x348   : > { %v2109_v32 = vpop.f32.mrf.mxu3 }
 0x349   : > { %v2110_v18 = vadd.f32 %v5343_v54, %v2109_v32  ;;  %v5786_v23 = vadd.f32 %v1692_v3, %v7095_v37 }
 0x34b   : > { %7096 = vst [vmem:[#allocation30_spill] sm:$0xff] %v5786_v23 }
 0x34c   : > { %v2529_v35 = vpop.f32.mrf.mxu0 }
 0x34d   : > { %v2530_v20 = vadd.f32 %v5634_v36, %v2529_v35 }
 0x34e   : > { %v1693_v9 = vpop.f32.mrf.mxu2 }
 0x34f   : > { %v5780_v11 = vadd.f32 %v2530_v20, %v7094_v33  ;;  %v1694_v29 = vadd.f32 %v5122_v22, %v1693_v9  ;;  %v7099_v33 = vld [vmem:[#allocation88_spill] sm:$0xff]  ;;  %v7101_v9 = vld [vmem:[#allocation89_spill] sm:$0xff] }
 0x350   : > { %v2111_v60 = vpop.f32.mrf.mxu3  ;;  %v5795_v40 = vadd.f32 %v2110_v18, %v7099_v33  ;;  %v1279_v18 = vadd.f32 %v5504_v34, %v5310_v49 }
 0x351   : > { %v5789_v35 = vadd.f32 %v1694_v29, %v7097_v5  ;;  %v2112_v62 = vadd.f32 %v5343_v54, %v2111_v60  ;;  %v2867_v32 = vpack.c.bf16 %v5780_v11, %v5776_v6  ;;  %v1281_v5 = vadd.f32 %v5504_v34, %v5324_v28  ;;  %v7105_v34 = vld [vmem:[#allocation34_spill] sm:$0xff] }
 0x352   : > { %7100 = vst [vmem:[#allocation40_spill] sm:$0xff] %v5795_v40 }
 0x353   : > { %7098 = vst [vmem:[#allocation31_spill] sm:$0xff] %v5789_v35  ;;  %v5798_v20 = vadd.f32 %v2112_v62, %v7101_v9  ;;  %1735 = vmatmul.bf16.gmra.mxu2 %v1505_v17  ;;  %2989 = vmatmul.bf16.gmra.mxu1 %v2867_v32  ;;  %v1959_v3 = vpack.c.bf16 %v5789_v35, %v5786_v23  ;;  %v4039_v32 = vld [vmem:[%s4399_s8 + $0x1f0] sm:$0xff]  ;;  %v4040_v9 = vld [vmem:[%s4399_s8 + $0x1f8] sm:$0xff] }
 0x354   : > { %v2532_v29 = vpop.f32.mrf.mxu0  ;;  %v5810_v33 = vadd.f32 %v4039_v32, %v1279_v18  ;;  %v5813_v57 = vadd.f32 %v4040_v9, %v1281_v5  ;;  %v7108_v9 = vld [vmem:[#allocation46_spill] sm:$0xff] }
 0x355   : > { %7102 = vst [vmem:[#allocation41_spill] sm:$0xff] %v5798_v20  ;;  %2153 = vmatmul.bf16.gmra.mxu3 %v1959_v3  ;;  %v2413_v60 = vpack.c.bf16 %v5798_v20, %v5795_v40  ;;  %v2533_v17 = vadd.f32 %v5634_v36, %v2532_v29  ;;  %v5824_v29 = vld [vmem:[#allocation9 + $0x1] ss:$0 sm:$0xff]  ;;  %v7142_v20 = vld [vmem:[#allocation59_spill] sm:$0xff] }
 0x356   : > { %v1696_v37 = vpop.f32.mrf.mxu2  ;;  %7103 = vst [vmem:[#allocation88_spill] sm:$0xff] %v5810_v33  ;;  %v1506_v32 = vpack.c.bf16 %v5813_v57, %v5810_v33 }
 0x357   : > { %2571 = vmatmul.bf16.gmra.mxu0 %v2413_v60  ;;  %7104 = vst [vmem:[#allocation89_spill] sm:$0xff] %v5813_v57  ;;  %v1697_v12 = vadd.f32 %v5122_v22, %v1696_v37  ;;  %v5818_v49 = vadd.f32 %v2533_v17, %v5229_v31  ;;  %v7106_v22 = vld [vmem:[#allocation45_spill] sm:$0xff]  ;;  %v7110_v17 = vld [vmem:[#allocation90_spill] sm:$0xff] }
 0x358   : > { %v2114_v62 = vpop.f32.mrf.mxu3 }
 0x359   : > { %v2115_v28 = vadd.f32 %v5343_v54, %v2114_v62  ;;  %v5830_v37 = vadd.f32 %v1697_v12, %v7106_v22 }
 0x35b   : > { %7107 = vst [vmem:[#allocation34_spill] sm:$0xff] %v5830_v37 }
 0x35c   : > { %v2534_v3 = vpop.f32.mrf.mxu0 }
 0x35d   : > { %v2535_v60 = vadd.f32 %v5634_v36, %v2534_v3 }
 0x35e   : > { %v1698_v35 = vpop.f32.mrf.mxu2 }
 0x35f   : > { %v5822_v23 = vadd.f32 %v2535_v60, %v7105_v34  ;;  %v1699_v18 = vadd.f32 %v5824_v29, %v1698_v35  ;;  %v5839_v60 = vadd.f32 %v2115_v28, %v7110_v17  ;;  %v7112_v34 = vld [vmem:[#allocation91_spill] sm:$0xff] }
 0x360   : > { %v2116_v5 = vpop.f32.mrf.mxu3 }
 0x361   : > { %v5833_v3 = vadd.f32 %v1699_v18, %v7108_v9  ;;  %v2117_v31 = vadd.f32 %v5343_v54, %v2116_v5  ;;  %v2868_v62 = vpack.c.bf16 %v5822_v23, %v5818_v49  ;;  %7111 = vst [vmem:[#allocation46_spill] sm:$0xff] %v5839_v60 }
 0x363   : > { %7109 = vst [vmem:[#allocation45_spill] sm:$0xff] %v5833_v3  ;;  %v5842_v35 = vadd.f32 %v2117_v31, %v7112_v34  ;;  %1740 = vmatmul.bf16.gmra.mxu2 %v1506_v32  ;;  %2994 = vmatmul.bf16.gmra.mxu1 %v2868_v62  ;;  %v1960_v12 = vpack.c.bf16 %v5833_v3, %v5830_v37  ;;  %v7115_v37 = vld [vmem:[#allocation47_spill] sm:$0xff] }
 0x364   : > { %v2537_v22 = vpop.f32.mrf.mxu0 }
 0x365   : > { %7113 = vst [vmem:[#allocation90_spill] sm:$0xff] %v5842_v35  ;;  %2158 = vmatmul.bf16.gmra.mxu3 %v1960_v12  ;;  %v2414_v18 = vpack.c.bf16 %v5842_v35, %v5839_v60  ;;  %v2538_v57 = vadd.f32 %v5634_v36, %v2537_v22  ;;  %v7114_v12 = vld [vmem:[#allocation38_spill] sm:$0xff]  ;;  %v7117_v22 = vld [vmem:[#allocation48_spill] sm:$0xff] }
 0x366   : > { %v1701_v5 = vpop.f32.mrf.mxu2 }
 0x367   : > { %2576 = vmatmul.bf16.gmra.mxu0 %v2414_v18  ;;  %v1702_v17 = vadd.f32 %v5824_v29, %v1701_v5  ;;  %v5852_v62 = vadd.f32 %v2538_v57, %v5253_v39  ;;  %v7119_v57 = vld [vmem:[#allocation35_spill] sm:$0xff] }
 0x368   : > { %v2119_v9 = vpop.f32.mrf.mxu3 }
 0x369   : > { %v2120_v34 = vadd.f32 %v5343_v54, %v2119_v9  ;;  %v5860_v35 = vadd.f32 %v1702_v17, %v7115_v37  ;;  %v7121_v9 = vld [vmem:[#allocation92_spill] sm:$0xff] }
 0x36b   : > { %7116 = vst [vmem:[#allocation91_spill] sm:$0xff] %v5860_v35 }
 0x36c   : > { %v2539_v28 = vpop.f32.mrf.mxu0 }
 0x36d   : > { %v2540_v31 = vadd.f32 %v5634_v36, %v2539_v28  ;;  %v5869_v28 = vadd.f32 %v2120_v34, %v7119_v57 }
 0x36e   : > { %v1703_v32 = vpop.f32.mrf.mxu2 }
 0x36f   : > { %v5856_v33 = vadd.f32 %v2540_v31, %v7114_v12  ;;  %v1704_v3 = vadd.f32 %v5824_v29, %v1703_v32  ;;  %7120 = vst [vmem:[#allocation47_spill] sm:$0xff] %v5869_v28 }
 0x370   : > { %v2121_v18 = vpop.f32.mrf.mxu3 }
 0x371   : > { %v5863_v60 = vadd.f32 %v1704_v3, %v7117_v22  ;;  %v2122_v5 = vadd.f32 %v5343_v54, %v2121_v18  ;;  %v2869_v39 = vpack.c.bf16 %v5856_v33, %v5852_v62 }
 0x373   : > { %7118 = vst [vmem:[#allocation38_spill] sm:$0xff] %v5863_v60  ;;  %v5872_v31 = vadd.f32 %v2122_v5, %v7121_v9  ;;  %2999 = vmatmul.bf16.gmra.mxu1 %v2869_v39  ;;  %v1961_v32 = vpack.c.bf16 %v5863_v60, %v5860_v35  ;;  %v7123_v35 = vld [vmem:[#allocation50_spill] sm:$0xff] }
 0x374   : > { %v2542_v37 = vpop.f32.mrf.mxu0 }
 0x375   : > { %7122 = vst [vmem:[#allocation48_spill] sm:$0xff] %v5872_v31  ;;  %2163 = vmatmul.bf16.gmra.mxu3 %v1961_v32  ;;  %v2415_v3 = vpack.c.bf16 %v5872_v31, %v5869_v28  ;;  %v2543_v18 = vadd.f32 %v5634_v36, %v2542_v37  ;;  %v7125_v37 = vld [vmem:[#allocation51_spill] sm:$0xff] }
 0x376   : > { %v1706_v17 = vpop.f32.mrf.mxu2 }
 0x377   : > { %2581 = vmatmul.bf16.gmra.mxu0 %v2415_v3  ;;  %v1707_v34 = vadd.f32 %v5824_v29, %v1706_v17  ;;  %v5882_v39 = vadd.f32 %v2543_v18, %v5275_v51 }
 0x378   : > { %v2124_v12 = vpop.f32.mrf.mxu3 }
 0x379   : > { %v2125_v9 = vadd.f32 %v5343_v54, %v2124_v12  ;;  %v5890_v31 = vadd.f32 %v1707_v34, %v7123_v35  ;;  %v7128_v12 = vld [vmem:[#allocation39_spill] sm:$0xff] }
 0x37b   : > { %7124 = vst [vmem:[#allocation35_spill] sm:$0xff] %v5890_v31  ;;  %v5899_v18 = vadd.f32 %v2125_v9, %v5268_v46 }
 0x37c   : > { %v2544_v22 = vpop.f32.mrf.mxu0 }
 0x37d   : > { %v2545_v5 = vadd.f32 %v5634_v36, %v2544_v22  ;;  %7127 = vst [vmem:[#allocation50_spill] sm:$0xff] %v5899_v18 }
 0x37e   : > { %v1708_v57 = vpop.f32.mrf.mxu2 }
 0x37f   : > { %v5886_v32 = vadd.f32 %v2545_v5, %v5278_v63  ;;  %v1709_v60 = vadd.f32 %v5824_v29, %v1708_v57 }
 0x380   : > { %v2126_v3 = vpop.f32.mrf.mxu3 }
 0x381   : > { %v5893_v28 = vadd.f32 %v1709_v60, %v7125_v37  ;;  %v2127_v17 = vadd.f32 %v5343_v54, %v2126_v3  ;;  %v2870_v51 = vpack.c.bf16 %v5886_v32, %v5882_v39 }
 0x383   : > { %7126 = vst [vmem:[#allocation92_spill] sm:$0xff] %v5893_v28  ;;  %v5902_v63 = vadd.f32 %v2127_v17, %v7128_v12  ;;  %3004 = vmatmul.bf16.gmra.mxu1 %v2870_v51  ;;  %v1962_v22 = vpack.c.bf16 %v5893_v28, %v5890_v31  ;;  %v7130_v12 = vld [vmem:[#allocation93_spill] sm:$0xff]  ;;  %v7131_v31 = vld [vmem:[#allocation54_spill] sm:$0xff] }
 0x384   : > { %v2547_v35 = vpop.f32.mrf.mxu0 }
 0x385   : > { %7129 = vst [vmem:[#allocation51_spill] sm:$0xff] %v5902_v63  ;;  %2168 = vmatmul.bf16.gmra.mxu3 %v1962_v22  ;;  %v2416_v60 = vpack.c.bf16 %v5902_v63, %v5899_v18  ;;  %v2548_v57 = vadd.f32 %v5634_v36, %v2547_v35  ;;  %v7133_v35 = vld [vmem:[#allocation55_spill] sm:$0xff] }
 0x386   : > { %v1711_v34 = vpop.f32.mrf.mxu2 }
 0x387   : > { %2586 = vmatmul.bf16.gmra.mxu0 %v2416_v60  ;;  %v1712_v46 = vadd.f32 %v5824_v29, %v1711_v34  ;;  %v5912_v17 = vadd.f32 %v2548_v57, %v5301_v4  ;;  %v7135_v57 = vld [vmem:[#allocation42_spill] sm:$0xff] }
 0x388   : > { %v2129_v5 = vpop.f32.mrf.mxu3 }
 0x389   : > { %v2130_v51 = vadd.f32 %v5343_v54, %v2129_v5  ;;  %v5920_v63 = vadd.f32 %v1712_v46, %v7131_v31  ;;  %v7137_v5 = vld [vmem:[#allocation43_spill] sm:$0xff] }
 0x38b   : > { %7132 = vst [vmem:[#allocation39_spill] sm:$0xff] %v5920_v63 }
 0x38c   : > { %v2549_v3 = vpop.f32.mrf.mxu0 }
 0x38d   : > { %v2550_v9 = vadd.f32 %v5634_v36, %v2549_v3  ;;  %v5929_v3 = vadd.f32 %v2130_v51, %v7135_v57 }
 0x38e   : > { %v1713_v37 = vpop.f32.mrf.mxu2 }
 0x38f   : > { %v5916_v22 = vadd.f32 %v2550_v9, %v7130_v12  ;;  %v1714_v28 = vadd.f32 %v5824_v29, %v1713_v37  ;;  %7136 = vst [vmem:[#allocation54_spill] sm:$0xff] %v5929_v3 }
 0x390   : > { %v2131_v60 = vpop.f32.mrf.mxu3 }
 0x391   : > { %v5923_v18 = vadd.f32 %v1714_v28, %v7133_v35  ;;  %v2132_v34 = vadd.f32 %v5343_v54, %v2131_v60  ;;  %v2871_v4 = vpack.c.bf16 %v5916_v22, %v5912_v17 }
 0x393   : > { %7134 = vst [vmem:[#allocation93_spill] sm:$0xff] %v5923_v18  ;;  %v5932_v9 = vadd.f32 %v2132_v34, %v7137_v5  ;;  %3009 = vmatmul.bf16.gmra.mxu1 %v2871_v4  ;;  %v1963_v37 = vpack.c.bf16 %v5923_v18, %v5920_v63  ;;  %v5944_v4 = vld [vmem:[%s6703_s4 + $0x2] ss:$0 sm:$0xff] }
 0x394   : > { %v2552_v31 = vpop.f32.mrf.mxu0  ;;  %v7139_v5 = vld [vmem:[#allocation96_spill] sm:$0xff] }
 0x395   : > { %7138 = vst [vmem:[#allocation55_spill] sm:$0xff] %v5932_v9  ;;  %2173 = vmatmul.bf16.gmra.mxu3 %v1963_v37  ;;  %v2417_v28 = vpack.c.bf16 %v5932_v9, %v5929_v3  ;;  %v2553_v60 = vadd.f32 %v5634_v36, %v2552_v31 }
 0x396   : > { %v1716_v46 = vpop.f32.mrf.mxu2 }
 0x397   : > { %2591 = vmatmul.bf16.gmra.mxu0 %v2417_v28  ;;  %v1717_v51 = vadd.f32 %v5824_v29, %v1716_v46  ;;  %v5947_v37 = vadd.f32 %v2553_v60, %v7139_v5  ;;  %v7140_v28 = vld [vmem:[#allocation49_spill] sm:$0xff]  ;;  %v7141_v46 = vld [vmem:[#allocation58_spill] sm:$0xff] }
 0x398   : > { %v2134_v12 = vpop.f32.mrf.mxu3 }
 0x399   : > { %v2135_v18 = vadd.f32 %v5343_v54, %v2134_v12  ;;  %v5955_v9 = vadd.f32 %v1717_v51, %v7141_v46 }
 0x39c   : > { %v2554_v35 = vpop.f32.mrf.mxu0 }
 0x39d   : > { %v2555_v34 = vadd.f32 %v5634_v36, %v2554_v35 }
 0x39e   : > { %v1718_v57 = vpop.f32.mrf.mxu2 }
 0x39f   : > { %v5951_v63 = vadd.f32 %v2555_v34, %v7140_v28  ;;  %v1719_v31 = vadd.f32 %v5824_v29, %v1718_v57  ;;  %v7144_v34 = vld [vmem:[#allocation94_spill] sm:$0xff]  ;;  %v7145_v57 = vld [vmem:[#allocation95_spill] sm:$0xff] }
 0x3a0   : > { %v2136_v35 = vpop.f32.mrf.mxu3  ;;  %v2975_v3 = vpop.f32.mrf.mxu1  ;;  %v5965_v5 = vadd.f32 %v2135_v18, %v7144_v34 }
 0x3a1   : > { %v5958_v40 = vadd.f32 %v1719_v31, %v7142_v20  ;;  %v2137_v30 = vadd.f32 %v5343_v54, %v2136_v35  ;;  %v2976_v60 = vadd.f32 %v5944_v4, %v2975_v3  ;;  %v2872_v12 = vpack.c.bf16 %v5951_v63, %v5947_v37 }
 0x3a3   : > { %7143 = vst [vmem:[#allocation42_spill] sm:$0xff] %v5958_v40  ;;  %v5968_v28 = vadd.f32 %v2137_v30, %v7145_v57  ;;  %v3135_v51 = vadd.f32 %v2976_v60, %v5364_v2  ;;  %3014 = vmatmul.bf16.gmra.mxu1 %v2872_v12  ;;  %v1964_v20 = vpack.c.bf16 %v5958_v40, %v5955_v9 }
 0x3a4   : > { %v2557_v31 = vpop.f32.mrf.mxu0 }
 0x3a5   : > { %v3391_v46 = vadd.f32 %v3135_v51, %v5650_v41  ;;  %2178 = vmatmul.bf16.gmra.mxu3 %v1964_v20  ;;  %v2418_v3 = vpack.c.bf16 %v5968_v28, %v5965_v5  ;;  %v2558_v60 = vadd.f32 %v5634_v36, %v2557_v31 }
 0x3a6   : > { %v1721_v35 = vpop.f32.mrf.mxu2 }
 0x3a7   : > { %3455 = vst [vmem:[%s5978_s13] sm:$0xff] %v3391_v46  ;;  %2596 = vmatmul.bf16.gmra.mxu0 %v2418_v3  ;;  %v1722_v12 = vadd.f32 %v5824_v29, %v1721_v35  ;;  %v5988_v40 = vadd.f32 %v2558_v60, %v5355_v47  ;;  %v7146_v3 = vld [vmem:[#allocation99_spill] sm:$0xff] }
 0x3a8   : > { %v2139_v2 = vpop.f32.mrf.mxu3  ;;  %v2977_v30 = vpop.f32.mrf.mxu1 }
 0x3a9   : > { %v2978_v18 = vadd.f32 %v5944_v4, %v2977_v30  ;;  %v2140_v46 = vadd.f32 %v5343_v54, %v2139_v2 }
 0x3ab   : > { %v3136_v41 = vadd.f32 %v2978_v18, %v5367_v25  ;;  %v7147_v25 = vld [vmem:[#allocation62_spill] sm:$0xff] }
 0x3ac   : > { %v2559_v34 = vpop.f32.mrf.mxu0  ;;  %v5997_v18 = vadd.f32 %v1722_v12, %v7147_v25 }
 0x3ad   : > { %v3392_v57 = vadd.f32 %v3136_v41, %v5654_v0  ;;  %v2560_v51 = vadd.f32 %v5634_v36, %v2559_v34  ;;  %v7148_v41 = vld [vmem:[#allocation63_spill] sm:$0xff] }
 0x3ae   : > { %v1723_v20 = vpop.f32.mrf.mxu2 }
 0x3af   : > { %3456 = vst [vmem:[%s5978_s13 + $0x8] sm:$0xff] %v3392_v57  ;;  %v5993_v30 = vadd.f32 %v2560_v51, %v7146_v3  ;;  %v1724_v31 = vadd.f32 %v5824_v29, %v1723_v20  ;;  %v7150_v57 = vld [vmem:[#allocation97_spill] sm:$0xff]  ;;  %v7151_v20 = vld [vmem:[#allocation98_spill] sm:$0xff] }
 0x3b0   : > { %v2141_v35 = vpop.f32.mrf.mxu3  ;;  %v2980_v0 = vpop.f32.mrf.mxu1  ;;  %v6007_v51 = vadd.f32 %v2140_v46, %v7150_v57 }
 0x3b1   : > { %v6000_v34 = vadd.f32 %v1724_v31, %v7148_v41  ;;  %v2142_v47 = vadd.f32 %v5343_v54, %v2141_v35  ;;  %v2981_v60 = vadd.f32 %v5944_v4, %v2980_v0  ;;  %v2873_v2 = vpack.c.bf16 %v5993_v30, %v5988_v40 }
 0x3b3   : > { %7149 = vst [vmem:[#allocation43_spill] sm:$0xff] %v6000_v34  ;;  %v6010_v3 = vadd.f32 %v2142_v47, %v7151_v20  ;;  %v3137_v12 = vadd.f32 %v2981_v60, %v5396_v61  ;;  %3019 = vmatmul.bf16.gmra.mxu1 %v2873_v2  ;;  %v1965_v31 = vpack.c.bf16 %v6000_v34, %v5997_v18 }
 0x3b4   : > { %v2562_v25 = vpop.f32.mrf.mxu0 }
 0x3b5   : > { %v3393_v35 = vadd.f32 %v3137_v12, %v5692_v21  ;;  %2183 = vmatmul.bf16.gmra.mxu3 %v1965_v31  ;;  %v2419_v0 = vpack.c.bf16 %v6010_v3, %v6007_v51  ;;  %v2563_v61 = vadd.f32 %v5634_v36, %v2562_v25 }
 0x3b6   : > { %v1726_v41 = vpop.f32.mrf.mxu2 }
 0x3b7   : > { %3457 = vst [vmem:[%s5978_s13 + $0x10] sm:$0xff] %v3393_v35  ;;  %2601 = vmatmul.bf16.gmra.mxu0 %v2419_v0  ;;  %v1727_v2 = vadd.f32 %v5824_v29, %v1726_v41  ;;  %v6026_v34 = vadd.f32 %v2563_v61, %v5387_v53 }
 0x3b8   : > { %v2144_v46 = vpop.f32.mrf.mxu3  ;;  %v2982_v47 = vpop.f32.mrf.mxu1 }
 0x3b9   : > { %v2983_v57 = vadd.f32 %v5944_v4, %v2982_v47  ;;  %v2145_v35 = vadd.f32 %v5343_v54, %v2144_v46 }
 0x3bb   : > { %v3138_v60 = vadd.f32 %v2983_v57, %v5399_v7  ;;  %v7152_v7 = vld [vmem:[#allocation66_spill] sm:$0xff]  ;;  %v7153_v57 = vld [vmem:[#allocation67_spill] sm:$0xff] }
 0x3bc   : > { %v2564_v20 = vpop.f32.mrf.mxu0  ;;  %v6035_v47 = vadd.f32 %v1727_v2, %v7152_v7 }
 0x3bd   : > { %v3394_v21 = vadd.f32 %v3138_v60, %v5696_v16  ;;  %v2565_v12 = vadd.f32 %v5634_v36, %v2564_v20  ;;  %v7154_v20 = vld [vmem:[#allocation52_spill] sm:$0xff] }
 0x3be   : > { %v1728_v31 = vpop.f32.mrf.mxu2 }
 0x3bf   : > { %3458 = vst [vmem:[%s5978_s13 + $0x18] sm:$0xff] %v3394_v21  ;;  %v6031_v0 = vadd.f32 %v2565_v12, %v5390_v8  ;;  %v1729_v25 = vadd.f32 %v5824_v29, %v1728_v31  ;;  %v6045_v8 = vadd.f32 %v2145_v35, %v5378_v42 }
 0x3c0   : > { %v2146_v41 = vpop.f32.mrf.mxu3  ;;  %v2985_v16 = vpop.f32.mrf.mxu1 }
 0x3c1   : > { %v6038_v60 = vadd.f32 %v1729_v25, %v7153_v57  ;;  %v2147_v53 = vadd.f32 %v5343_v54, %v2146_v41  ;;  %v2986_v61 = vadd.f32 %v5944_v4, %v2985_v16  ;;  %v2874_v46 = vpack.c.bf16 %v6031_v0, %v6026_v34 }
 0x3c3   : > { %v6048_v21 = vadd.f32 %v2147_v53, %v7154_v20  ;;  %v3139_v2 = vadd.f32 %v2986_v61, %v5428_v19  ;;  %3024 = vmatmul.bf16.gmra.mxu1 %v2874_v46  ;;  %v1966_v12 = vpack.c.bf16 %v6038_v60, %v6035_v47 }
 0x3c4   : > { %v2567_v31 = vpop.f32.mrf.mxu0 }
 0x3c5   : > { %v3395_v54 = vadd.f32 %v3139_v2, %v5734_v56  ;;  %2188 = vmatmul.bf16.gmra.mxu3 %v1966_v12  ;;  %v2420_v25 = vpack.c.bf16 %v6048_v21, %v6045_v8  ;;  %v2568_v19 = vadd.f32 %v5634_v36, %v2567_v31  ;;  %v6069_v2 = vld [vmem:[%s6703_s4 + $0x1] ss:$0 sm:$0xff] }
 0x3c6   : > { %v1731_v7 = vpop.f32.mrf.mxu2 }
 0x3c7   : > { %3459 = vst [vmem:[%s5978_s13 + $0x20] sm:$0xff] %v3395_v54  ;;  %2606 = vmatmul.bf16.gmra.mxu0 %v2420_v25  ;;  %v1732_v57 = vadd.f32 %v5824_v29, %v1731_v7  ;;  %v6064_v20 = vadd.f32 %v2568_v19, %v5419_v15 }
 0x3c8   : > { %v2149_v42 = vpop.f32.mrf.mxu3  ;;  %v2987_v35 = vpop.f32.mrf.mxu1 }
 0x3c9   : > { %v2988_v41 = vadd.f32 %v5944_v4, %v2987_v35  ;;  %v2150_v12 = vadd.f32 %v6069_v2, %v2149_v42  ;;  %v7157_v35 = vld [vmem:[#allocation71_spill] sm:$0xff] }
 0x3cb   : > { %v3140_v16 = vadd.f32 %v2988_v41, %v5431_v14  ;;  %v7155_v14 = vld [vmem:[#allocation57_spill] sm:$0xff] }
 0x3cc   : > { %v2569_v53 = vpop.f32.mrf.mxu0 }
 0x3cd   : > { %v3396_v56 = vadd.f32 %v3140_v16, %v5738_v43  ;;  %v2570_v61 = vadd.f32 %v5634_v36, %v2569_v53  ;;  %v7156_v43 = vld [vmem:[#allocation70_spill] sm:$0xff]  ;;  %v7158_v53 = vld [vmem:[#allocation53_spill] sm:$0xff] }
 0x3ce   : > { %v1733_v46 = vpop.f32.mrf.mxu2  ;;  %v6078_v25 = vadd.f32 %v1732_v57, %v7156_v43 }
 0x3cf   : > { %3460 = vst [vmem:[%s5978_s13 + $0x28] sm:$0xff] %v3396_v56  ;;  %v6074_v31 = vadd.f32 %v2570_v61, %v7155_v14  ;;  %v1734_v54 = vadd.f32 %v5824_v29, %v1733_v46  ;;  %v6088_v56 = vadd.f32 %v2150_v12, %v7158_v53  ;;  %v7159_v61 = vld [vmem:[#allocation56_spill] sm:$0xff] }
 0x3d0   : > { %v2151_v7 = vpop.f32.mrf.mxu3  ;;  %v2990_v15 = vpop.f32.mrf.mxu1 }
 0x3d1   : > { %v6081_v41 = vadd.f32 %v1734_v54, %v7157_v35  ;;  %v2152_v19 = vadd.f32 %v6069_v2, %v2151_v7  ;;  %v2991_v16 = vadd.f32 %v5944_v4, %v2990_v15  ;;  %v2875_v42 = vpack.c.bf16 %v6074_v31, %v6064_v20 }
 0x3d3   : > { %v6091_v46 = vadd.f32 %v2152_v19, %v7159_v61  ;;  %v3141_v57 = vadd.f32 %v2991_v16, %v5460_v13  ;;  %3029 = vmatmul.bf16.gmra.mxu1 %v2875_v42  ;;  %v1967_v14 = vpack.c.bf16 %v6081_v41, %v6078_v25 }
 0x3d4   : > { %v2572_v54 = vpop.f32.mrf.mxu0 }
 0x3d5   : > { %v3397_v43 = vadd.f32 %v3141_v57, %v5776_v6  ;;  %2193 = vmatmul.bf16.gmra.mxu3 %v1967_v14  ;;  %v2421_v7 = vpack.c.bf16 %v6091_v46, %v6088_v56  ;;  %v2573_v13 = vadd.f32 %v5634_v36, %v2572_v54 }
 0x3d6   : > { %v1736_v15 = vpop.f32.mrf.mxu2 }
 0x3d7   : > { %3461 = vst [vmem:[%s5978_s13 + $0x30] sm:$0xff] %v3397_v43  ;;  %2611 = vmatmul.bf16.gmra.mxu0 %v2421_v7  ;;  %v1737_v42 = vadd.f32 %v5824_v29, %v1736_v15  ;;  %v6107_v14 = vadd.f32 %v2573_v13, %v5451_v50 }
 0x3d8   : > { %v2154_v12 = vpop.f32.mrf.mxu3  ;;  %v2992_v35 = vpop.f32.mrf.mxu1 }
 0x3d9   : > { %v2993_v19 = vadd.f32 %v5944_v4, %v2992_v35  ;;  %v2155_v43 = vadd.f32 %v6069_v2, %v2154_v12 }
 0x3db   : > { %v3142_v16 = vadd.f32 %v2993_v19, %v5463_v1  ;;  %v7160_v1 = vld [vmem:[#allocation75_spill] sm:$0xff]  ;;  %v7161_v19 = vld [vmem:[#allocation76_spill] sm:$0xff] }
 0x3dc   : > { %v2574_v53 = vpop.f32.mrf.mxu0  ;;  %v6116_v35 = vadd.f32 %v1737_v42, %v7160_v1 }
 0x3dd   : > { %v3398_v6 = vadd.f32 %v3142_v16, %v5780_v11  ;;  %v2575_v61 = vadd.f32 %v5634_v36, %v2574_v53 }
 0x3de   : > { %v1738_v57 = vpop.f32.mrf.mxu2 }
 0x3df   : > { %3462 = vst [vmem:[%s5978_s13 + $0x38] sm:$0xff] %v3398_v6  ;;  %v6112_v7 = vadd.f32 %v2575_v61, %v5454_v10  ;;  %v1739_v54 = vadd.f32 %v5824_v29, %v1738_v57  ;;  %v7162_v10 = vld [vmem:[#allocation60_spill] sm:$0xff]  ;;  %v7163_v6 = vld [vmem:[#allocation61_spill] sm:$0xff] }
 0x3e0   : > { %v2156_v15 = vpop.f32.mrf.mxu3  ;;  %v2995_v11 = vpop.f32.mrf.mxu1  ;;  %v6126_v53 = vadd.f32 %v2155_v43, %v7162_v10 }
 0x3e1   : > { %v6119_v16 = vadd.f32 %v1739_v54, %v7161_v19  ;;  %v2157_v50 = vadd.f32 %v6069_v2, %v2156_v15  ;;  %v2996_v13 = vadd.f32 %v5944_v4, %v2995_v11  ;;  %v2876_v12 = vpack.c.bf16 %v6112_v7, %v6107_v14 }
 0x3e3   : > { %v6129_v61 = vadd.f32 %v2157_v50, %v7163_v6  ;;  %v3143_v42 = vadd.f32 %v2996_v13, %v5492_v55  ;;  %3034 = vmatmul.bf16.gmra.mxu1 %v2876_v12  ;;  %v1968_v57 = vpack.c.bf16 %v6119_v16, %v6116_v35 }
 0x3e4   : > { %v2577_v54 = vpop.f32.mrf.mxu0 }
 0x3e5   : > { %v3399_v1 = vadd.f32 %v3143_v42, %v5818_v49  ;;  %2198 = vmatmul.bf16.gmra.mxu3 %v1968_v57  ;;  %v2422_v15 = vpack.c.bf16 %v6129_v61, %v6126_v53  ;;  %v2578_v55 = vadd.f32 %v5634_v36, %v2577_v54 }
 0x3e6   : > { %v1741_v11 = vpop.f32.mrf.mxu2 }
 0x3e7   : > { %3463 = vst [vmem:[%s5978_s13 + $0x40] sm:$0xff] %v3399_v1  ;;  %2616 = vmatmul.bf16.gmra.mxu0 %v2422_v15  ;;  %v1742_v12 = vadd.f32 %v5824_v29, %v1741_v11  ;;  %v6145_v57 = vadd.f32 %v2578_v55, %v5483_v59  ;;  %v7164_v15 = vld [vmem:[#allocation100_spill] sm:$0xff] }
 0x3e8   : > { %v2159_v43 = vpop.f32.mrf.mxu3  ;;  %v2997_v19 = vpop.f32.mrf.mxu1 }
 0x3e9   : > { %v2998_v50 = vadd.f32 %v5944_v4, %v2997_v19  ;;  %v2160_v1 = vadd.f32 %v6069_v2, %v2159_v43 }
 0x3eb   : > { %v3144_v13 = vadd.f32 %v2998_v50, %v5495_v44  ;;  %v7165_v44 = vld [vmem:[#allocation78_spill] sm:$0xff] }
 0x3ec   : > { %v2579_v10 = vpop.f32.mrf.mxu0  ;;  %v6154_v50 = vadd.f32 %v1742_v12, %v7165_v44 }
 0x3ed   : > { %v3400_v49 = vadd.f32 %v3144_v13, %v5822_v23  ;;  %v2580_v6 = vadd.f32 %v5634_v36, %v2579_v10  ;;  %v7166_v13 = vld [vmem:[#allocation44_spill] sm:$0xff] }
 0x3ee   : > { %v1743_v42 = vpop.f32.mrf.mxu2 }
 0x3ef   : > { %3464 = vst [vmem:[%s5978_s13 + $0x48] sm:$0xff] %v3400_v49  ;;  %v6150_v19 = vadd.f32 %v2580_v6, %v7164_v15  ;;  %v1744_v54 = vadd.f32 %v5824_v29, %v1743_v42  ;;  %v7167_v49 = vld [vmem:[#allocation64_spill] sm:$0xff]  ;;  %v7168_v29 = vld [vmem:[#allocation65_spill] sm:$0xff] }
 0x3f0   : > { %v2161_v11 = vpop.f32.mrf.mxu3  ;;  %v3000_v23 = vpop.f32.mrf.mxu1  ;;  %v6164_v6 = vadd.f32 %v2160_v1, %v7167_v49 }
 0x3f1   : > { %v6157_v10 = vadd.f32 %v1744_v54, %v7166_v13  ;;  %v2162_v59 = vadd.f32 %v6069_v2, %v2161_v11  ;;  %v3001_v55 = vadd.f32 %v5944_v4, %v3000_v23  ;;  %v2877_v43 = vpack.c.bf16 %v6150_v19, %v6145_v57 }
 0x3f3   : > { %v6167_v42 = vadd.f32 %v2162_v59, %v7168_v29  ;;  %v3145_v12 = vadd.f32 %v3001_v55, %v5529_v45  ;;  %3039 = vmatmul.bf16.gmra.mxu1 %v2877_v43  ;;  %v1969_v15 = vpack.c.bf16 %v6157_v10, %v6154_v50 }
 0x3f4   : > { %v2582_v54 = vpop.f32.mrf.mxu0 }
 0x3f5   : > { %v3401_v44 = vadd.f32 %v3145_v12, %v5852_v62  ;;  %2203 = vmatmul.bf16.gmra.mxu3 %v1969_v15  ;;  %v2423_v11 = vpack.c.bf16 %v6167_v42, %v6164_v6  ;;  %v2583_v45 = vadd.f32 %v5634_v36, %v2582_v54 }
 0x3f7   : > { %3465 = vst [vmem:[%s5978_s13 + $0x50] sm:$0xff] %v3401_v44  ;;  %2621 = vmatmul.bf16.gmra.mxu0 %v2423_v11  ;;  %v6182_v62 = vadd.f32 %v2583_v45, %v5520_v24  ;;  %v7169_v24 = vld [vmem:[#allocation68_spill] sm:$0xff] }
 0x3f8   : > { %v2164_v1 = vpop.f32.mrf.mxu3  ;;  %v3002_v23 = vpop.f32.mrf.mxu1 }
 0x3f9   : > { %v3003_v13 = vadd.f32 %v5944_v4, %v3002_v23  ;;  %v2165_v29 = vadd.f32 %v6069_v2, %v2164_v1 }
 0x3fb   : > { %v3146_v59 = vadd.f32 %v3003_v13, %v5532_v58  ;;  %v6194_v11 = vadd.f32 %v2165_v29, %v5511_v48 }
 0x3fc   : > { %v2584_v55 = vpop.f32.mrf.mxu0 }
 0x3fd   : > { %v3402_v43 = vadd.f32 %v3146_v59, %v5856_v33  ;;  %v2585_v49 = vadd.f32 %v5634_v36, %v2584_v55 }
 0x3ff   : > { %3466 = vst [vmem:[%s5978_s13 + $0x58] sm:$0xff] %v3402_v43  ;;  %v6187_v12 = vadd.f32 %v2585_v49, %v5523_v38 }
 0x400   : > { %v2166_v15 = vpop.f32.mrf.mxu3  ;;  %v3005_v44 = vpop.f32.mrf.mxu1 }
 0x401   : > { %v2167_v54 = vadd.f32 %v6069_v2, %v2166_v15  ;;  %v3006_v58 = vadd.f32 %v5944_v4, %v3005_v44  ;;  %v2878_v33 = vpack.c.bf16 %v6187_v12, %v6182_v62  ;;  %v7170_v44 = vld [vmem:[#allocation72_spill] sm:$0xff] }
 0x403   : > { %v6197_v23 = vadd.f32 %v2167_v54, %v7169_v24  ;;  %v3147_v1 = vadd.f32 %v3006_v58, %v5561_v52  ;;  %3044 = vmatmul.bf16.gmra.mxu1 %v2878_v33  ;;  %v7171_v58 = vld [vmem:[#allocation73_spill] sm:$0xff] }
 0x404   : > { %v2587_v38 = vpop.f32.mrf.mxu0 }
 0x405   : > { %v3403_v13 = vadd.f32 %v3147_v1, %v5882_v39  ;;  %v2424_v45 = vpack.c.bf16 %v6197_v23, %v6194_v11  ;;  %v2588_v43 = vadd.f32 %v5634_v36, %v2587_v38 }
 0x407   : > { %3467 = vst [vmem:[%s5978_s13 + $0x60] sm:$0xff] %v3403_v13  ;;  %2626 = vmatmul.bf16.gmra.mxu0 %v2424_v45  ;;  %v6210_v39 = vadd.f32 %v2588_v43, %v7170_v44  ;;  %v7172_v13 = vld [vmem:[#allocation69_spill] sm:$0xff] }
 0x408   : > { %v2169_v59 = vpop.f32.mrf.mxu3  ;;  %v3007_v55 = vpop.f32.mrf.mxu1 }
 0x409   : > { %v3008_v48 = vadd.f32 %v5944_v4, %v3007_v55  ;;  %v2170_v54 = vadd.f32 %v6069_v2, %v2169_v59  ;;  %v7173_v55 = vld [vmem:[#allocation74_spill] sm:$0xff] }
 0x40b   : > { %v3148_v49 = vadd.f32 %v3008_v48, %v5564_v26  ;;  %v6222_v45 = vadd.f32 %v2170_v54, %v7172_v13  ;;  %v7176_v13 = vld [vmem:[#allocation21_spill] sm:$0xff] }
 0x40c   : > { %v2589_v29 = vpop.f32.mrf.mxu0 }
 0x40d   : > { %v3404_v52 = vadd.f32 %v3148_v49, %v5886_v32  ;;  %v2590_v15 = vadd.f32 %v5634_v36, %v2589_v29 }
 0x40f   : > { %3468 = vst [vmem:[%s5978_s13 + $0x68] sm:$0xff] %v3404_v52  ;;  %v6215_v33 = vadd.f32 %v2590_v15, %v7171_v58  ;;  %v7174_v58 = vld [vmem:[#allocation79_spill] sm:$0xff] }
 0x410   : > { %v2171_v24 = vpop.f32.mrf.mxu3  ;;  %v3010_v1 = vpop.f32.mrf.mxu1 }
 0x411   : > { %v2172_v38 = vadd.f32 %v6069_v2, %v2171_v24  ;;  %v3011_v26 = vadd.f32 %v5944_v4, %v3010_v1  ;;  %v2879_v32 = vpack.c.bf16 %v6215_v33, %v6210_v39 }
 0x413   : > { %v6225_v48 = vadd.f32 %v2172_v38, %v7173_v55  ;;  %v3149_v59 = vadd.f32 %v3011_v26, %v5593_v27  ;;  %3049 = vmatmul.bf16.gmra.mxu1 %v2879_v32  ;;  %v7175_v26 = vld [vmem:[#allocation20_spill] sm:$0xff] }
 0x414   : > { %v2592_v43 = vpop.f32.mrf.mxu0 }
 0x415   : > { %v3405_v49 = vadd.f32 %v3149_v59, %v5912_v17  ;;  %v2425_v29 = vpack.c.bf16 %v6225_v48, %v6222_v45  ;;  %v2593_v54 = vadd.f32 %v5634_v36, %v2592_v43 }
 0x417   : > { %3469 = vst [vmem:[%s5978_s13 + $0x70] sm:$0xff] %v3405_v49  ;;  %2631 = vmatmul.bf16.gmra.mxu0 %v2425_v29  ;;  %v6238_v17 = vadd.f32 %v2593_v54, %v7175_v26  ;;  %v7178_v54 = vld [vmem:[#allocation17_spill] sm:$0xff] }
 0x418   : > { %v2174_v52 = vpop.f32.mrf.mxu3  ;;  %v3012_v15 = vpop.f32.mrf.mxu1 }
 0x419   : > { %v3013_v44 = vadd.f32 %v5944_v4, %v3012_v15  ;;  %v2175_v32 = vadd.f32 %v6069_v2, %v2174_v52  ;;  %v7177_v15 = vld [vmem:[#allocation77_spill] sm:$0xff] }
 0x41a   : > { %v7180_v52 = vld [vmem:[#allocation81_spill] sm:$0xff] }
 0x41b   : > { %v3150_v24 = vadd.f32 %v3013_v44, %v7174_v58  ;;  %v6250_v44 = vadd.f32 %v2175_v32, %v7177_v15 }
 0x41c   : > { %v2594_v1 = vpop.f32.mrf.mxu0 }
 0x41d   : > { %v3406_v27 = vadd.f32 %v3150_v24, %v5916_v22  ;;  %v2595_v38 = vadd.f32 %v5634_v36, %v2594_v1 }
 0x41f   : > { %3470 = vst [vmem:[%s5978_s13 + $0x78] sm:$0xff] %v3406_v27  ;;  %v6243_v55 = vadd.f32 %v2595_v38, %v7176_v13 }
 0x420   : > { %v2176_v59 = vpop.f32.mrf.mxu3  ;;  %v3015_v49 = vpop.f32.mrf.mxu1 }
 0x421   : > { %v2177_v43 = vadd.f32 %v6069_v2, %v2176_v59  ;;  %v3016_v29 = vadd.f32 %v5944_v4, %v3015_v49  ;;  %v2880_v22 = vpack.c.bf16 %v6243_v55, %v6238_v17  ;;  %v7181_v49 = vld [vmem:[#allocation82_spill] sm:$0xff] }
 0x423   : > { %v6253_v58 = vadd.f32 %v2177_v43, %v7178_v54  ;;  %v3151_v24 = vadd.f32 %v3016_v29, %v7180_v52  ;;  %3054 = vmatmul.bf16.gmra.mxu1 %v2880_v22  ;;  %v7182_v54 = vld [vmem:[#allocation24_spill] sm:$0xff] }
 0x424   : > { %v2597_v1 = vpop.f32.mrf.mxu0 }
 0x425   : > { %7179 = vst [vmem:[#allocation96_spill] sm:$0xff] %v6253_v58  ;;  %v3407_v27 = vadd.f32 %v3151_v24, %v5947_v37  ;;  %v2426_v38 = vpack.c.bf16 %v6253_v58, %v6250_v44  ;;  %v2598_v59 = vadd.f32 %v5634_v36, %v2597_v1  ;;  %v7183_v24 = vld [vmem:[#allocation25_spill] sm:$0xff] }
 0x427   : > { %3471 = vst [vmem:[%s5978_s13 + $0x80] sm:$0xff] %v3407_v27  ;;  %2636 = vmatmul.bf16.gmra.mxu0 %v2426_v38  ;;  %v6266_v37 = vadd.f32 %v2598_v59, %v7182_v54  ;;  %v7186_v59 = vld [vmem:[#allocation101_spill] sm:$0xff] }
 0x428   : > { %v2179_v26 = vpop.f32.mrf.mxu3  ;;  %v3017_v13 = vpop.f32.mrf.mxu1 }
 0x429   : > { %v3018_v32 = vadd.f32 %v5944_v4, %v3017_v13  ;;  %v2180_v52 = vadd.f32 %v6069_v2, %v2179_v26  ;;  %v7188_v26 = vld [vmem:[#allocation28_spill] sm:$0xff] }
 0x42b   : > { %v3152_v43 = vadd.f32 %v3018_v32, %v7181_v49 }
 0x42c   : > { %v2599_v15 = vpop.f32.mrf.mxu0 }
 0x42d   : > { %v3408_v29 = vadd.f32 %v3152_v43, %v5951_v63  ;;  %v2600_v22 = vadd.f32 %v5634_v36, %v2599_v15  ;;  %v7184_v36 = vld [vmem:[#allocation80_spill] sm:$0xff] }
 0x42e   : > { %v6278_v49 = vadd.f32 %v2180_v52, %v7184_v36  ;;  %v7189_v36 = vld [vmem:[#allocation29_spill] sm:$0xff] }
 0x42f   : > { %3472 = vst [vmem:[%s5978_s13 + $0x88] sm:$0xff] %v3408_v29  ;;  %v6271_v27 = vadd.f32 %v2600_v22, %v7183_v24 }
 0x430   : > { %v2181_v38 = vpop.f32.mrf.mxu3  ;;  %v3020_v13 = vpop.f32.mrf.mxu1  ;;  %7185 = vst [vmem:[#allocation49_spill] sm:$0xff] %v6278_v49 }
 0x431   : > { %v2182_v1 = vadd.f32 %v6069_v2, %v2181_v38  ;;  %v3021_v32 = vadd.f32 %v5944_v4, %v3020_v13  ;;  %v2881_v63 = vpack.c.bf16 %v6271_v27, %v6266_v37  ;;  %v6289_v13 = vld [vmem:[#allocation9 + $0x2] ss:$0 sm:$0xff] }
 0x433   : > { %v6281_v43 = vadd.f32 %v2182_v1, %v7186_v59  ;;  %v3153_v15 = vadd.f32 %v3021_v32, %v7188_v26  ;;  %3059 = vmatmul.bf16.gmra.mxu1 %v2881_v63  ;;  %v7190_v26 = vld [vmem:[#allocation18_spill] sm:$0xff] }
 0x434   : > { %v2602_v29 = vpop.f32.mrf.mxu0 }
 0x435   : > { %7187 = vst [vmem:[#allocation58_spill] sm:$0xff] %v6281_v43  ;;  %v3409_v22 = vadd.f32 %v3153_v15, %v5988_v40  ;;  %v2427_v54 = vpack.c.bf16 %v6281_v43, %v6278_v49  ;;  %v2603_v1 = vadd.f32 %v6289_v13, %v2602_v29 }
 0x437   : > { %3473 = vst [vmem:[%s5978_s13 + $0x90] sm:$0xff] %v3409_v22  ;;  %2641 = vmatmul.bf16.gmra.mxu0 %v2427_v54  ;;  %v6296_v15 = vadd.f32 %v2603_v1, %v7190_v26  ;;  %v7191_v54 = vld [vmem:[#allocation19_spill] sm:$0xff] }
 0x438   : > { %v2184_v24 = vpop.f32.mrf.mxu3  ;;  %v3022_v38 = vpop.f32.mrf.mxu1  ;;  %v7194_v1 = vld [vmem:[#allocation103_spill] sm:$0xff] }
 0x439   : > { %v3023_v52 = vadd.f32 %v5944_v4, %v3022_v38  ;;  %v2185_v22 = vadd.f32 %v6069_v2, %v2184_v24  ;;  %v7196_v24 = vld [vmem:[#allocation33_spill] sm:$0xff] }
 0x43b   : > { %v3154_v32 = vadd.f32 %v3023_v52, %v7189_v36  ;;  %v7192_v36 = vld [vmem:[#allocation102_spill] sm:$0xff] }
 0x43c   : > { %v2604_v63 = vpop.f32.mrf.mxu0 }
 0x43d   : > { %v3410_v59 = vadd.f32 %v3154_v32, %v5993_v30  ;;  %v2605_v40 = vadd.f32 %v6289_v13, %v2604_v63  ;;  %v6308_v32 = vadd.f32 %v2185_v22, %v7192_v36 }
 0x43f   : > { %3474 = vst [vmem:[%s5978_s13 + $0x98] sm:$0xff] %v3410_v59  ;;  %v6301_v38 = vadd.f32 %v2605_v40, %v7191_v54 }
 0x440   : > { %v2186_v43 = vpop.f32.mrf.mxu3  ;;  %v3025_v49 = vpop.f32.mrf.mxu1  ;;  %7193 = vst [vmem:[#allocation59_spill] sm:$0xff] %v6308_v32 }
 0x441   : > { %v2187_v29 = vadd.f32 %v6069_v2, %v2186_v43  ;;  %v3026_v52 = vadd.f32 %v5944_v4, %v3025_v49  ;;  %v2882_v30 = vpack.c.bf16 %v6301_v38, %v6296_v15 }
 0x443   : > { %v6311_v63 = vadd.f32 %v2187_v29, %v7194_v1  ;;  %v3155_v59 = vadd.f32 %v3026_v52, %v7196_v24  ;;  %3064 = vmatmul.bf16.gmra.mxu1 %v2882_v30  ;;  %v7197_v29 = vld [vmem:[#allocation85_spill] sm:$0xff]  ;;  %v7198_v24 = vld [vmem:[#allocation22_spill] sm:$0xff] }
 0x444   : > { %v2607_v40 = vpop.f32.mrf.mxu0 }
 0x445   : > { %7195 = vst [vmem:[#allocation94_spill] sm:$0xff] %v6311_v63  ;;  %v3411_v26 = vadd.f32 %v3155_v59, %v6026_v34  ;;  %v2428_v43 = vpack.c.bf16 %v6311_v63, %v6308_v32  ;;  %v2608_v36 = vadd.f32 %v6289_v13, %v2607_v40 }
 0x447   : > { %3475 = vst [vmem:[%s5978_s13 + $0xa0] sm:$0xff] %v3411_v26  ;;  %2646 = vmatmul.bf16.gmra.mxu0 %v2428_v43  ;;  %v6324_v34 = vadd.f32 %v2608_v36, %v7198_v24  ;;  %v7199_v26 = vld [vmem:[#allocation32_spill] sm:$0xff] }
 0x448   : > { %v2189_v49 = vpop.f32.mrf.mxu3  ;;  %v3027_v54 = vpop.f32.mrf.mxu1  ;;  %v7202_v36 = vld [vmem:[#allocation84_spill] sm:$0xff] }
 0x449   : > { %v3028_v22 = vadd.f32 %v5944_v4, %v3027_v54  ;;  %v2190_v59 = vadd.f32 %v6069_v2, %v2189_v49  ;;  %v7204_v49 = vld [vmem:[#allocation36_spill] sm:$0xff] }
 0x44b   : > { %v3156_v1 = vadd.f32 %v3028_v22, %v7197_v29 }
 0x44c   : > { %v2609_v58 = vpop.f32.mrf.mxu0 }
 0x44d   : > { %v3412_v52 = vadd.f32 %v3156_v1, %v6031_v0  ;;  %v2610_v30 = vadd.f32 %v6289_v13, %v2609_v58  ;;  %v7200_v58 = vld [vmem:[#allocation83_spill] sm:$0xff] }
 0x44e   : > { %v6336_v29 = vadd.f32 %v2190_v59, %v7200_v58 }
 0x44f   : > { %3476 = vst [vmem:[%s5978_s13 + $0xa8] sm:$0xff] %v3412_v52  ;;  %v6329_v43 = vadd.f32 %v2610_v30, %v7199_v26 }
 0x450   : > { %v2191_v54 = vpop.f32.mrf.mxu3  ;;  %v3030_v63 = vpop.f32.mrf.mxu1  ;;  %7201 = vst [vmem:[#allocation95_spill] sm:$0xff] %v6336_v29 }
 0x451   : > { %v2192_v40 = vadd.f32 %v6069_v2, %v2191_v54  ;;  %v3031_v22 = vadd.f32 %v5944_v4, %v3030_v63  ;;  %v2883_v0 = vpack.c.bf16 %v6329_v43, %v6324_v34 }
 0x453   : > { %v6339_v1 = vadd.f32 %v2192_v40, %v7202_v36  ;;  %v3157_v52 = vadd.f32 %v3031_v22, %v7204_v49  ;;  %3069 = vmatmul.bf16.gmra.mxu1 %v2883_v0  ;;  %v7205_v40 = vld [vmem:[#allocation37_spill] sm:$0xff]  ;;  %v7206_v49 = vld [vmem:[#allocation26_spill] sm:$0xff] }
 0x454   : > { %v2612_v30 = vpop.f32.mrf.mxu0 }
 0x455   : > { %7203 = vst [vmem:[#allocation99_spill] sm:$0xff] %v6339_v1  ;;  %v3413_v24 = vadd.f32 %v3157_v52, %v6064_v20  ;;  %v2429_v26 = vpack.c.bf16 %v6339_v1, %v6336_v29  ;;  %v2613_v58 = vadd.f32 %v6289_v13, %v2612_v30 }
 0x457   : > { %3477 = vst [vmem:[%s5978_s13 + $0xb0] sm:$0xff] %v3413_v24  ;;  %2651 = vmatmul.bf16.gmra.mxu0 %v2429_v26  ;;  %v6352_v20 = vadd.f32 %v2613_v58, %v7206_v49  ;;  %v7207_v24 = vld [vmem:[#allocation27_spill] sm:$0xff]  ;;  %v7210_v58 = vld [vmem:[#allocation104_spill] sm:$0xff] }
 0x458   : > { %v2194_v63 = vpop.f32.mrf.mxu3  ;;  %v3032_v54 = vpop.f32.mrf.mxu1 }
 0x459   : > { %v3033_v59 = vadd.f32 %v5944_v4, %v3032_v54  ;;  %v2195_v52 = vadd.f32 %v6069_v2, %v2194_v63  ;;  %v7212_v63 = vld [vmem:[#allocation40_spill] sm:$0xff] }
 0x45b   : > { %v3158_v36 = vadd.f32 %v3033_v59, %v7205_v40 }
 0x45c   : > { %v2614_v32 = vpop.f32.mrf.mxu0 }
 0x45d   : > { %v3414_v22 = vadd.f32 %v3158_v36, %v6074_v31  ;;  %v2615_v0 = vadd.f32 %v6289_v13, %v2614_v32  ;;  %v7208_v32 = vld [vmem:[#allocation86_spill] sm:$0xff] }
 0x45e   : > { %v6364_v40 = vadd.f32 %v2195_v52, %v7208_v32 }
 0x45f   : > { %3478 = vst [vmem:[%s5978_s13 + $0xb8] sm:$0xff] %v3414_v22  ;;  %v6357_v26 = vadd.f32 %v2615_v0, %v7207_v24 }
 0x460   : > { %v2196_v54 = vpop.f32.mrf.mxu3  ;;  %v3035_v1 = vpop.f32.mrf.mxu1  ;;  %7209 = vst [vmem:[#allocation62_spill] sm:$0xff] %v6364_v40 }
 0x461   : > { %v2197_v30 = vadd.f32 %v6069_v2, %v2196_v54  ;;  %v3036_v59 = vadd.f32 %v5944_v4, %v3035_v1  ;;  %v2884_v31 = vpack.c.bf16 %v6357_v26, %v6352_v20 }
 0x463   : > { %v6367_v36 = vadd.f32 %v2197_v30, %v7210_v58  ;;  %v3159_v22 = vadd.f32 %v3036_v59, %v7212_v63  ;;  %3074 = vmatmul.bf16.gmra.mxu1 %v2884_v31  ;;  %v7213_v30 = vld [vmem:[#allocation41_spill] sm:$0xff]  ;;  %v7214_v63 = vld [vmem:[#allocation30_spill] sm:$0xff] }
 0x464   : > { %v2617_v0 = vpop.f32.mrf.mxu0 }
 0x465   : > { %7211 = vst [vmem:[#allocation63_spill] sm:$0xff] %v6367_v36  ;;  %v3415_v49 = vadd.f32 %v3159_v22, %v6107_v14  ;;  %v2430_v24 = vpack.c.bf16 %v6367_v36, %v6364_v40  ;;  %v2618_v32 = vadd.f32 %v6289_v13, %v2617_v0 }
 0x467   : > { %3479 = vst [vmem:[%s5978_s13 + $0xc0] sm:$0xff] %v3415_v49  ;;  %2656 = vmatmul.bf16.gmra.mxu0 %v2430_v24  ;;  %v6380_v14 = vadd.f32 %v2618_v32, %v7214_v63  ;;  %v7215_v49 = vld [vmem:[#allocation31_spill] sm:$0xff] }
 0x468   : > { %v2199_v1 = vpop.f32.mrf.mxu3  ;;  %v3037_v54 = vpop.f32.mrf.mxu1  ;;  %v7217_v32 = vld [vmem:[#allocation87_spill] sm:$0xff] }
 0x469   : > { %v3038_v52 = vadd.f32 %v5944_v4, %v3037_v54  ;;  %v2200_v22 = vadd.f32 %v6069_v2, %v2199_v1  ;;  %v7219_v1 = vld [vmem:[#allocation46_spill] sm:$0xff] }
 0x46b   : > { %v3160_v58 = vadd.f32 %v3038_v52, %v7213_v30 }
 0x46c   : > { %v2619_v29 = vpop.f32.mrf.mxu0 }
 0x46d   : > { %v3416_v59 = vadd.f32 %v3160_v58, %v6112_v7  ;;  %v2620_v31 = vadd.f32 %v6289_v13, %v2619_v29  ;;  %v7216_v29 = vld [vmem:[#allocation23_spill] sm:$0xff] }
 0x46e   : > { %v6392_v30 = vadd.f32 %v2200_v22, %v7216_v29 }
 0x46f   : > { %3480 = vst [vmem:[%s5978_s13 + $0xc8] sm:$0xff] %v3416_v59  ;;  %v6385_v24 = vadd.f32 %v2620_v31, %v7215_v49 }
 0x470   : > { %v2201_v54 = vpop.f32.mrf.mxu3  ;;  %v3040_v36 = vpop.f32.mrf.mxu1 }
 0x471   : > { %v2202_v0 = vadd.f32 %v6069_v2, %v2201_v54  ;;  %v3041_v52 = vadd.f32 %v5944_v4, %v3040_v36  ;;  %v2885_v7 = vpack.c.bf16 %v6385_v24, %v6380_v14 }
 0x473   : > { %v6395_v58 = vadd.f32 %v2202_v0, %v7217_v32  ;;  %v3161_v59 = vadd.f32 %v3041_v52, %v7219_v1  ;;  %3079 = vmatmul.bf16.gmra.mxu1 %v2885_v7  ;;  %v7220_v0 = vld [vmem:[#allocation90_spill] sm:$0xff] }
 0x474   : > { %v2622_v31 = vpop.f32.mrf.mxu0  ;;  %v7221_v1 = vld [vmem:[#allocation34_spill] sm:$0xff] }
 0x475   : > { %7218 = vst [vmem:[#allocation97_spill] sm:$0xff] %v6395_v58  ;;  %v3417_v63 = vadd.f32 %v3161_v59, %v6145_v57  ;;  %v2431_v49 = vpack.c.bf16 %v6395_v58, %v6392_v30  ;;  %v2623_v29 = vadd.f32 %v6289_v13, %v2622_v31 }
 0x477   : > { %3481 = vst [vmem:[%s5978_s13 + $0xd0] sm:$0xff] %v3417_v63  ;;  %2661 = vmatmul.bf16.gmra.mxu0 %v2431_v49  ;;  %v6408_v57 = vadd.f32 %v2623_v29, %v7221_v1  ;;  %v7222_v63 = vld [vmem:[#allocation45_spill] sm:$0xff] }
 0x478   : > { %v2204_v36 = vpop.f32.mrf.mxu3  ;;  %v3042_v54 = vpop.f32.mrf.mxu1  ;;  %v7224_v29 = vld [vmem:[#allocation89_spill] sm:$0xff] }
 0x479   : > { %v3043_v22 = vadd.f32 %v5944_v4, %v3042_v54  ;;  %v2205_v59 = vadd.f32 %v6069_v2, %v2204_v36  ;;  %v7226_v36 = vld [vmem:[#allocation47_spill] sm:$0xff] }
 0x47b   : > { %v3162_v32 = vadd.f32 %v3043_v22, %v7220_v0 }
 0x47c   : > { %v2624_v40 = vpop.f32.mrf.mxu0 }
 0x47d   : > { %v3418_v52 = vadd.f32 %v3162_v32, %v6150_v19  ;;  %v2625_v7 = vadd.f32 %v6289_v13, %v2624_v40  ;;  %v7223_v40 = vld [vmem:[#allocation88_spill] sm:$0xff] }
 0x47e   : > { %v6420_v0 = vadd.f32 %v2205_v59, %v7223_v40 }
 0x47f   : > { %3482 = vst [vmem:[%s5978_s13 + $0xd8] sm:$0xff] %v3418_v52  ;;  %v6413_v49 = vadd.f32 %v2625_v7, %v7222_v63 }
 0x480   : > { %v2206_v54 = vpop.f32.mrf.mxu3  ;;  %v3045_v58 = vpop.f32.mrf.mxu1 }
 0x481   : > { %v2207_v31 = vadd.f32 %v6069_v2, %v2206_v54  ;;  %v3046_v22 = vadd.f32 %v5944_v4, %v3045_v58  ;;  %v2886_v19 = vpack.c.bf16 %v6413_v49, %v6408_v57  ;;  %v7227_v54 = vld [vmem:[#allocation48_spill] sm:$0xff] }
 0x483   : > { %v6423_v32 = vadd.f32 %v2207_v31, %v7224_v29  ;;  %v3163_v52 = vadd.f32 %v3046_v22, %v7226_v36  ;;  %3084 = vmatmul.bf16.gmra.mxu1 %v2886_v19  ;;  %v7228_v29 = vld [vmem:[#allocation91_spill] sm:$0xff]  ;;  %v7229_v36 = vld [vmem:[#allocation38_spill] sm:$0xff] }
 0x484   : > { %v2627_v7 = vpop.f32.mrf.mxu0 }
 0x485   : > { %7225 = vst [vmem:[#allocation98_spill] sm:$0xff] %v6423_v32  ;;  %v3419_v1 = vadd.f32 %v3163_v52, %v6182_v62  ;;  %v2432_v2 = vpack.c.bf16 %v6423_v32, %v6420_v0  ;;  %v2628_v59 = vadd.f32 %v6289_v13, %v2627_v7  ;;  %v7232_v32 = vld [vmem:[#allocation35_spill] sm:$0xff] }
 0x487   : > { %3483 = vst [vmem:[%s5978_s13 + $0xe0] sm:$0xff] %v3419_v1  ;;  %2666 = vmatmul.bf16.gmra.mxu0 %v2432_v2  ;;  %v6436_v62 = vadd.f32 %v2628_v59, %v7228_v29 }
 0x488   : > { %v3047_v58 = vpop.f32.mrf.mxu1 }
 0x489   : > { %v3048_v63 = vadd.f32 %v5944_v4, %v3047_v58  ;;  %v7230_v58 = vld [vmem:[#allocation50_spill] sm:$0xff] }
 0x48b   : > { %v3164_v31 = vadd.f32 %v3048_v63, %v7227_v54 }
 0x48c   : > { %v2629_v40 = vpop.f32.mrf.mxu0 }
 0x48d   : > { %v3420_v22 = vadd.f32 %v3164_v31, %v6187_v12  ;;  %v2630_v19 = vadd.f32 %v6289_v13, %v2629_v40 }
 0x48f   : > { %3484 = vst [vmem:[%s5978_s13 + $0xe8] sm:$0xff] %v3420_v22  ;;  %v6440_v52 = vadd.f32 %v2630_v19, %v7229_v36  ;;  %v7231_v22 = vld [vmem:[#allocation51_spill] sm:$0xff] }
 0x490   : > { %v3050_v1 = vpop.f32.mrf.mxu1 }
 0x491   : > { %v3051_v2 = vadd.f32 %v5944_v4, %v3050_v1  ;;  %v2887_v7 = vpack.c.bf16 %v6440_v52, %v6436_v62 }
 0x493   : > { %v3165_v63 = vadd.f32 %v3051_v2, %v7230_v58  ;;  %3089 = vmatmul.bf16.gmra.mxu1 %v2887_v7  ;;  %v7233_v7 = vld [vmem:[#allocation92_spill] sm:$0xff] }
 0x494   : > { %v2632_v12 = vpop.f32.mrf.mxu0 }
 0x495   : > { %v3421_v54 = vadd.f32 %v3165_v63, %v6210_v39  ;;  %v2633_v40 = vadd.f32 %v6289_v13, %v2632_v12 }
 0x497   : > { %3485 = vst [vmem:[%s5978_s13 + $0xf0] sm:$0xff] %v3421_v54  ;;  %v6454_v2 = vadd.f32 %v2633_v40, %v7232_v32  ;;  %v7234_v54 = vld [vmem:[#allocation54_spill] sm:$0xff] }
 0x498   : > { %v3052_v59 = vpop.f32.mrf.mxu1 }
 0x499   : > { %v3053_v31 = vadd.f32 %v5944_v4, %v3052_v59 }
 0x49b   : > { %v3166_v19 = vadd.f32 %v3053_v31, %v7231_v22 }
 0x49c   : > { %v2634_v29 = vpop.f32.mrf.mxu0 }
 0x49d   : > { %v3422_v36 = vadd.f32 %v3166_v19, %v6215_v33  ;;  %v2635_v1 = vadd.f32 %v6289_v13, %v2634_v29  ;;  %v7235_v19 = vld [vmem:[#allocation55_spill] sm:$0xff] }
 0x49f   : > { %3486 = vst [vmem:[%s5978_s13 + $0xf8] sm:$0xff] %v3422_v36  ;;  %v6458_v39 = vadd.f32 %v2635_v1, %v7233_v7 }
 0x4a0   : > { %v3055_v58 = vpop.f32.mrf.mxu1 }
 0x4a1   : > { %v3056_v63 = vadd.f32 %v5944_v4, %v3055_v58  ;;  %v2888_v12 = vpack.c.bf16 %v6458_v39, %v6454_v2  ;;  %v7236_v58 = vld [vmem:[#allocation39_spill] sm:$0xff] }
 0x4a3   : > { %v3167_v59 = vadd.f32 %v3056_v63, %v7234_v54  ;;  %3094 = vmatmul.bf16.gmra.mxu1 %v2888_v12  ;;  %v7237_v12 = vld [vmem:[#allocation93_spill] sm:$0xff] }
 0x4a4   : > { %v2637_v33 = vpop.f32.mrf.mxu0 }
 0x4a5   : > { %v3423_v31 = vadd.f32 %v3167_v59, %v6238_v17  ;;  %v2638_v22 = vadd.f32 %v6289_v13, %v2637_v33 }
 0x4a7   : > { %3487 = vst [vmem:[%s5978_s13 + $0x100] sm:$0xff] %v3423_v31  ;;  %v6472_v63 = vadd.f32 %v2638_v22, %v7236_v58  ;;  %v7238_v58 = vld [vmem:[#allocation42_spill] sm:$0xff] }
 0x4a8   : > { %v3057_v32 = vpop.f32.mrf.mxu1 }
 0x4a9   : > { %v3058_v40 = vadd.f32 %v5944_v4, %v3057_v32 }
 0x4ab   : > { %v3168_v29 = vadd.f32 %v3058_v40, %v7235_v19 }
 0x4ac   : > { %v2639_v36 = vpop.f32.mrf.mxu0 }
 0x4ad   : > { %v3424_v1 = vadd.f32 %v3168_v29, %v6243_v55  ;;  %v2640_v7 = vadd.f32 %v6289_v13, %v2639_v36 }
 0x4af   : > { %3488 = vst [vmem:[%s5978_s13 + $0x108] sm:$0xff] %v3424_v1  ;;  %v6476_v17 = vadd.f32 %v2640_v7, %v7237_v12 }
 0x4b0   : > { %v3060_v54 = vpop.f32.mrf.mxu1 }
 0x4b1   : > { %v3061_v59 = vadd.f32 %v5944_v4, %v3060_v54  ;;  %v2889_v33 = vpack.c.bf16 %v6476_v17, %v6472_v63 }
 0x4b3   : > { %v3169_v31 = vadd.f32 %v3061_v59, %v5965_v5  ;;  %3099 = vmatmul.bf16.gmra.mxu1 %v2889_v33 }
 0x4b4   : > { %v2642_v55 = vpop.f32.mrf.mxu0 }
 0x4b5   : > { %v3425_v32 = vadd.f32 %v3169_v31, %v6266_v37  ;;  %v2643_v19 = vadd.f32 %v6289_v13, %v2642_v55 }
 0x4b7   : > { %3489 = vst [vmem:[%s5978_s13 + $0x110] sm:$0xff] %v3425_v32  ;;  %v6490_v5 = vadd.f32 %v2643_v19, %v5955_v9 }
 0x4b8   : > { %v3062_v40 = vpop.f32.mrf.mxu1 }
 0x4b9   : > { %v3063_v22 = vadd.f32 %v5944_v4, %v3062_v40 }
 0x4bb   : > { %v3170_v29 = vadd.f32 %v3063_v22, %v5968_v28 }
 0x4bc   : > { %v2644_v36 = vpop.f32.mrf.mxu0 }
 0x4bd   : > { %v3426_v1 = vadd.f32 %v3170_v29, %v6271_v27  ;;  %v2645_v7 = vadd.f32 %v6289_v13, %v2644_v36  ;;  %v7239_v29 = vld [vmem:[#allocation43_spill] sm:$0xff] }
 0x4bf   : > { %3490 = vst [vmem:[%s5978_s13 + $0x118] sm:$0xff] %v3426_v1  ;;  %v6494_v37 = vadd.f32 %v2645_v7, %v7238_v58 }
 0x4c0   : > { %v3065_v12 = vpop.f32.mrf.mxu1 }
 0x4c1   : > { %v3066_v54 = vadd.f32 %v5944_v4, %v3065_v12  ;;  %v2890_v59 = vpack.c.bf16 %v6494_v37, %v6490_v5 }
 0x4c3   : > { %v3171_v28 = vadd.f32 %v3066_v54, %v6007_v51  ;;  %3104 = vmatmul.bf16.gmra.mxu1 %v2890_v59 }
 0x4c4   : > { %v2647_v27 = vpop.f32.mrf.mxu0 }
 0x4c5   : > { %v3427_v33 = vadd.f32 %v3171_v28, %v6296_v15  ;;  %v2648_v55 = vadd.f32 %v6289_v13, %v2647_v27 }
 0x4c7   : > { %3491 = vst [vmem:[%s5978_s13 + $0x120] sm:$0xff] %v3427_v33  ;;  %v6508_v51 = vadd.f32 %v2648_v55, %v5997_v18 }
 0x4c8   : > { %v3067_v9 = vpop.f32.mrf.mxu1 }
 0x4c9   : > { %v3068_v31 = vadd.f32 %v5944_v4, %v3067_v9  ;;  %v6517_v4 = vld [vmem:[%s6703_s4 + $0x2] ss:$0 sm:$0xff] }
 0x4cb   : > { %v3172_v32 = vadd.f32 %v3068_v31, %v6010_v3 }
 0x4cc   : > { %v2649_v40 = vpop.f32.mrf.mxu0 }
 0x4cd   : > { %v3428_v22 = vadd.f32 %v3172_v32, %v6301_v38  ;;  %v2650_v19 = vadd.f32 %v6289_v13, %v2649_v40 }
 0x4cf   : > { %3492 = vst [vmem:[%s5978_s13 + $0x128] sm:$0xff] %v3428_v22  ;;  %v6512_v15 = vadd.f32 %v2650_v19, %v7239_v29 }
 0x4d0   : > { %v3070_v36 = vpop.f32.mrf.mxu1 }
 0x4d1   : > { %v3071_v3 = vadd.f32 %v6517_v4, %v3070_v36  ;;  %v2891_v38 = vpack.c.bf16 %v6512_v15, %v6508_v51 }
 0x4d3   : > { %v3173_v1 = vadd.f32 %v3071_v3, %v6045_v8  ;;  %3109 = vmatmul.bf16.gmra.mxu1 %v2891_v38 }
 0x4d4   : > { %v2652_v18 = vpop.f32.mrf.mxu0 }
 0x4d5   : > { %v3429_v7 = vadd.f32 %v3173_v1, %v6324_v34  ;;  %v2653_v54 = vadd.f32 %v6289_v13, %v2652_v18 }
 0x4d7   : > { %3493 = vst [vmem:[%s5978_s13 + $0x130] sm:$0xff] %v3429_v7  ;;  %v6531_v8 = vadd.f32 %v2653_v54, %v6035_v47 }
 0x4d8   : > { %v3072_v58 = vpop.f32.mrf.mxu1 }
 0x4d9   : > { %v3073_v12 = vadd.f32 %v6517_v4, %v3072_v58 }
 0x4db   : > { %v3174_v59 = vadd.f32 %v3073_v12, %v6048_v21 }
 0x4dc   : > { %v2654_v28 = vpop.f32.mrf.mxu0 }
 0x4dd   : > { %v3430_v27 = vadd.f32 %v3174_v59, %v6329_v43  ;;  %v2655_v33 = vadd.f32 %v6289_v13, %v2654_v28 }
 0x4df   : > { %3494 = vst [vmem:[%s5978_s13 + $0x138] sm:$0xff] %v3430_v27  ;;  %v6535_v34 = vadd.f32 %v2655_v33, %v6038_v60 }
 0x4e0   : > { %v3075_v9 = vpop.f32.mrf.mxu1 }
 0x4e1   : > { %v3076_v31 = vadd.f32 %v6517_v4, %v3075_v9  ;;  %v2892_v55 = vpack.c.bf16 %v6535_v34, %v6531_v8 }
 0x4e3   : > { %v3175_v21 = vadd.f32 %v3076_v31, %v6088_v56  ;;  %3114 = vmatmul.bf16.gmra.mxu1 %v2892_v55 }
 0x4e4   : > { %v2657_v43 = vpop.f32.mrf.mxu0 }
 0x4e5   : > { %v3431_v32 = vadd.f32 %v3175_v21, %v6352_v20  ;;  %v2658_v60 = vadd.f32 %v6289_v13, %v2657_v43 }
 0x4e7   : > { %3495 = vst [vmem:[%s5978_s13 + $0x140] sm:$0xff] %v3431_v32  ;;  %v6549_v56 = vadd.f32 %v2658_v60, %v6078_v25 }
 0x4e8   : > { %v3077_v47 = vpop.f32.mrf.mxu1 }
 0x4e9   : > { %v3078_v40 = vadd.f32 %v6517_v4, %v3077_v47 }
 0x4eb   : > { %v3176_v22 = vadd.f32 %v3078_v40, %v6091_v46 }
 0x4ec   : > { %v2659_v19 = vpop.f32.mrf.mxu0 }
 0x4ed   : > { %v3432_v29 = vadd.f32 %v3176_v22, %v6357_v26  ;;  %v2660_v36 = vadd.f32 %v6289_v13, %v2659_v19 }
 0x4ef   : > { %3496 = vst [vmem:[%s5978_s13 + $0x148] sm:$0xff] %v3432_v29  ;;  %v6553_v20 = vadd.f32 %v2660_v36, %v6081_v41 }
 0x4f0   : > { %v3080_v3 = vpop.f32.mrf.mxu1 }
 0x4f1   : > { %v3081_v38 = vadd.f32 %v6517_v4, %v3080_v3  ;;  %v2893_v1 = vpack.c.bf16 %v6553_v20, %v6549_v56 }
 0x4f3   : > { %v3177_v46 = vadd.f32 %v3081_v38, %v6126_v53  ;;  %3119 = vmatmul.bf16.gmra.mxu1 %v2893_v1 }
 0x4f4   : > { %v2662_v26 = vpop.f32.mrf.mxu0 }
 0x4f5   : > { %v3433_v18 = vadd.f32 %v3177_v46, %v6380_v14  ;;  %v2663_v41 = vadd.f32 %v6289_v13, %v2662_v26 }
 0x4f7   : > { %3497 = vst [vmem:[%s5978_s13 + $0x150] sm:$0xff] %v3433_v18  ;;  %v6567_v53 = vadd.f32 %v2663_v41, %v6116_v35  ;;  %v7240_v18 = vld [vmem:[#allocation96_spill] sm:$0xff]  ;;  %v7241_v41 = vld [vmem:[#allocation49_spill] sm:$0xff] }
 0x4f8   : > { %v3082_v25 = vpop.f32.mrf.mxu1 }
 0x4f9   : > { %v3083_v7 = vadd.f32 %v6517_v4, %v3082_v25 }
 0x4fb   : > { %v3178_v58 = vadd.f32 %v3083_v7, %v6129_v61 }
 0x4fc   : > { %v2664_v12 = vpop.f32.mrf.mxu0 }
 0x4fd   : > { %v3434_v54 = vadd.f32 %v3178_v58, %v6385_v24  ;;  %v2665_v59 = vadd.f32 %v6289_v13, %v2664_v12 }
 0x4ff   : > { %3498 = vst [vmem:[%s5978_s13 + $0x158] sm:$0xff] %v3434_v54  ;;  %v6571_v14 = vadd.f32 %v2665_v59, %v6119_v16  ;;  %v7242_v54 = vld [vmem:[#allocation58_spill] sm:$0xff] }
 0x500   : > { %v3085_v28 = vpop.f32.mrf.mxu1 }
 0x501   : > { %v3086_v27 = vadd.f32 %v6517_v4, %v3085_v28  ;;  %v2894_v33 = vpack.c.bf16 %v6571_v14, %v6567_v53 }
 0x503   : > { %v3179_v61 = vadd.f32 %v3086_v27, %v6164_v6  ;;  %3124 = vmatmul.bf16.gmra.mxu1 %v2894_v33  ;;  %v7243_v33 = vld [vmem:[#allocation59_spill] sm:$0xff] }
 0x504   : > { %v2667_v24 = vpop.f32.mrf.mxu0 }
 0x505   : > { %v3435_v9 = vadd.f32 %v3179_v61, %v6408_v57  ;;  %v2668_v16 = vadd.f32 %v6289_v13, %v2667_v24 }
 0x507   : > { %3499 = vst [vmem:[%s5978_s13 + $0x160] sm:$0xff] %v3435_v9  ;;  %v6585_v6 = vadd.f32 %v2668_v16, %v6154_v50 }
 0x508   : > { %v3087_v35 = vpop.f32.mrf.mxu1 }
 0x509   : > { %v3088_v31 = vadd.f32 %v6517_v4, %v3087_v35  ;;  %v7244_v35 = vld [vmem:[#allocation94_spill] sm:$0xff] }
 0x50b   : > { %v3180_v55 = vadd.f32 %v3088_v31, %v6167_v42 }
 0x50c   : > { %v2669_v21 = vpop.f32.mrf.mxu0 }
 0x50d   : > { %v3436_v43 = vadd.f32 %v3180_v55, %v6413_v49  ;;  %v2670_v32 = vadd.f32 %v6289_v13, %v2669_v21  ;;  %v7245_v21 = vld [vmem:[#allocation95_spill] sm:$0xff] }
 0x50f   : > { %3500 = vst [vmem:[%s5978_s13 + $0x168] sm:$0xff] %v3436_v43  ;;  %v6589_v57 = vadd.f32 %v2670_v32, %v6157_v10 }
 0x510   : > { %v3090_v47 = vpop.f32.mrf.mxu1 }
 0x511   : > { %v3091_v40 = vadd.f32 %v6517_v4, %v3090_v47  ;;  %v2895_v42 = vpack.c.bf16 %v6589_v57, %v6585_v6 }
 0x513   : > { %v3181_v60 = vadd.f32 %v3091_v40, %v6194_v11  ;;  %3129 = vmatmul.bf16.gmra.mxu1 %v2895_v42  ;;  %v7246_v40 = vld [vmem:[#allocation99_spill] sm:$0xff] }
 0x515   : > { %v3437_v49 = vadd.f32 %v3181_v60, %v6436_v62 }
 0x517   : > { %3501 = vst [vmem:[%s5978_s13 + $0x170] sm:$0xff] %v3437_v49 }
 0x518   : > { %v3092_v50 = vpop.f32.mrf.mxu1 }
 0x519   : > { %v3093_v13 = vadd.f32 %v6517_v4, %v3092_v50  ;;  %v7247_v50 = vld [vmem:[#allocation62_spill] sm:$0xff] }
 0x51b   : > { %v3182_v10 = vadd.f32 %v3093_v13, %v6197_v23 }
 0x51d   : > { %v3438_v22 = vadd.f32 %v3182_v10, %v6440_v52 }
 0x51f   : > { %3502 = vst [vmem:[%s5978_s13 + $0x178] sm:$0xff] %v3438_v22 }
 0x520   : > { %v3095_v19 = vpop.f32.mrf.mxu1 }
 0x521   : > { %v3096_v29 = vadd.f32 %v6517_v4, %v3095_v19  ;;  %v7248_v19 = vld [vmem:[#allocation63_spill] sm:$0xff] }
 0x523   : > { %v3183_v36 = vadd.f32 %v3096_v29, %v6222_v45 }
 0x525   : > { %v3439_v11 = vadd.f32 %v3183_v36, %v6454_v2 }
 0x527   : > { %3503 = vst [vmem:[%s5978_s13 + $0x180] sm:$0xff] %v3439_v11 }
 0x528   : > { %v3097_v62 = vpop.f32.mrf.mxu1 }
 0x529   : > { %v3098_v3 = vadd.f32 %v6517_v4, %v3097_v62 }
 0x52b   : > { %v3184_v38 = vadd.f32 %v3098_v3, %v6225_v48 }
 0x52d   : > { %v3440_v23 = vadd.f32 %v3184_v38, %v6458_v39 }
 0x52f   : > { %3504 = vst [vmem:[%s5978_s13 + $0x188] sm:$0xff] %v3440_v23  ;;  %v7249_v23 = vld [vmem:[#allocation97_spill] sm:$0xff] }
 0x530   : > { %v3100_v52 = vpop.f32.mrf.mxu1 }
 0x531   : > { %v3101_v1 = vadd.f32 %v6517_v4, %v3100_v52 }
 0x533   : > { %v3185_v46 = vadd.f32 %v3101_v1, %v6250_v44 }
 0x535   : > { %v3441_v45 = vadd.f32 %v3185_v46, %v6472_v63 }
 0x537   : > { %3505 = vst [vmem:[%s5978_s13 + $0x190] sm:$0xff] %v3441_v45 }
 0x538   : > { %v3102_v2 = vpop.f32.mrf.mxu1 }
 0x539   : > { %v3103_v26 = vadd.f32 %v6517_v4, %v3102_v2  ;;  %v7250_v2 = vld [vmem:[#allocation98_spill] sm:$0xff] }
 0x53b   : > { %v3186_v25 = vadd.f32 %v3103_v26, %v7240_v18 }
 0x53d   : > { %v3442_v48 = vadd.f32 %v3186_v25, %v6476_v17 }
 0x53f   : > { %3506 = vst [vmem:[%s5978_s13 + $0x198] sm:$0xff] %v3442_v48 }
 0x540   : > { %v3105_v39 = vpop.f32.mrf.mxu1 }
 0x541   : > { %v3106_v7 = vadd.f32 %v6517_v4, %v3105_v39 }
 0x543   : > { %v3187_v58 = vadd.f32 %v3106_v7, %v7241_v41 }
 0x545   : > { %v3443_v44 = vadd.f32 %v3187_v58, %v6490_v5 }
 0x547   : > { %3507 = vst [vmem:[%s5978_s13 + $0x1a0] sm:$0xff] %v3443_v44 }
 0x548   : > { %v3107_v63 = vpop.f32.mrf.mxu1 }
 0x549   : > { %v3108_v12 = vadd.f32 %v6517_v4, %v3107_v63 }
 0x54b   : > { %v3188_v59 = vadd.f32 %v3108_v12, %v7242_v54 }
 0x54d   : > { %v3444_v28 = vadd.f32 %v3188_v59, %v6494_v37 }
 0x54f   : > { %3508 = vst [vmem:[%s5978_s13 + $0x1a8] sm:$0xff] %v3444_v28 }
 0x550   : > { %v3110_v17 = vpop.f32.mrf.mxu1 }
 0x551   : > { %v3111_v27 = vadd.f32 %v6517_v4, %v3110_v17 }
 0x553   : > { %v3189_v61 = vadd.f32 %v3111_v27, %v7243_v33 }
 0x555   : > { %v3445_v24 = vadd.f32 %v3189_v61, %v6508_v51 }
 0x557   : > { %3509 = vst [vmem:[%s5978_s13 + $0x1b0] sm:$0xff] %v3445_v24 }
 0x558   : > { %v3112_v5 = vpop.f32.mrf.mxu1 }
 0x559   : > { %v3113_v9 = vadd.f32 %v6517_v4, %v3112_v5 }
 0x55b   : > { %v3190_v31 = vadd.f32 %v3113_v9, %v7244_v35 }
 0x55d   : > { %v3446_v16 = vadd.f32 %v3190_v31, %v6512_v15 }
 0x55f   : > { %3510 = vst [vmem:[%s5978_s13 + $0x1b8] sm:$0xff] %v3446_v16 }
 0x560   : > { %v3115_v37 = vpop.f32.mrf.mxu1 }
 0x561   : > { %v3116_v55 = vadd.f32 %v6517_v4, %v3115_v37 }
 0x563   : > { %v3191_v43 = vadd.f32 %v3116_v55, %v7245_v21 }
 0x565   : > { %v3447_v32 = vadd.f32 %v3191_v43, %v6531_v8 }
 0x567   : > { %3511 = vst [vmem:[%s5978_s13 + $0x1c0] sm:$0xff] %v3447_v32 }
 0x568   : > { %v3117_v51 = vpop.f32.mrf.mxu1 }
 0x569   : > { %v3118_v47 = vadd.f32 %v6517_v4, %v3117_v51 }
 0x56b   : > { %v3192_v42 = vadd.f32 %v3118_v47, %v7246_v40 }
 0x56d   : > { %v3448_v60 = vadd.f32 %v3192_v42, %v6535_v34 }
 0x56f   : > { %3512 = vst [vmem:[%s5978_s13 + $0x1c8] sm:$0xff] %v3448_v60 }
 0x570   : > { %v3120_v15 = vpop.f32.mrf.mxu1 }
 0x571   : > { %v3121_v49 = vadd.f32 %v6517_v4, %v3120_v15 }
 0x573   : > { %v3193_v13 = vadd.f32 %v3121_v49, %v7247_v50 }
 0x575   : > { %v3449_v10 = vadd.f32 %v3193_v13, %v6549_v56 }
 0x577   : > { %3513 = vst [vmem:[%s5978_s13 + $0x1d0] sm:$0xff] %v3449_v10 }
 0x578   : > { %v3122_v8 = vpop.f32.mrf.mxu1 }
 0x579   : > { %v3123_v22 = vadd.f32 %v6517_v4, %v3122_v8 }
 0x57b   : > { %v3194_v29 = vadd.f32 %v3123_v22, %v7248_v19 }
 0x57d   : > { %v3450_v36 = vadd.f32 %v3194_v29, %v6553_v20 }
 0x57f   : > { %3514 = vst [vmem:[%s5978_s13 + $0x1d8] sm:$0xff] %v3450_v36 }
 0x580   : > { %v3125_v34 = vpop.f32.mrf.mxu1 }
 0x581   : > { %v3126_v11 = vadd.f32 %v6517_v4, %v3125_v34 }
 0x583   : > { %v3195_v62 = vadd.f32 %v3126_v11, %v6392_v30 }
 0x585   : > { %v3451_v3 = vadd.f32 %v3195_v62, %v6567_v53 }
 0x587   : > { %3515 = vst [vmem:[%s5978_s13 + $0x1e0] sm:$0xff] %v3451_v3 }
 0x588   : > { %v3127_v56 = vpop.f32.mrf.mxu1 }
 0x589   : > { %v3128_v38 = vadd.f32 %v6517_v4, %v3127_v56 }
 0x58b   : > { %v3196_v52 = vadd.f32 %v3128_v38, %v7249_v23 }
 0x58d   : > { %v3452_v1 = vadd.f32 %v3196_v52, %v6571_v14 }
 0x58f   : > { %3516 = vst [vmem:[%s5978_s13 + $0x1e8] sm:$0xff] %v3452_v1 }
 0x590   : > { %v3130_v20 = vpop.f32.mrf.mxu1 }
 0x591   : > { %v3131_v46 = vadd.f32 %v6517_v4, %v3130_v20 }
 0x593   : > { %v3197_v45 = vadd.f32 %v3131_v46, %v6420_v0 }
 0x595   : > { %v3453_v30 = vadd.f32 %v3197_v45, %v6585_v6 }
 0x597   : > { %3517 = vst [vmem:[%s5978_s13 + $0x1f0] sm:$0xff] %v3453_v30 }
 0x598   : > { %v3132_v53 = vpop.f32.mrf.mxu1 }
 0x599   : > { %v3133_v14 = vadd.f32 %v6517_v4, %v3132_v53 }
 0x59b   : > { %v3198_v26 = vadd.f32 %v3133_v14, %v7250_v2 }
 0x59d   : > { %v3454_v0 = vadd.f32 %v3198_v26, %v6589_v57 }
 0x59f   : > { %3518 = vst [vmem:[%s5978_s13 + $0x1f8] sm:$0xff] %v3454_v0 }
 0x5a0   : > { %4192 = shalt.err (!%p4189_p10)
}
 0x5a1   : > { %s4250_s17 = smov 128   ;;  %s4251_s13 = smov 8  }
 0x5a2   : > { %3931 = dma.vmem_to_hbm [thread:$0]  (%p4365_p7), %s3533_s16, 8192, %s3535_s23, %s3520_s22, %s4250_s17, %s4250_s17, %s4251_s13  }
 0x5a3 PF: > { %s3549_s28 = sand.u32 1, %s4227_s18   ;;  %p7251_p12 = scmp.ge.s32.totalorder %s4239_s21, 2 }
 0x5a4   : > { %s3550_s6 = scalar_lea.sflag [#allocation6], %s3549_s28 }
 0x5a5   : > { %p3948_p13 = pnand %p7251_p12, %p4317_p6 }
 0x5a7   : > { %p3949_p0 = pneg %p3948_p13 }
 0x5a9   : > { %4222 = dma.done.wait (%p3949_p0), %s3550_s6, 8192  }
 0x5aa   : > { %4224 = vsyncadd (%p3949_p0), %s3550_s6, 4294959104  ;;  %p20_p3 = scmp.ge.s32.totalorder %s4351_s30, 4   ;;  %s7252_s18 = smov %s4231_s19 }
 0x5ab   : > { %s7253_s19 = smov %s4235_s20  ;;  %s7254_s20 = smov %s4361_s9 }
 0x5ac   : > { %s7255_s21 = smov %s4351_s30  ;;  %22 = sbr.rel (!%p20_p3) target bundleno = 7 (0x7), region = 105 }
 0x5b1   :  { %3556 = vsyncpa [#allocation5], 1 }
 0x5b2   :  { %3558 = vsyncpa [#allocation5 + $0x1], 1 }
 0x5b3   :  { %3559 = vsyncpa [#allocation8], 1 }
 0x5b4   :  { %3560 = vsyncpa [#allocation11], 1 }
 0x5b5   :  { %3561 = vsyncpa [#allocation6], 1 }
 0x5b6   :  { %3563 = vsyncpa [#allocation6 + $0x1], 1 }

</bundles_post_ra>
